<compile_context>
chip_gen: v5e
topology: v5e:2x2
jax: 0.10.0
libtpu: 0.0.40
codegen_flags: <defaults>
</compile_context>

<pallas_src>
import jax
import jax.numpy as jnp
from jax.experimental import pallas as pl
from jax.experimental.pallas import tpu as pltpu

NUM_CLASSES = 7
LOGITS_PAD = 128          # lane-dense classifier output; real logits = [:, :7]
V34_PAD = 64              # torch.cat([v3, v4]) gives 50 features; pad K to 64
BN_EPS = 1e-5

WEIGHT_ORDER = (
    "w_text", "w_a1", "w_a34", "w_ac1", "w_ac34", "w_vis",
    "w_fus_text", "w_aud_comb", "w_vis_comb", "w_c1", "w_c2",
)

# All bias vectors packed into one (1, 2304) f32 operand; every offset is a
# multiple of 128 so in-kernel static slices stay lane-aligned.
BIAS_LAYOUT = {
    "b_text": (0, 512),
    "b_fus":  (512, 512),
    "b_a1":   (1024, 256),
    "b_ac":   (1280, 256),
    "b_vis":  (1536, 256),
    "b_c1":   (1792, 256),
    "b_a34":  (2048, 128),
    "b_c2":   (2176, 128),
}
BIAS_TOTAL = 2304


def _emotion_kernel(
    # activations (one batch tile each, bf16)
    pooled_ref, v1_ref, v34_ref, a2_ref,
    # bf16 weights (constant across batch tiles)
    w_text_ref, w_a1_ref, w_a34_ref, w_ac1_ref, w_ac34_ref, w_vis_ref,
    w_fus_text_ref, w_aud_comb_ref, w_vis_comb_ref, w_c1_ref, w_c2_ref,
    # packed f32 biases
    bias_ref,
    # output (lane-padded logits, f32)
    logits_ref,
):
  f32 = jnp.float32
  bf16 = jnp.bfloat16

  def mm(x, w_ref):
    # bf16 MXU matmul, f32 accumulate (astype is a no-op on bf16 inputs).
    return jnp.dot(x.astype(bf16), w_ref[...], preferred_element_type=f32)

  def bias(name):
    off, n = BIAS_LAYOUT[name]
    return bias_ref[:, off:off + n]

  def relu(x):
    return jnp.maximum(x, 0.0)

  # ---- text branch: Linear(768,512) + ReLU (+ Dropout == identity in eval)
  text = relu(mm(pooled_ref[...], w_text_ref) + bias("b_text"))

  # ---- audio v1 branch: Linear(512,256) + ReLU (BN folded into w_ac1/b_ac)
  a1 = relu(mm(v1_ref[...], w_a1_ref) + bias("b_a1"))

  # ---- audio v3||v4 branch: Linear(50->64 padded,128) + ReLU (BN folded fwd)
  a34 = relu(mm(v34_ref[...], w_a34_ref) + bias("b_a34"))

  # ---- audio combined: Linear(384,256) over concat([a1, a34]) as split dots
  audio = relu(mm(a1, w_ac1_ref) + mm(a34, w_ac34_ref) + bias("b_ac"))

  # ---- visual branch: Linear(512,256) + ReLU (BN folded into w_vis_comb)
  vis = relu(mm(a2_ref[...], w_vis_ref) + bias("b_vis"))

  # ---- fusion with the single-key cross-modal attention folded in:
  #      fused = relu(text@W_fus_att + audio@W_aud_comb + vis@W_vis_comb + b')
  fused = relu(mm(text, w_fus_text_ref)
               + mm(audio, w_aud_comb_ref)
               + mm(vis, w_vis_comb_ref)
               + bias("b_fus"))

  # ---- classifier: Linear(512,256) + ReLU + Linear(256,7) (lane-padded 128)
  h = relu(mm(fused, w_c1_ref) + bias("b_c1"))
  logits_ref[...] = mm(h, w_c2_ref) + bias("b_c2")


def init_params(key):
  """Deterministic synthetic parameters matching the PyTorch module's shapes."""
  def lin(key, fan_in, fan_out):
    kw, kb = jax.random.split(key)
    w = jax.random.normal(kw, (fan_in, fan_out), jnp.float32) * 0.02
    b = jax.random.normal(kb, (1, fan_out), jnp.float32) * 0.02
    return w, b

  def bn(num_feat):
    # Inference BatchNorm1d with synthetic running stats (mean=0, var=1,
    # gamma=1, beta=0):  scale = gamma/sqrt(var+eps),  shift = beta - mean*scale.
    scale = jnp.full((1, num_feat), 1.0 / jnp.sqrt(1.0 + BN_EPS), jnp.float32)
    shift = jnp.zeros((1, num_feat), jnp.float32)
    return scale, shift

  keys = jax.random.split(key, 16)
  p = {}
  p["w_text"], p["b_text"] = lin(keys[0], 768, 512)
  p["w_a1"], p["b_a1"] = lin(keys[1], 512, 256)
  p["s_a1"], p["t_a1"] = bn(256)
  p["w_a34"], p["b_a34"] = lin(keys[2], 50, 128)
  p["s_a34"], p["t_a34"] = bn(128)
  p["w_ac"], p["b_ac"] = lin(keys[3], 384, 256)
  p["w_vis"], p["b_vis"] = lin(keys[4], 512, 256)
  p["s_vis"], p["t_vis"] = bn(256)
  # MultiheadAttention(512, 8): with a single key/value token the softmax is 1
  # and the output is exactly out_proj(V_proj(kv)); only V / out projections
  # influence the result, so only those are materialized.  Weights stored (in, out).
  p["wv_ta"], p["bv_ta"] = lin(keys[5], 512, 512)
  p["wo_ta"], p["bo_ta"] = lin(keys[6], 512, 512)
  p["wv_tv"], p["bv_tv"] = lin(keys[7], 512, 512)
  p["wo_tv"], p["bo_tv"] = lin(keys[8], 512, 512)
  p["w_fus"], p["b_fus"] = lin(keys[9], 1024, 512)
  p["w_c1"], p["b_c1"] = lin(keys[10], 512, 256)
  p["w_c2"], p["b_c2"] = lin(keys[11], 256, NUM_CLASSES)
  return p


def prepare_kernel_params(p):
  """One-time host-side precompute: exact folds, bf16 cast, padding, bias pack.

  NOTE when importing real PyTorch weights: nn.Linear stores W as (out, in) and
  computes x@W^T -- transpose to (in, out) before calling this function.
  """
  bf16 = jnp.bfloat16
  f32 = jnp.float32

  # 1) single-key MHA == out_proj(V_proj(kv)); kv = [features(256), zeros(256)],
  #    so only the top 256 rows of the V projection matter.  Fold V@O (exact, f32).
  w_ta = p["wv_ta"][:256, :] @ p["wo_ta"]                   # (256, 512)
  b_ta = p["bv_ta"] @ p["wo_ta"] + p["bo_ta"]               # (1, 512)
  w_tv = p["wv_tv"][:256, :] @ p["wo_tv"]
  b_tv = p["bv_tv"] @ p["wo_tv"] + p["bo_tv"]

  # 2) fold the attention outputs into the fusion linear:
  #    attended = text + audio@w_ta + b_ta + vis@w_tv + b_tv  only feeds fusion.
  w_fus_att = p["w_fus"][:512, :]                           # (512, 512)
  w_aud_comb = w_ta @ w_fus_att + p["w_fus"][512:768, :]    # (256, 512)
  w_vis_comb = w_tv @ w_fus_att + p["w_fus"][768:1024, :]   # (256, 512)
  b_fus = (b_ta + b_tv) @ w_fus_att + p["b_fus"]            # (1, 512)

  # 3) fold inference BatchNorm (applied after ReLU) forward into the next linear.
  w_ac1 = p["w_ac"][:256, :]
  w_ac34 = p["w_ac"][256:384, :]
  b_ac = p["b_ac"] + p["t_a1"] @ w_ac1 + p["t_a34"] @ w_ac34
  w_ac1 = w_ac1 * p["s_a1"].T
  w_ac34 = w_ac34 * p["s_a34"].T

  b_fus = b_fus + p["t_vis"] @ w_vis_comb
  w_vis_comb = w_vis_comb * p["s_vis"].T

  # 4) zero-pad contraction dim 50 -> 64 and classifier lane dim 7 -> 128.
  w_a34 = jnp.zeros((V34_PAD, 128), f32).at[:50, :].set(p["w_a34"])
  w_c2 = jnp.zeros((256, LOGITS_PAD), f32).at[:, :NUM_CLASSES].set(p["w_c2"])
  b_c2 = jnp.zeros((1, LOGITS_PAD), f32).at[:, :NUM_CLASSES].set(p["b_c2"])

  weights = {
      "w_text": p["w_text"], "w_a1": p["w_a1"], "w_a34": w_a34,
      "w_ac1": w_ac1, "w_ac34": w_ac34, "w_vis": p["w_vis"],
      "w_fus_text": w_fus_att, "w_aud_comb": w_aud_comb,
      "w_vis_comb": w_vis_comb, "w_c1": p["w_c1"], "w_c2": w_c2,
  }
  kp = {name: weights[name].astype(bf16) for name in WEIGHT_ORDER}

  # 5) pack all bias vectors into one lane-aligned (1, 2304) f32 operand.
  biases = {
      "b_text": p["b_text"], "b_fus": b_fus, "b_a1": p["b_a1"],
      "b_ac": b_ac, "b_vis": p["b_vis"], "b_c1": p["b_c1"],
      "b_a34": p["b_a34"], "b_c2": b_c2,
  }
  pack = jnp.zeros((1, BIAS_TOTAL), f32)
  for name, (off, n) in BIAS_LAYOUT.items():
    pack = pack.at[:, off:off + n].set(biases[name].astype(f32))
  kp["bias_pack"] = pack
  return kp


def _round_up(x, m):
  return (x + m - 1) // m * m


@jax.jit
def multimodal_emotion_forward(pooled, v1, v3, v4, a2, kparams):
  """Runs the whole post-BERT pipeline in one Pallas kernel.

  pooled: (B, 768) BERT pooler_output surrogate
  v1: (B, 512), v3/v4: (B, 25) each (concatenated to 50), a2: (B, 512)
  """
  B = pooled.shape[0]
  bf16 = jnp.bfloat16

  v34 = jnp.concatenate([v3, v4], axis=1)                  # torch.cat([v3, v4], 1)
  v34 = jnp.pad(v34, ((0, 0), (0, V34_PAD - v34.shape[1])))  # lane-friendly K

  # bf16 activations at the call boundary (MXU sees identical operands; halves
  # the activation DMA bytes).  All accumulation stays f32 inside the kernel.
  acts = [pooled.astype(bf16), v1.astype(bf16), v34.astype(bf16), a2.astype(bf16)]

  # Batch tile: aim for >= 2 grid steps so the "parallel" axis shards across
  # v7x's two TensorCores; cap at 256 (MXU M dim, safe within 64 MiB VMEM).
  tb = max(8, min(256, _round_up(-(-B // 2), 8)))
  b_pad = _round_up(B, tb)

  def pad_batch(x):
    if x.shape[0] == b_pad:
      return x
    return jnp.pad(x, ((0, b_pad - x.shape[0]), (0, 0)))

  acts = [pad_batch(x) for x in acts]
  weights = [kparams[name] for name in WEIGHT_ORDER]

  # Weights / bias pack use a constant index_map so they stay VMEM-resident
  # across batch tiles; only the activations stream per grid step.
  act_specs = [pl.BlockSpec((tb, x.shape[1]), lambda i: (i, 0)) for x in acts]
  par_specs = [pl.BlockSpec(w.shape, lambda i: (0, 0)) for w in weights]
  bias_spec = pl.BlockSpec(kparams["bias_pack"].shape, lambda i: (0, 0))

  out_padded = pl.pallas_call(
      _emotion_kernel,
      grid=(b_pad // tb,),
      in_specs=act_specs + par_specs + [bias_spec],
      out_specs=pl.BlockSpec((tb, LOGITS_PAD), lambda i: (i, 0)),
      out_shape=jax.ShapeDtypeStruct((b_pad, LOGITS_PAD), jnp.float32),
      compiler_params=pltpu.CompilerParams(
          dimension_semantics=("parallel",),
          vmem_limit_bytes=32 * 1024 * 1024),
  )(*acts, *weights, kparams["bias_pack"])

  return out_padded[:B, :NUM_CLASSES]


if __name__ == "__main__":
  B = 8
  key = jax.random.PRNGKey(0)
  k_pool, k_v1, k_v3, k_v4, k_a2, k_params = jax.random.split(key, 6)

  pooled = jax.random.normal(k_pool, (B, 768), jnp.float32)
  v1 = jax.random.normal(k_v1, (B, 512), jnp.float32)
  v3 = jax.random.normal(k_v3, (B, 25), jnp.float32)
  v4 = jax.random.normal(k_v4, (B, 25), jnp.float32)
  a2 = jax.random.normal(k_a2, (B, 512), jnp.float32)

  raw_params = init_params(k_params)
  kernel_params = prepare_kernel_params(raw_params)   # cached one-time precompute

  logits = multimodal_emotion_forward(pooled, v1, v3, v4, a2, kernel_params)
  jax.block_until_ready(logits)
  assert logits.shape == (B, NUM_CLASSES) and logits.dtype == jnp.float32
  assert bool(jnp.all(jnp.isfinite(logits)))
  print("KERNEL_OK")
</pallas_src>

<mosaic_0001>
module attributes {stable_mosaic.version = 11 : i64} {
  func.func @_emotion_kernel(%arg0: i32, %arg1: memref<8x768xbf16, #tpu.memory_space<vmem>>, %arg2: memref<8x512xbf16, #tpu.memory_space<vmem>>, %arg3: memref<8x64xbf16, #tpu.memory_space<vmem>>, %arg4: memref<8x512xbf16, #tpu.memory_space<vmem>>, %arg5: memref<768x512xbf16, #tpu.memory_space<vmem>>, %arg6: memref<512x256xbf16, #tpu.memory_space<vmem>>, %arg7: memref<64x128xbf16, #tpu.memory_space<vmem>>, %arg8: memref<256x256xbf16, #tpu.memory_space<vmem>>, %arg9: memref<128x256xbf16, #tpu.memory_space<vmem>>, %arg10: memref<512x256xbf16, #tpu.memory_space<vmem>>, %arg11: memref<512x512xbf16, #tpu.memory_space<vmem>>, %arg12: memref<256x512xbf16, #tpu.memory_space<vmem>>, %arg13: memref<256x512xbf16, #tpu.memory_space<vmem>>, %arg14: memref<512x256xbf16, #tpu.memory_space<vmem>>, %arg15: memref<256x128xbf16, #tpu.memory_space<vmem>>, %arg16: memref<1x2304xf32, #tpu.memory_space<vmem>>, %arg17: memref<8x128xf32, #tpu.memory_space<vmem>>) attributes {dimension_semantics = [#tpu.dimension_semantics<parallel>], iteration_bounds = array<i64: 1>, scalar_prefetch = 0 : i64, scratch_operands = 0 : i64, tpu.core_type = #tpu.core_type<tc>, window_params = [{transform_indices = @transform_0, window_bounds = array<i64: 8, 768>}, {transform_indices = @transform_1, window_bounds = array<i64: 8, 512>}, {transform_indices = @transform_2, window_bounds = array<i64: 8, 64>}, {transform_indices = @transform_3, window_bounds = array<i64: 8, 512>}, {pipeline_mode = #tpu.pipeline_mode<synchronous>, transform_indices = @transform_4, window_bounds = array<i64: 768, 512>}, {pipeline_mode = #tpu.pipeline_mode<synchronous>, transform_indices = @transform_5, window_bounds = array<i64: 512, 256>}, {pipeline_mode = #tpu.pipeline_mode<synchronous>, transform_indices = @transform_6, window_bounds = array<i64: 64, 128>}, {pipeline_mode = #tpu.pipeline_mode<synchronous>, transform_indices = @transform_7, window_bounds = array<i64: 256, 256>}, {pipeline_mode = #tpu.pipeline_mode<synchronous>, transform_indices = @transform_8, window_bounds = array<i64: 128, 256>}, {pipeline_mode = #tpu.pipeline_mode<synchronous>, transform_indices = @transform_9, window_bounds = array<i64: 512, 256>}, {pipeline_mode = #tpu.pipeline_mode<synchronous>, transform_indices = @transform_10, window_bounds = array<i64: 512, 512>}, {pipeline_mode = #tpu.pipeline_mode<synchronous>, transform_indices = @transform_11, window_bounds = array<i64: 256, 512>}, {pipeline_mode = #tpu.pipeline_mode<synchronous>, transform_indices = @transform_12, window_bounds = array<i64: 256, 512>}, {pipeline_mode = #tpu.pipeline_mode<synchronous>, transform_indices = @transform_13, window_bounds = array<i64: 512, 256>}, {pipeline_mode = #tpu.pipeline_mode<synchronous>, transform_indices = @transform_14, window_bounds = array<i64: 256, 128>}, {pipeline_mode = #tpu.pipeline_mode<synchronous>, transform_indices = @transform_15, window_bounds = array<i64: 1, 2304>}, {transform_indices = @transform_16, window_bounds = array<i64: 8, 128>}]} {
    %c0 = arith.constant 0 : index
    %c0_0 = arith.constant 0 : index
    %0 = vector.load %arg1[%c0, %c0_0] : memref<8x768xbf16, #tpu.memory_space<vmem>>, vector<8x768xbf16>
    %c0_1 = arith.constant 0 : index
    %c0_2 = arith.constant 0 : index
    %1 = vector.load %arg5[%c0_1, %c0_2] : memref<768x512xbf16, #tpu.memory_space<vmem>>, vector<768x512xbf16>
    %cst = arith.constant dense<0.000000e+00> : vector<8x512xf32>
    %2 = tpu.matmul %0, %1, %cst {dimension_numbers = #tpu.dot_dimension_numbers<[1], [0], [0], [1], [0, 0, 1, 1], [], []>} : vector<8x768xbf16>, vector<768x512xbf16>, vector<8x512xf32> -> vector<8x512xf32>
    %c0_3 = arith.constant 0 : index
    %c0_4 = arith.constant 0 : index
    %3 = vector.load %arg16[%c0_3, %c0_4] : memref<1x2304xf32, #tpu.memory_space<vmem>>, vector<1x512xf32>
    %4 = vector.broadcast %3 : vector<1x512xf32> to vector<8x512xf32>
    %5 = arith.addf %2, %4 : vector<8x512xf32>
    %cst_5 = arith.constant 0.000000e+00 : f32
    %6 = vector.broadcast %cst_5 : f32 to vector<8x512xf32>
    %7 = arith.maximumf %5, %6 : vector<8x512xf32>
    %c0_6 = arith.constant 0 : index
    %c0_7 = arith.constant 0 : index
    %8 = vector.load %arg2[%c0_6, %c0_7] : memref<8x512xbf16, #tpu.memory_space<vmem>>, vector<8x512xbf16>
    %c0_8 = arith.constant 0 : index
    %c0_9 = arith.constant 0 : index
    %9 = vector.load %arg6[%c0_8, %c0_9] : memref<512x256xbf16, #tpu.memory_space<vmem>>, vector<512x256xbf16>
    %cst_10 = arith.constant dense<0.000000e+00> : vector<8x256xf32>
    %10 = tpu.matmul %8, %9, %cst_10 {dimension_numbers = #tpu.dot_dimension_numbers<[1], [0], [0], [1], [0, 0, 1, 1], [], []>} : vector<8x512xbf16>, vector<512x256xbf16>, vector<8x256xf32> -> vector<8x256xf32>
    %c0_11 = arith.constant 0 : index
    %c1024 = arith.constant 1024 : index
    %11 = vector.load %arg16[%c0_11, %c1024] : memref<1x2304xf32, #tpu.memory_space<vmem>>, vector<1x256xf32>
    %12 = vector.broadcast %11 : vector<1x256xf32> to vector<8x256xf32>
    %13 = arith.addf %10, %12 : vector<8x256xf32>
    %cst_12 = arith.constant 0.000000e+00 : f32
    %14 = vector.broadcast %cst_12 : f32 to vector<8x256xf32>
    %15 = arith.maximumf %13, %14 : vector<8x256xf32>
    %c0_13 = arith.constant 0 : index
    %c0_14 = arith.constant 0 : index
    %16 = vector.load %arg3[%c0_13, %c0_14] : memref<8x64xbf16, #tpu.memory_space<vmem>>, vector<8x64xbf16>
    %c0_15 = arith.constant 0 : index
    %c0_16 = arith.constant 0 : index
    %17 = vector.load %arg7[%c0_15, %c0_16] : memref<64x128xbf16, #tpu.memory_space<vmem>>, vector<64x128xbf16>
    %cst_17 = arith.constant dense<0.000000e+00> : vector<8x128xf32>
    %18 = tpu.matmul %16, %17, %cst_17 {dimension_numbers = #tpu.dot_dimension_numbers<[1], [0], [0], [1], [0, 0, 1, 1], [], []>} : vector<8x64xbf16>, vector<64x128xbf16>, vector<8x128xf32> -> vector<8x128xf32>
    %c0_18 = arith.constant 0 : index
    %c2048 = arith.constant 2048 : index
    %19 = vector.load %arg16[%c0_18, %c2048] : memref<1x2304xf32, #tpu.memory_space<vmem>>, vector<1x128xf32>
    %20 = vector.broadcast %19 : vector<1x128xf32> to vector<8x128xf32>
    %21 = arith.addf %18, %20 : vector<8x128xf32>
    %cst_19 = arith.constant 0.000000e+00 : f32
    %22 = vector.broadcast %cst_19 : f32 to vector<8x128xf32>
    %23 = arith.maximumf %21, %22 : vector<8x128xf32>
    %24 = arith.truncf %15 : vector<8x256xf32> to vector<8x256xbf16>
    %c0_20 = arith.constant 0 : index
    %c0_21 = arith.constant 0 : index
    %25 = vector.load %arg8[%c0_20, %c0_21] : memref<256x256xbf16, #tpu.memory_space<vmem>>, vector<256x256xbf16>
    %cst_22 = arith.constant dense<0.000000e+00> : vector<8x256xf32>
    %26 = tpu.matmul %24, %25, %cst_22 {dimension_numbers = #tpu.dot_dimension_numbers<[1], [0], [0], [1], [0, 0, 1, 1], [], []>} : vector<8x256xbf16>, vector<256x256xbf16>, vector<8x256xf32> -> vector<8x256xf32>
    %27 = arith.truncf %23 : vector<8x128xf32> to vector<8x128xbf16>
    %c0_23 = arith.constant 0 : index
    %c0_24 = arith.constant 0 : index
    %28 = vector.load %arg9[%c0_23, %c0_24] : memref<128x256xbf16, #tpu.memory_space<vmem>>, vector<128x256xbf16>
    %cst_25 = arith.constant dense<0.000000e+00> : vector<8x256xf32>
    %29 = tpu.matmul %27, %28, %cst_25 {dimension_numbers = #tpu.dot_dimension_numbers<[1], [0], [0], [1], [0, 0, 1, 1], [], []>} : vector<8x128xbf16>, vector<128x256xbf16>, vector<8x256xf32> -> vector<8x256xf32>
    %30 = arith.addf %26, %29 : vector<8x256xf32>
    %c0_26 = arith.constant 0 : index
    %c1280 = arith.constant 1280 : index
    %31 = vector.load %arg16[%c0_26, %c1280] : memref<1x2304xf32, #tpu.memory_space<vmem>>, vector<1x256xf32>
    %32 = vector.broadcast %31 : vector<1x256xf32> to vector<8x256xf32>
    %33 = arith.addf %30, %32 : vector<8x256xf32>
    %cst_27 = arith.constant 0.000000e+00 : f32
    %34 = vector.broadcast %cst_27 : f32 to vector<8x256xf32>
    %35 = arith.maximumf %33, %34 : vector<8x256xf32>
    %c0_28 = arith.constant 0 : index
    %c0_29 = arith.constant 0 : index
    %36 = vector.load %arg4[%c0_28, %c0_29] : memref<8x512xbf16, #tpu.memory_space<vmem>>, vector<8x512xbf16>
    %c0_30 = arith.constant 0 : index
    %c0_31 = arith.constant 0 : index
    %37 = vector.load %arg10[%c0_30, %c0_31] : memref<512x256xbf16, #tpu.memory_space<vmem>>, vector<512x256xbf16>
    %cst_32 = arith.constant dense<0.000000e+00> : vector<8x256xf32>
    %38 = tpu.matmul %36, %37, %cst_32 {dimension_numbers = #tpu.dot_dimension_numbers<[1], [0], [0], [1], [0, 0, 1, 1], [], []>} : vector<8x512xbf16>, vector<512x256xbf16>, vector<8x256xf32> -> vector<8x256xf32>
    %c0_33 = arith.constant 0 : index
    %c1536 = arith.constant 1536 : index
    %39 = vector.load %arg16[%c0_33, %c1536] : memref<1x2304xf32, #tpu.memory_space<vmem>>, vector<1x256xf32>
    %40 = vector.broadcast %39 : vector<1x256xf32> to vector<8x256xf32>
    %41 = arith.addf %38, %40 : vector<8x256xf32>
    %cst_34 = arith.constant 0.000000e+00 : f32
    %42 = vector.broadcast %cst_34 : f32 to vector<8x256xf32>
    %43 = arith.maximumf %41, %42 : vector<8x256xf32>
    %44 = arith.truncf %7 : vector<8x512xf32> to vector<8x512xbf16>
    %c0_35 = arith.constant 0 : index
    %c0_36 = arith.constant 0 : index
    %45 = vector.load %arg11[%c0_35, %c0_36] : memref<512x512xbf16, #tpu.memory_space<vmem>>, vector<512x512xbf16>
    %cst_37 = arith.constant dense<0.000000e+00> : vector<8x512xf32>
    %46 = tpu.matmul %44, %45, %cst_37 {dimension_numbers = #tpu.dot_dimension_numbers<[1], [0], [0], [1], [0, 0, 1, 1], [], []>} : vector<8x512xbf16>, vector<512x512xbf16>, vector<8x512xf32> -> vector<8x512xf32>
    %47 = arith.truncf %35 : vector<8x256xf32> to vector<8x256xbf16>
    %c0_38 = arith.constant 0 : index
    %c0_39 = arith.constant 0 : index
    %48 = vector.load %arg12[%c0_38, %c0_39] : memref<256x512xbf16, #tpu.memory_space<vmem>>, vector<256x512xbf16>
    %cst_40 = arith.constant dense<0.000000e+00> : vector<8x512xf32>
    %49 = tpu.matmul %47, %48, %cst_40 {dimension_numbers = #tpu.dot_dimension_numbers<[1], [0], [0], [1], [0, 0, 1, 1], [], []>} : vector<8x256xbf16>, vector<256x512xbf16>, vector<8x512xf32> -> vector<8x512xf32>
    %50 = arith.addf %46, %49 : vector<8x512xf32>
    %51 = arith.truncf %43 : vector<8x256xf32> to vector<8x256xbf16>
    %c0_41 = arith.constant 0 : index
    %c0_42 = arith.constant 0 : index
    %52 = vector.load %arg13[%c0_41, %c0_42] : memref<256x512xbf16, #tpu.memory_space<vmem>>, vector<256x512xbf16>
    %cst_43 = arith.constant dense<0.000000e+00> : vector<8x512xf32>
    %53 = tpu.matmul %51, %52, %cst_43 {dimension_numbers = #tpu.dot_dimension_numbers<[1], [0], [0], [1], [0, 0, 1, 1], [], []>} : vector<8x256xbf16>, vector<256x512xbf16>, vector<8x512xf32> -> vector<8x512xf32>
    %54 = arith.addf %50, %53 : vector<8x512xf32>
    %c0_44 = arith.constant 0 : index
    %c512 = arith.constant 512 : index
    %55 = vector.load %arg16[%c0_44, %c512] : memref<1x2304xf32, #tpu.memory_space<vmem>>, vector<1x512xf32>
    %56 = vector.broadcast %55 : vector<1x512xf32> to vector<8x512xf32>
    %57 = arith.addf %54, %56 : vector<8x512xf32>
    %cst_45 = arith.constant 0.000000e+00 : f32
    %58 = vector.broadcast %cst_45 : f32 to vector<8x512xf32>
    %59 = arith.maximumf %57, %58 : vector<8x512xf32>
    %60 = arith.truncf %59 : vector<8x512xf32> to vector<8x512xbf16>
    %c0_46 = arith.constant 0 : index
    %c0_47 = arith.constant 0 : index
    %61 = vector.load %arg14[%c0_46, %c0_47] : memref<512x256xbf16, #tpu.memory_space<vmem>>, vector<512x256xbf16>
    %cst_48 = arith.constant dense<0.000000e+00> : vector<8x256xf32>
    %62 = tpu.matmul %60, %61, %cst_48 {dimension_numbers = #tpu.dot_dimension_numbers<[1], [0], [0], [1], [0, 0, 1, 1], [], []>} : vector<8x512xbf16>, vector<512x256xbf16>, vector<8x256xf32> -> vector<8x256xf32>
    %c0_49 = arith.constant 0 : index
    %c1792 = arith.constant 1792 : index
    %63 = vector.load %arg16[%c0_49, %c1792] : memref<1x2304xf32, #tpu.memory_space<vmem>>, vector<1x256xf32>
    %64 = vector.broadcast %63 : vector<1x256xf32> to vector<8x256xf32>
    %65 = arith.addf %62, %64 : vector<8x256xf32>
    %cst_50 = arith.constant 0.000000e+00 : f32
    %66 = vector.broadcast %cst_50 : f32 to vector<8x256xf32>
    %67 = arith.maximumf %65, %66 : vector<8x256xf32>
    %68 = arith.truncf %67 : vector<8x256xf32> to vector<8x256xbf16>
    %c0_51 = arith.constant 0 : index
    %c0_52 = arith.constant 0 : index
    %69 = vector.load %arg15[%c0_51, %c0_52] : memref<256x128xbf16, #tpu.memory_space<vmem>>, vector<256x128xbf16>
    %cst_53 = arith.constant dense<0.000000e+00> : vector<8x128xf32>
    %70 = tpu.matmul %68, %69, %cst_53 {dimension_numbers = #tpu.dot_dimension_numbers<[1], [0], [0], [1], [0, 0, 1, 1], [], []>} : vector<8x256xbf16>, vector<256x128xbf16>, vector<8x128xf32> -> vector<8x128xf32>
    %c0_54 = arith.constant 0 : index
    %c2176 = arith.constant 2176 : index
    %71 = vector.load %arg16[%c0_54, %c2176] : memref<1x2304xf32, #tpu.memory_space<vmem>>, vector<1x128xf32>
    %72 = vector.broadcast %71 : vector<1x128xf32> to vector<8x128xf32>
    %73 = arith.addf %70, %72 : vector<8x128xf32>
    %c0_55 = arith.constant 0 : index
    %c0_56 = arith.constant 0 : index
    %74 = vector.load %arg17[%c0_55, %c0_56] : memref<8x128xf32, #tpu.memory_space<vmem>>, vector<8x128xf32>
    tpu.vector_store %arg17[%c0_55, %c0_56], %73 {strides = array<i32>} : memref<8x128xf32, #tpu.memory_space<vmem>>, vector<8x128xf32>,
    return
  }
  func.func @transform_0(%arg0: i32) -> (i32, i32) {
    %c0_i32 = arith.constant 0 : i32
    %c0_i32_0 = arith.constant 0 : i32
    return %arg0, %c0_i32 : i32, i32
  }
  func.func @transform_1(%arg0: i32) -> (i32, i32) {
    %c0_i32 = arith.constant 0 : i32
    %c0_i32_0 = arith.constant 0 : i32
    return %arg0, %c0_i32 : i32, i32
  }
  func.func @transform_2(%arg0: i32) -> (i32, i32) {
    %c0_i32 = arith.constant 0 : i32
    %c0_i32_0 = arith.constant 0 : i32
    return %arg0, %c0_i32 : i32, i32
  }
  func.func @transform_3(%arg0: i32) -> (i32, i32) {
    %c0_i32 = arith.constant 0 : i32
    %c0_i32_0 = arith.constant 0 : i32
    return %arg0, %c0_i32 : i32, i32
  }
  func.func @transform_4(%arg0: i32) -> (i32, i32) {
    %c0_i32 = arith.constant 0 : i32
    %c0_i32_0 = arith.constant 0 : i32
    %c0_i32_1 = arith.constant 0 : i32
    return %c0_i32, %c0_i32_0 : i32, i32
  }
  func.func @transform_5(%arg0: i32) -> (i32, i32) {
    %c0_i32 = arith.constant 0 : i32
    %c0_i32_0 = arith.constant 0 : i32
    %c0_i32_1 = arith.constant 0 : i32
    return %c0_i32, %c0_i32_0 : i32, i32
  }
  func.func @transform_6(%arg0: i32) -> (i32, i32) {
    %c0_i32 = arith.constant 0 : i32
    %c0_i32_0 = arith.constant 0 : i32
    %c0_i32_1 = arith.constant 0 : i32
    return %c0_i32, %c0_i32_0 : i32, i32
  }
  func.func @transform_7(%arg0: i32) -> (i32, i32) {
    %c0_i32 = arith.constant 0 : i32
    %c0_i32_0 = arith.constant 0 : i32
    %c0_i32_1 = arith.constant 0 : i32
    return %c0_i32, %c0_i32_0 : i32, i32
  }
  func.func @transform_8(%arg0: i32) -> (i32, i32) {
    %c0_i32 = arith.constant 0 : i32
    %c0_i32_0 = arith.constant 0 : i32
    %c0_i32_1 = arith.constant 0 : i32
    return %c0_i32, %c0_i32_0 : i32, i32
  }
  func.func @transform_9(%arg0: i32) -> (i32, i32) {
    %c0_i32 = arith.constant 0 : i32
    %c0_i32_0 = arith.constant 0 : i32
    %c0_i32_1 = arith.constant 0 : i32
    return %c0_i32, %c0_i32_0 : i32, i32
  }
  func.func @transform_10(%arg0: i32) -> (i32, i32) {
    %c0_i32 = arith.constant 0 : i32
    %c0_i32_0 = arith.constant 0 : i32
    %c0_i32_1 = arith.constant 0 : i32
    return %c0_i32, %c0_i32_0 : i32, i32
  }
  func.func @transform_11(%arg0: i32) -> (i32, i32) {
    %c0_i32 = arith.constant 0 : i32
    %c0_i32_0 = arith.constant 0 : i32
    %c0_i32_1 = arith.constant 0 : i32
    return %c0_i32, %c0_i32_0 : i32, i32
  }
  func.func @transform_12(%arg0: i32) -> (i32, i32) {
    %c0_i32 = arith.constant 0 : i32
    %c0_i32_0 = arith.constant 0 : i32
    %c0_i32_1 = arith.constant 0 : i32
    return %c0_i32, %c0_i32_0 : i32, i32
  }
  func.func @transform_13(%arg0: i32) -> (i32, i32) {
    %c0_i32 = arith.constant 0 : i32
    %c0_i32_0 = arith.constant 0 : i32
    %c0_i32_1 = arith.constant 0 : i32
    return %c0_i32, %c0_i32_0 : i32, i32
  }
  func.func @transform_14(%arg0: i32) -> (i32, i32) {
    %c0_i32 = arith.constant 0 : i32
    %c0_i32_0 = arith.constant 0 : i32
    %c0_i32_1 = arith.constant 0 : i32
    return %c0_i32, %c0_i32_0 : i32, i32
  }
  func.func @transform_15(%arg0: i32) -> (i32, i32) {
    %c0_i32 = arith.constant 0 : i32
    %c0_i32_0 = arith.constant 0 : i32
    %c0_i32_1 = arith.constant 0 : i32
    return %c0_i32, %c0_i32_0 : i32, i32
  }
  func.func @transform_16(%arg0: i32) -> (i32, i32) {
    %c0_i32 = arith.constant 0 : i32
    %c0_i32_0 = arith.constant 0 : i32
    return %arg0, %c0_i32 : i32, i32
  }
}

</mosaic_0001>

<bundles_post_ra>
// kernel: multimodal_emotion_forward.1
= control target key start
LH: loop header
LB: loop body
LE: loop exit
PB: predicated region body
PF: predicated region fallthrough
CT: control target
= control target key end

     0   :  { %s10123_s0 = inlined_call_operand.vmem [shape: bf16[8,768], index: 0, kind: input, shape index: {}]   ;;  %s10124_s1 = inlined_call_operand.vmem [shape: bf16[8,512], index: 1, kind: input, shape index: {}]   ;;  %s10125_s2 = inlined_call_operand.vmem [shape: bf16[8,64], index: 2, kind: input, shape index: {}]   ;;  %s10126_s3 = inlined_call_operand.vmem [shape: bf16[8,512], index: 3, kind: input, shape index: {}]   ;;  %s10127_s4 = inlined_call_operand.hbm [shape: bf16[768,512], index: 4, kind: input, shape index: {}]   ;;  %s10128_s5 = inlined_call_operand.hbm [shape: bf16[512,256], index: 5, kind: input, shape index: {}]   ;;  %s10129_s6 = inlined_call_operand.vmem [shape: bf16[64,128], index: 6, kind: input, shape index: {}]   ;;  %s10130_s7 = inlined_call_operand.hbm [shape: bf16[256,256], index: 7, kind: input, shape index: {}]   ;;  %s10131_s8 = inlined_call_operand.hbm [shape: bf16[128,256], index: 8, kind: input, shape index: {}]   ;;  %s10132_s9 = inlined_call_operand.hbm [shape: bf16[512,256], index: 9, kind: input, shape index: {}]   ;;  %s10133_s10 = inlined_call_operand.hbm [shape: bf16[512,512], index: 10, kind: input, shape index: {}]   ;;  %s10134_s11 = inlined_call_operand.hbm [shape: bf16[256,512], index: 11, kind: input, shape index: {}]   ;;  %s10135_s12 = inlined_call_operand.hbm [shape: bf16[256,512], index: 12, kind: input, shape index: {}]   ;;  %s10136_s13 = inlined_call_operand.hbm [shape: bf16[512,256], index: 13, kind: input, shape index: {}]   ;;  %s10137_s14 = inlined_call_operand.hbm [shape: bf16[256,128], index: 14, kind: input, shape index: {}]   ;;  %s10138_s15 = inlined_call_operand.vmem [shape: f32[1,2304], index: 15, kind: input, shape index: {}]   ;;  %s10139_s16 = inlined_call_operand.hbm [shape: f32[8,128], index: 16, kind: output, shape index: {}]  }
   0x1   :  { %10141 = sst [smem:[#allocation27_spill]] %s10123_s0 }
   0x2   :  { %21 = vsyncpa [#allocation3], 0 }
   0x3   :  { %22 = vsyncpa [#allocation6], 0 }
   0x4   :  { %23 = vsyncpa [#allocation9], 0 }
   0x5   :  { %24 = vsyncpa [#allocation12], 0 }
   0x6   :  { %25 = vsyncpa [#allocation15], 0 }
   0x7   :  { %26 = vsyncpa [#allocation18], 0  ;;  %s53_s23 = sshll.u32 %s10128_s5, 4  ;;  %s54_s23 = int_to_ptr.hbm [resolvable:$true] %s53_s23 }
   0x8   :  { %27 = vsyncpa [#allocation4], 0  ;;  %s9674_s24 = smov [#allocation5]   ;;  %s81_s28 = sshll.u32 %s10131_s8, 4  ;;  %s82_s28 = int_to_ptr.hbm [resolvable:$true] %s81_s28 }
   0x9   :  { %s55_s25 = sshll.u32 %s9674_s24, 4  ;;  %s9675_s29 = smov 128   ;;  %s56_s25 = int_to_ptr.vmem [resolvable:$true] %s55_s25 }
   0xa   :  { %s9676_s30 = smov 8   ;;  %s9677_s0 = smov [#allocation8]  }
   0xb   :  { %61 = dma.hbm_to_vmem [thread:$0]  %s54_s23, 8192, %s56_s25, [#allocation6], %s9675_s29, %s9675_s29, %s9676_s30  }
   0xc   :  { %s83_s17 = sshll.u32 %s9677_s0, 4  ;;  %s107_s19 = sshll.u32 %s10133_s10, 4  ;;  %s84_s17 = int_to_ptr.vmem [resolvable:$true] %s83_s17  ;;  %s108_s19 = int_to_ptr.hbm [resolvable:$true] %s107_s19 }
   0xd   :  { %89 = dma.hbm_to_vmem [thread:$0]  %s82_s28, 2048, %s84_s17, [#allocation9], %s9675_s29, %s9675_s29, %s9676_s30  }
   0xe   :  { %s9678_s8 = smov [#allocation11]   ;;  %s133_s23 = sshll.u32 %s10135_s12, 4  ;;  %s134_s23 = int_to_ptr.hbm [resolvable:$true] %s133_s23 }
   0xf   :  { %s109_s20 = sshll.u32 %s9678_s8, 4  ;;  %s9679_s24 = smov 256   ;;  %s110_s20 = int_to_ptr.vmem [resolvable:$true] %s109_s20 }
  0x10   :  { %s9680_s25 = smov 16   ;;  %s9681_s26 = smov [#allocation14]  }
  0x11   :  { %115 = dma.hbm_to_vmem [thread:$0]  %s108_s19, 16384, %s110_s20, [#allocation12], %s9679_s24, %s9679_s24, %s9680_s25  }
  0x12   :  { %s135_s27 = sshll.u32 %s9681_s26, 4  ;;  %s40_s10 = sshll.u32 %s10127_s4, 4  ;;  %s136_s27 = int_to_ptr.vmem [resolvable:$true] %s135_s27  ;;  %s41_s10 = int_to_ptr.hbm [resolvable:$true] %s40_s10 }
  0x13   :  { %141 = dma.hbm_to_vmem [thread:$0]  %s134_s23, 8192, %s136_s27, [#allocation15], %s9679_s24, %s9679_s24, %s9680_s25  }
  0x14   :  { %s68_s5 = sshll.u32 %s10130_s7, 4  ;;  %s9682_s18 = smov [#allocation2]   ;;  %s69_s5 = int_to_ptr.hbm [resolvable:$true] %s68_s5 }
  0x15   :  { %s42_s8 = sshll.u32 %s9682_s18, 4  ;;  %s9683_s19 = smov [#allocation7]   ;;  %s43_s8 = int_to_ptr.vmem [resolvable:$true] %s42_s8 }
  0x16   :  { %48 = dma.hbm_to_vmem [thread:$0]  %s41_s10, 24576, %s43_s8, [#allocation3], %s9679_s24, %s9679_s24, %s9680_s25  }
  0x17   :  { %s70_s4 = sshll.u32 %s9683_s19, 4  ;;  %s94_s22 = sshll.u32 %s10132_s9, 4  ;;  %s71_s4 = int_to_ptr.vmem [resolvable:$true] %s70_s4  ;;  %s95_s22 = int_to_ptr.hbm [resolvable:$true] %s94_s22 }
  0x18   :  { %76 = dma.hbm_to_vmem [thread:$0]  %s69_s5, 4096, %s71_s4, [#allocation6], %s9675_s29, %s9675_s29, %s9676_s30  }
  0x19   :  { %s120_s26 = sshll.u32 %s10134_s11, 4  ;;  %s9684_s27 = smov [#allocation10]   ;;  %s121_s26 = int_to_ptr.hbm [resolvable:$true] %s120_s26 }
  0x1a   :  { %s96_s28 = sshll.u32 %s9684_s27, 4  ;;  %s9685_s0 = smov [#allocation13]   ;;  %s97_s28 = int_to_ptr.vmem [resolvable:$true] %s96_s28 }
  0x1b   :  { %102 = dma.hbm_to_vmem [thread:$0]  %s95_s22, 8192, %s97_s28, [#allocation9], %s9675_s29, %s9675_s29, %s9676_s30  }
  0x1c   :  { %s122_s9 = sshll.u32 %s9685_s0, 4  ;;  %s146_s17 = sshll.u32 %s10136_s13, 4  ;;  %s123_s9 = int_to_ptr.vmem [resolvable:$true] %s122_s9  ;;  %s147_s17 = int_to_ptr.hbm [resolvable:$true] %s146_s17 }
  0x1d   :  { %128 = dma.hbm_to_vmem [thread:$0]  %s121_s26, 8192, %s123_s9, [#allocation12], %s9679_s24, %s9679_s24, %s9680_s25  }
  0x1e   :  { %s159_s18 = sshll.u32 %s10137_s14, 4  ;;  %s9686_s8 = smov [#allocation16]   ;;  %s160_s18 = int_to_ptr.hbm [resolvable:$true] %s159_s18 }
  0x1f   :  { %s148_s19 = sshll.u32 %s9686_s8, 4  ;;  %s9687_s4 = smov [#allocation17]   ;;  %s149_s19 = int_to_ptr.vmem [resolvable:$true] %s148_s19 }
  0x20   :  { %154 = dma.hbm_to_vmem [thread:$0]  %s147_s17, 8192, %s149_s19, [#allocation15], %s9675_s29, %s9675_s29, %s9676_s30  }
  0x21   :  { %s161_s13 = sshll.u32 %s9687_s4, 4  ;;  %s9688_s20 = smov 64   ;;  %s162_s13 = int_to_ptr.vmem [resolvable:$true] %s161_s13 }
  0x22   :  { %s9689_s21 = smov 4  }
  0x23   :  { %167 = dma.hbm_to_vmem [thread:$0]  %s160_s18, 2048, %s162_s13, [#allocation18], %s9688_s20, %s9688_s20, %s9689_s21  }
  0x24   :  { %9660 = dma.done.wait [#allocation3], 24576  }
  0x25   :  { %9661 = vsyncadd [#allocation3], 4294942720 }
  0x26   :  { %9662 = dma.done.wait [#allocation6], 12288  }
  0x27   :  { %9663 = vsyncadd [#allocation6], 4294955008 }
  0x28   :  { %9664 = dma.done.wait [#allocation9], 10240  }
  0x29   :  { %9665 = vsyncadd [#allocation9], 4294957056 }
  0x2a   :  { %9666 = dma.done.wait [#allocation12], 24576  }
  0x2b   :  { %9667 = vsyncadd [#allocation12], 4294942720 }
  0x2c   :  { %9668 = dma.done.wait [#allocation15], 16384  }
  0x2d   :  { %9669 = vsyncadd [#allocation15], 4294950912 }
  0x2e   :  { %9670 = dma.done.wait [#allocation18], 2048  }
  0x2f   :  { %9671 = vsyncadd [#allocation18], 4294965248  ;;  %v5950_v0 = vld [vmem:[#allocation2 + $0xe0] sm:$0xf]  ;;  %v8699_v1 = vld [vmem:[#allocation2 + $0xec] sm:$0xf0] }
  0x30   :  { %v6206_v2 = vld [vmem:[#allocation2 + $0x2e0] sm:$0xf]  ;;  %v5951_v3 = vor.u32 %v8699_v1, %v5950_v0  ;;  %v8763_v4 = vld [vmem:[#allocation2 + $0x2ec] sm:$0xf0]  ;;  %s10142_s30 = sld [smem:[#allocation27_spill]]  ;;  %vm2262_vm0 = vcmask 523264  }
  0x31   :  { %v6078_v5 = vld [vmem:[#allocation2 + $0x1e0] sm:$0xf]  ;;  %v8731_v6 = vld [vmem:[#allocation2 + $0x1ec] sm:$0xf0]  ;;  %v6207_v7 = vor.u32 %v8763_v4, %v6206_v2  ;;  %s9690_s9 = smov [#allocation19]   ;;  %s5821_s17 = sshll.u32 %s10139_s16, 4  ;;  %s5822_s17 = int_to_ptr.hbm [resolvable:$true] %s5821_s17 }
  0x32   :  { %v6079_v8 = vor.u32 %v8731_v6, %v6078_v5  ;;  %v6334_v9 = vld [vmem:[#allocation2 + $0x3e0] sm:$0xf]  ;;  %v8795_v10 = vld [vmem:[#allocation2 + $0x3ec] sm:$0xf0]  ;;  %1397 = vmatpush.bf16.msra.mxu0 %v5951_v3 }
  0x33   :  { %v5934_v11 = vld [vmem:[#allocation2 + $0xc0] sm:$0xf]  ;;  %v6335_v12 = vor.u32 %v8795_v10, %v6334_v9  ;;  %v8695_v13 = vld [vmem:[#allocation2 + $0xcc] sm:$0xf0]  ;;  %1423 = vmatpush.bf16.msra.mxu2 %v6207_v7 }
  0x34   :  { %v6190_v14 = vld [vmem:[#allocation2 + $0x2c0] sm:$0xf]  ;;  %v8759_v15 = vld [vmem:[#allocation2 + $0x2cc] sm:$0xf0]  ;;  %1410 = vmatpush.bf16.msra.mxu1 %v6079_v8  ;;  %v5935_v16 = vor.u32 %v8695_v13, %v5934_v11 }
  0x35   :  { %v6191_v17 = vor.u32 %v8759_v15, %v6190_v14  ;;  %v6062_v18 = vld [vmem:[#allocation2 + $0x1c0] sm:$0xf]  ;;  %v8727_v19 = vld [vmem:[#allocation2 + $0x1cc] sm:$0xf0]  ;;  %1436 = vmatpush.bf16.msra.mxu3 %v6335_v12 }
  0x36   :  { %v6318_v20 = vld [vmem:[#allocation2 + $0x3c0] sm:$0xf]  ;;  %v6063_v21 = vor.u32 %v8727_v19, %v6062_v18  ;;  %v8791_v22 = vld [vmem:[#allocation2 + $0x3cc] sm:$0xf0]  ;;  %1398 = vmatpush.bf16.msra.mxu0 %v5935_v16 }
  0x37   :  { %v5918_v23 = vld [vmem:[#allocation2 + $0xa0] sm:$0xf]  ;;  %v8691_v24 = vld [vmem:[#allocation2 + $0xac] sm:$0xf0]  ;;  %v6319_v25 = vor.u32 %v8791_v22, %v6318_v20  ;;  %1424 = vmatpush.bf16.msra.mxu2 %v6191_v17 }
  0x38   :  { %v6174_v26 = vld [vmem:[#allocation2 + $0x2a0] sm:$0xf]  ;;  %v8755_v27 = vld [vmem:[#allocation2 + $0x2ac] sm:$0xf0]  ;;  %v5919_v29 = vor.u32 %v8691_v24, %v5918_v23  ;;  %1411 = vmatpush.bf16.msra.mxu1 %v6063_v21 }
  0x39   :  { %v6046_v28 = vld [vmem:[#allocation2 + $0x1a0] sm:$0xf]  ;;  %v8723_v30 = vld [vmem:[#allocation2 + $0x1ac] sm:$0xf0]  ;;  %v6175_v33 = vor.u32 %v8755_v27, %v6174_v26  ;;  %1437 = vmatpush.bf16.msra.mxu3 %v6319_v25  ;;  %v8697_v26 = vld [vmem:[#allocation2 + $0xe4] sm:$0xf] }
  0x3a   :  { %v6302_v31 = vld [vmem:[#allocation2 + $0x3a0] sm:$0xf]  ;;  %v8787_v32 = vld [vmem:[#allocation2 + $0x3ac] sm:$0xf0]  ;;  %v6047_v34 = vor.u32 %v8723_v30, %v6046_v28  ;;  %1399 = vmatpush.bf16.msra.mxu0 %v5919_v29  ;;  %v5952_v27 = vld [vmem:[#allocation2 + $0xf0] sm:$0xf0] }
  0x3b   :  { %v5902_v35 = vld [vmem:[#allocation2 + $0x80] sm:$0xf]  ;;  %v8687_v36 = vld [vmem:[#allocation2 + $0x8c] sm:$0xf0]  ;;  %v6303_v38 = vor.u32 %v8787_v32, %v6302_v31  ;;  %1425 = vmatpush.bf16.msra.mxu2 %v6175_v33 }
  0x3c   :  { %v6158_v37 = vld [vmem:[#allocation2 + $0x280] sm:$0xf]  ;;  %v8751_v39 = vld [vmem:[#allocation2 + $0x28c] sm:$0xf0]  ;;  %v5903_v44 = vor.u32 %v8687_v36, %v5902_v35  ;;  %1412 = vmatpush.bf16.msra.mxu1 %v6047_v34 }
  0x3d   :  { %v6030_v40 = vld [vmem:[#allocation2 + $0x180] sm:$0xf]  ;;  %v8719_v41 = vld [vmem:[#allocation2 + $0x18c] sm:$0xf0]  ;;  %v6159_v45 = vor.u32 %v8751_v39, %v6158_v37  ;;  %1438 = vmatpush.bf16.msra.mxu3 %v6303_v38  ;;  %v8729_v37 = vld [vmem:[#allocation2 + $0x1e4] sm:$0xf]  ;;  %v5955_v39 = vor.u32 %v8697_v26, %v5952_v27 }
  0x3e   :  { %v6286_v42 = vld [vmem:[#allocation2 + $0x380] sm:$0xf]  ;;  %v8783_v43 = vld [vmem:[#allocation2 + $0x38c] sm:$0xf0]  ;;  %v6031_v46 = vor.u32 %v8719_v41, %v6030_v40  ;;  %1400 = vmatpush.bf16.msra.mxu0 %v5903_v44  ;;  %v6080_v38 = vld [vmem:[#allocation2 + $0x1f0] sm:$0xf0] }
  0x3f   :  { %v5886_v47 = vld [vmem:[#allocation2 + $0x60] sm:$0xf]  ;;  %v8683_v48 = vld [vmem:[#allocation2 + $0x6c] sm:$0xf0]  ;;  %v6287_v50 = vor.u32 %v8783_v43, %v6286_v42  ;;  %1426 = vmatpush.bf16.msra.mxu2 %v6159_v45  ;;  %v8693_v45 = vld [vmem:[#allocation2 + $0xc4] sm:$0xf] }
  0x40   :  { %v6142_v49 = vld [vmem:[#allocation2 + $0x260] sm:$0xf]  ;;  %v8747_v51 = vld [vmem:[#allocation2 + $0x26c] sm:$0xf0]  ;;  %v5887_v56 = vor.u32 %v8683_v48, %v5886_v47  ;;  %1413 = vmatpush.bf16.msra.mxu1 %v6031_v46  ;;  %v5936_v46 = vld [vmem:[#allocation2 + $0xd0] sm:$0xf0]  ;;  %v6083_v47 = vor.u32 %v8729_v37, %v6080_v38 }
  0x41   :  { %v6014_v52 = vld [vmem:[#allocation2 + $0x160] sm:$0xf]  ;;  %v8715_v53 = vld [vmem:[#allocation2 + $0x16c] sm:$0xf0]  ;;  %v6143_v57 = vor.u32 %v8747_v51, %v6142_v49  ;;  %1439 = vmatpush.bf16.msra.mxu3 %v6287_v50  ;;  %v8725_v51 = vld [vmem:[#allocation2 + $0x1c4] sm:$0xf] }
  0x42   :  { %v6270_v54 = vld [vmem:[#allocation2 + $0x360] sm:$0xf]  ;;  %v8779_v55 = vld [vmem:[#allocation2 + $0x36c] sm:$0xf0]  ;;  %v6015_v58 = vor.u32 %v8715_v53, %v6014_v52  ;;  %1401 = vmatpush.bf16.msra.mxu0 %v5887_v56  ;;  %v6064_v52 = vld [vmem:[#allocation2 + $0x1d0] sm:$0xf0]  ;;  %v5939_v53 = vor.u32 %v8693_v45, %v5936_v46 }
  0x43   :  { %v5870_v59 = vld [vmem:[#allocation2 + $0x40] sm:$0xf]  ;;  %v8679_v60 = vld [vmem:[#allocation2 + $0x4c] sm:$0xf0]  ;;  %v6271_v62 = vor.u32 %v8779_v55, %v6270_v54  ;;  %1427 = vmatpush.bf16.msra.mxu2 %v6143_v57  ;;  %v8689_v57 = vld [vmem:[#allocation2 + $0xa4] sm:$0xf] }
  0x44   :  { %v6126_v61 = vld [vmem:[#allocation2 + $0x240] sm:$0xf]  ;;  %v8743_v63 = vld [vmem:[#allocation2 + $0x24c] sm:$0xf0]  ;;  %v5871_v4 = vor.u32 %v8679_v60, %v5870_v59  ;;  %1414 = vmatpush.bf16.msra.mxu1 %v6015_v58  ;;  %v5920_v58 = vld [vmem:[#allocation2 + $0xb0] sm:$0xf0]  ;;  %v6067_v59 = vor.u32 %v8725_v51, %v6064_v52 }
  0x45   :  { %v5998_v0 = vld [vmem:[#allocation2 + $0x140] sm:$0xf]  ;;  %v8711_v1 = vld [vmem:[#allocation2 + $0x14c] sm:$0xf0]  ;;  %v6127_v5 = vor.u32 %v8743_v63, %v6126_v61  ;;  %1440 = vmatpush.bf16.msra.mxu3 %v6271_v62  ;;  %v8721_v63 = vld [vmem:[#allocation2 + $0x1a4] sm:$0xf] }
  0x46   :  { %v6254_v2 = vld [vmem:[#allocation2 + $0x340] sm:$0xf]  ;;  %v8775_v3 = vld [vmem:[#allocation2 + $0x34c] sm:$0xf0]  ;;  %v5999_v6 = vor.u32 %v8711_v1, %v5998_v0  ;;  %1402 = vmatpush.bf16.msra.mxu0 %v5871_v4  ;;  %v6048_v0 = vld [vmem:[#allocation2 + $0x1b0] sm:$0xf0] }
  0x47   :  { %v5854_v7 = vld [vmem:[#allocation2 + $0x20] sm:$0xf]  ;;  %v8675_v8 = vld [vmem:[#allocation2 + $0x2c] sm:$0xf0]  ;;  %v6255_v10 = vor.u32 %v8775_v3, %v6254_v2  ;;  %1428 = vmatpush.bf16.msra.mxu2 %v6127_v5  ;;  %v5923_v2 = vor.u32 %v8689_v57, %v5920_v58  ;;  %v5888_v26 = vld [vmem:[#allocation2 + $0x70] sm:$0xf0] }
  0x48   :  { %v6110_v9 = vld [vmem:[#allocation2 + $0x220] sm:$0xf]  ;;  %v8739_v11 = vld [vmem:[#allocation2 + $0x22c] sm:$0xf0]  ;;  %v5855_v16 = vor.u32 %v8675_v8, %v5854_v7  ;;  %1415 = vmatpush.bf16.msra.mxu1 %v5999_v6  ;;  %v8685_v8 = vld [vmem:[#allocation2 + $0x84] sm:$0xf] }
  0x49   :  { %v5982_v12 = vld [vmem:[#allocation2 + $0x120] sm:$0xf]  ;;  %v8707_v13 = vld [vmem:[#allocation2 + $0x12c] sm:$0xf0]  ;;  %v6111_v19 = vor.u32 %v8739_v11, %v6110_v9  ;;  %1441 = vmatpush.bf16.msra.mxu3 %v6255_v10  ;;  %v5904_v9 = vld [vmem:[#allocation2 + $0x90] sm:$0xf0]  ;;  %v6051_v10 = vor.u32 %v8721_v63, %v6048_v0 }
  0x4a   :  { %v6238_v14 = vld [vmem:[#allocation2 + $0x320] sm:$0xf]  ;;  %v8771_v15 = vld [vmem:[#allocation2 + $0x32c] sm:$0xf0]  ;;  %v5983_v20 = vor.u32 %v8707_v13, %v5982_v12  ;;  %1403 = vmatpush.bf16.msra.mxu0 %v5855_v16  ;;  %v8717_v16 = vld [vmem:[#allocation2 + $0x184] sm:$0xf] }
  0x4b   :  { %v5838_v17 = vld [vmem:[#allocation2] sm:$0xf]  ;;  %v8671_v18 = vld [vmem:[#allocation2 + $0xc] sm:$0xf0]  ;;  %v6239_v24 = vor.u32 %v8771_v15, %v6238_v14  ;;  %1429 = vmatpush.bf16.msra.mxu2 %v6111_v19  ;;  %v5907_v19 = vor.u32 %v8685_v8, %v5904_v9  ;;  %v8709_v45 = vld [vmem:[#allocation2 + $0x144] sm:$0xf] }
  0x4c   :  { %v6094_v21 = vld [vmem:[#allocation2 + $0x200] sm:$0xf]  ;;  %v8735_v22 = vld [vmem:[#allocation2 + $0x20c] sm:$0xf0]  ;;  %v5839_v31 = vor.u32 %v8671_v18, %v5838_v17  ;;  %1416 = vmatpush.bf16.msra.mxu1 %v5983_v20  ;;  %v6032_v17 = vld [vmem:[#allocation2 + $0x190] sm:$0xf0] }
  0x4d   :  { %v6462_v23 = vld [vmem:[#allocation2 + $0x4e0] sm:$0xf]  ;;  %v8827_v25 = vld [vmem:[#allocation2 + $0x4ec] sm:$0xf0]  ;;  %v6095_v35 = vor.u32 %v8735_v22, %v6094_v21  ;;  %1442 = vmatpush.bf16.msra.mxu3 %v6239_v24  ;;  %v212_v18 = vld [vmem:[%s10142_s30 + $0x8] sm:$0xff]  ;;  %v6035_v27 = vor.u32 %v8717_v16, %v6032_v17 }
  0x4e   :  { %v5966_v28 = vld [vmem:[#allocation2 + $0x100] sm:$0xf]  ;;  %v8703_v29 = vld [vmem:[#allocation2 + $0x10c] sm:$0xf0]  ;;  %v6463_v36 = vor.u32 %v8827_v25, %v6462_v23  ;;  %1404 = vmatpush.bf16.msra.mxu0 %v5839_v31  ;;  %v421_v22 = vunpack.c.l.b16 %v212_v18  ;;  %v422_v23 = vunpack.c.h.b16 %v212_v18  ;;  %v8681_v25 = vld [vmem:[#allocation2 + $0x64] sm:$0xf] }
  0x4f   :  { %v6222_v30 = vld [vmem:[#allocation2 + $0x300] sm:$0xf]  ;;  %v8767_v32 = vld [vmem:[#allocation2 + $0x30c] sm:$0xf0]  ;;  %v5967_v40 = vor.u32 %v8703_v29, %v5966_v28  ;;  %1430 = vmatpush.bf16.msra.mxu2 %v6095_v35  ;;  %v5891_v35 = vor.u32 %v8681_v25, %v5888_v26  ;;  %v6000_v46 = vld [vmem:[#allocation2 + $0x150] sm:$0xf0] }
  0x50   :  { %v6590_v33 = vld [vmem:[#allocation2 + $0x5e0] sm:$0xf]  ;;  %v8859_v34 = vld [vmem:[#allocation2 + $0x5ec] sm:$0xf0]  ;;  %v6223_v43 = vor.u32 %v8767_v32, %v6222_v30  ;;  %v9845_v30 = vpack.c.b16 %v421_v22, %v421_v22  ;;  %v9847_v31 = vpack.c.b16 %v422_v23, %v422_v23  ;;  %v8673_v51 = vld [vmem:[#allocation2 + $0x24] sm:$0xf] }
  0x51   :  { %v6446_v41 = vld [vmem:[#allocation2 + $0x4c0] sm:$0xf]  ;;  %v8823_v42 = vld [vmem:[#allocation2 + $0x4cc] sm:$0xf0]  ;;  %v6591_v44 = vor.u32 %v8859_v34, %v6590_v33  ;;  %1417 = vmatpush.bf16.msra.mxu1 %v5967_v40  ;;  %v8713_v33 = vld [vmem:[#allocation2 + $0x164] sm:$0xf] }
  0x52   :  { %v6574_v48 = vld [vmem:[#allocation2 + $0x5c0] sm:$0xf]  ;;  %v8855_v49 = vld [vmem:[#allocation2 + $0x5cc] sm:$0xf0]  ;;  %1449 = vmatpush.bf16.msrb.mxu0 %v6463_v36  ;;  %v6447_v50 = vor.u32 %v8823_v42, %v6446_v41  ;;  %1443 = vmatpush.bf16.msra.mxu3 %v6223_v43  ;;  %v6016_v34 = vld [vmem:[#allocation2 + $0x170] sm:$0xf0] }
  0x53   :  { %1475 = vmatpush.bf16.msrb.mxu2 %v5955_v39  ;;  %v6430_v54 = vld [vmem:[#allocation2 + $0x4a0] sm:$0xf]  ;;  %v8819_v55 = vld [vmem:[#allocation2 + $0x4ac] sm:$0xf0]  ;;  %v6575_v56 = vor.u32 %v8855_v49, %v6574_v48  ;;  %v8677_v39 = vld [vmem:[#allocation2 + $0x44] sm:$0xf]  ;;  %v6019_v41 = vor.u32 %v8713_v33, %v6016_v34 }
  0x54   :  { %v6558_v60 = vld [vmem:[#allocation2 + $0x5a0] sm:$0xf]  ;;  %v8851_v61 = vld [vmem:[#allocation2 + $0x5ac] sm:$0xf0]  ;;  %v6431_v62 = vor.u32 %v8819_v55, %v6430_v54  ;;  %v5872_v40 = vld [vmem:[#allocation2 + $0x50] sm:$0xf0]  ;;  %1431 = vmatmul.bf16.vlgmr.msra.gmra.mxu2 %v9845_v30  ;;  %v6003_v54 = vor.u32 %v8709_v45, %v6000_v46 }
  0x55   :  { %1462 = vmatpush.bf16.msrb.mxu1 %v6591_v44  ;;  %v211_v1 = vld [vmem:[%s10142_s30] sm:$0xff]  ;;  %v8815_v4 = vld [vmem:[#allocation2 + $0x48c] sm:$0xf0]  ;;  %v6559_v7 = vor.u32 %v8851_v61, %v6558_v60  ;;  %1444 = vmatmul.bf16.vlgmr.msra.gmra.mxu3 %v9847_v31  ;;  %v5856_v52 = vld [vmem:[#allocation2 + $0x30] sm:$0xf0] }
  0x56   :  { %1488 = vmatpush.bf16.msrb.mxu3 %v6083_v47  ;;  %1450 = vmatpush.bf16.msrb.mxu0 %v6447_v50  ;;  %v6414_v3 = vld [vmem:[#allocation2 + $0x480] sm:$0xf]  ;;  %v419_v5 = vunpack.c.l.b16 %v211_v1  ;;  %v420_v6 = vunpack.c.h.b16 %v211_v1  ;;  %v8847_v12 = vld [vmem:[#allocation2 + $0x58c] sm:$0xf0]  ;;  %v5875_v47 = vor.u32 %v8677_v39, %v5872_v40  ;;  %v5984_v57 = vld [vmem:[#allocation2 + $0x130] sm:$0xf0] }
  0x57   :  { %1476 = vmatpush.bf16.msrb.mxu2 %v5939_v53  ;;  %v6542_v11 = vld [vmem:[#allocation2 + $0x580] sm:$0xf]  ;;  %v6415_v15 = vor.u32 %v8815_v4, %v6414_v3  ;;  %v8811_v21 = vld [vmem:[#allocation2 + $0x46c] sm:$0xf0]  ;;  %v8669_v61 = vld [vmem:[#allocation2 + $0x4] sm:$0xf] }
  0x58   :  { %v9836_v13 = vpack.c.b16 %v419_v5, %v419_v5  ;;  %v9838_v14 = vpack.c.b16 %v420_v6, %v420_v6  ;;  %v6398_v20 = vld [vmem:[#allocation2 + $0x460] sm:$0xf]  ;;  %v6543_v24 = vor.u32 %v8847_v12, %v6542_v11  ;;  %v8843_v29 = vld [vmem:[#allocation2 + $0x56c] sm:$0xf0]  ;;  %v5840_v63 = vld [vmem:[#allocation2 + $0x10] sm:$0xf0] }
  0x59   :  { %1463 = vmatpush.bf16.msrb.mxu1 %v6575_v56  ;;  %v6526_v28 = vld [vmem:[#allocation2 + $0x560] sm:$0xf]  ;;  %v6399_v32 = vor.u32 %v8811_v21, %v6398_v20  ;;  %v8807_v37 = vld [vmem:[#allocation2 + $0x44c] sm:$0xf0]  ;;  %v8705_v56 = vld [vmem:[#allocation2 + $0x124] sm:$0xf]  ;;  %v5843_v17 = vor.u32 %v8669_v61, %v5840_v63 }
  0x5a   :  { %1489 = vmatpush.bf16.msrb.mxu3 %v6067_v59  ;;  %1451 = vmatpush.bf16.msrb.mxu0 %v6431_v62  ;;  %v6382_v36 = vld [vmem:[#allocation2 + $0x440] sm:$0xf]  ;;  %v6527_v38 = vor.u32 %v8843_v29, %v6526_v28  ;;  %v8839_v43 = vld [vmem:[#allocation2 + $0x54c] sm:$0xf0]  ;;  %v5859_v62 = vor.u32 %v8673_v51, %v5856_v52  ;;  %v8761_v0 = vld [vmem:[#allocation2 + $0x2e4] sm:$0xf]  ;;  %v5987_v6 = vor.u32 %v8705_v56, %v5984_v57 }
  0x5b   :  { %1477 = vmatpush.bf16.msrb.mxu2 %v5923_v2  ;;  %1405 = vmatmul.bf16.vlgmr.msra.gmra.mxu0 %v9836_v13  ;;  %v6510_v42 = vld [vmem:[#allocation2 + $0x540] sm:$0xf]  ;;  %v6383_v44 = vor.u32 %v8807_v37, %v6382_v36  ;;  %v8803_v49 = vld [vmem:[#allocation2 + $0x42c] sm:$0xf0]  ;;  %v6208_v3 = vld [vmem:[#allocation2 + $0x2f0] sm:$0xf0] }
  0x5c   :  { %1418 = vmatmul.bf16.vlgmr.msra.gmra.mxu1 %v9838_v14  ;;  %v6366_v48 = vld [vmem:[#allocation2 + $0x420] sm:$0xf]  ;;  %v6511_v50 = vor.u32 %v8839_v43, %v6510_v42  ;;  %v8835_v55 = vld [vmem:[#allocation2 + $0x52c] sm:$0xf0]  ;;  %v8825_v4 = vld [vmem:[#allocation2 + $0x4e4] sm:$0xf]  ;;  %v6211_v18 = vor.u32 %v8761_v0, %v6208_v3 }
  0x5d   :  { %1464 = vmatpush.bf16.msrb.mxu1 %v6559_v7  ;;  %v6494_v53 = vld [vmem:[#allocation2 + $0x520] sm:$0xf]  ;;  %v6367_v58 = vor.u32 %v8803_v49, %v6366_v48  ;;  %v8799_v60 = vld [vmem:[#allocation2 + $0x40c] sm:$0xf0]  ;;  %v6464_v5 = vld [vmem:[#allocation2 + $0x4f0] sm:$0xf0] }
  0x5e   :  { %1490 = vmatpush.bf16.msrb.mxu3 %v6051_v10  ;;  %1452 = vmatpush.bf16.msrb.mxu0 %v6415_v15  ;;  %v6350_v59 = vld [vmem:[#allocation2 + $0x400] sm:$0xf]  ;;  %v213_v1 = vld [vmem:[%s10142_s30 + $0x10] sm:$0xff]  ;;  %v6495_v2 = vor.u32 %v8835_v55, %v6494_v53  ;;  %v8701_v9 = vld [vmem:[#allocation2 + $0x104] sm:$0xf]  ;;  %v6467_v22 = vor.u32 %v8825_v4, %v6464_v5 }
  0x5f   :  { %1478 = vmatpush.bf16.msrb.mxu2 %v5907_v19  ;;  %v6478_v7 = vld [vmem:[#allocation2 + $0x500] sm:$0xf]  ;;  %v8831_v8 = vld [vmem:[#allocation2 + $0x50c] sm:$0xf0]  ;;  %v6351_v10 = vor.u32 %v8799_v60, %v6350_v59  ;;  %v5968_v11 = vld [vmem:[#allocation2 + $0x110] sm:$0xf0]  ;;  %v423_v16 = vunpack.c.l.b16 %v213_v1  ;;  %v424_v21 = vunpack.c.h.b16 %v213_v1 }
  0x60   :  { %v8793_v12 = vld [vmem:[#allocation2 + $0x3e4] sm:$0xf]  ;;  %v6336_v15 = vld [vmem:[#allocation2 + $0x3f0] sm:$0xf0]  ;;  %v6479_v23 = vor.u32 %v8831_v8, %v6478_v7  ;;  %v5971_v26 = vor.u32 %v8701_v9, %v5968_v11 }
  0x61   :  { %1465 = vmatpush.bf16.msrb.mxu1 %v6543_v24  ;;  %v8857_v19 = vld [vmem:[#allocation2 + $0x5e4] sm:$0xf]  ;;  %v6592_v20 = vld [vmem:[#allocation2 + $0x5f0] sm:$0xf0]  ;;  %v9856_v39 = vpack.c.b16 %v424_v21, %v424_v21 }
  0x62   :  { %1491 = vmatpush.bf16.msrb.mxu3 %v6035_v27  ;;  %1453 = vmatpush.bf16.msrb.mxu0 %v6399_v32  ;;  %v8757_v24 = vld [vmem:[#allocation2 + $0x2c4] sm:$0xf]  ;;  %v6192_v25 = vld [vmem:[#allocation2 + $0x2d0] sm:$0xf0]  ;;  %v6339_v27 = vor.u32 %v8793_v12, %v6336_v15  ;;  %v6595_v32 = vor.u32 %v8857_v19, %v6592_v20 }
  0x63   :  { %1479 = vmatpush.bf16.msrb.mxu2 %v5891_v35  ;;  %v8821_v28 = vld [vmem:[#allocation2 + $0x4c4] sm:$0xf]  ;;  %v6448_v29 = vld [vmem:[#allocation2 + $0x4d0] sm:$0xf0]  ;;  %v9854_v35 = vpack.c.b16 %v423_v16, %v423_v16  ;;  %v6195_v36 = vor.u32 %v8757_v24, %v6192_v25 }
  0x64   :  { %v8789_v33 = vld [vmem:[#allocation2 + $0x3c4] sm:$0xf]  ;;  %v6320_v34 = vld [vmem:[#allocation2 + $0x3d0] sm:$0xf0]  ;;  %v6451_v40 = vor.u32 %v8821_v28, %v6448_v29 }
  0x65   :  { %1466 = vmatpush.bf16.msrb.mxu1 %v6527_v38  ;;  %v8853_v37 = vld [vmem:[#allocation2 + $0x5c4] sm:$0xf]  ;;  %v6576_v38 = vld [vmem:[#allocation2 + $0x5d0] sm:$0xf0]  ;;  %v6323_v43 = vor.u32 %v8789_v33, %v6320_v34 }
  0x66   :  { %1492 = vmatpush.bf16.msrb.mxu3 %v6019_v41  ;;  %1454 = vmatpush.bf16.msrb.mxu0 %v6383_v44  ;;  %v8753_v41 = vld [vmem:[#allocation2 + $0x2a4] sm:$0xf]  ;;  %v6176_v42 = vld [vmem:[#allocation2 + $0x2b0] sm:$0xf0]  ;;  %v6579_v46 = vor.u32 %v8853_v37, %v6576_v38 }
  0x67   :  { %1480 = vmatpush.bf16.msrb.mxu2 %v5875_v47  ;;  %v8817_v44 = vld [vmem:[#allocation2 + $0x4a4] sm:$0xf]  ;;  %v6432_v45 = vld [vmem:[#allocation2 + $0x4b0] sm:$0xf0]  ;;  %v6179_v49 = vor.u32 %v8753_v41, %v6176_v42 }
  0x68   :  { %v8785_v47 = vld [vmem:[#allocation2 + $0x3a4] sm:$0xf]  ;;  %v6304_v48 = vld [vmem:[#allocation2 + $0x3b0] sm:$0xf0]  ;;  %v6435_v52 = vor.u32 %v8817_v44, %v6432_v45 }
  0x69   :  { %1467 = vmatpush.bf16.msrb.mxu1 %v6511_v50  ;;  %v8849_v50 = vld [vmem:[#allocation2 + $0x5a4] sm:$0xf]  ;;  %v6560_v51 = vld [vmem:[#allocation2 + $0x5b0] sm:$0xf0]  ;;  %v6307_v55 = vor.u32 %v8785_v47, %v6304_v48  ;;  %v5958_v47 = vld [vmem:[#allocation2 + $0xe8] sm:$0xf] }
  0x6a   :  { %1493 = vmatpush.bf16.msrb.mxu3 %v6003_v54  ;;  %1455 = vmatpush.bf16.msrb.mxu0 %v6367_v58  ;;  %v8749_v53 = vld [vmem:[#allocation2 + $0x284] sm:$0xf]  ;;  %v6160_v54 = vld [vmem:[#allocation2 + $0x290] sm:$0xf0]  ;;  %v6563_v58 = vor.u32 %v8849_v50, %v6560_v51  ;;  %v8700_v48 = vld [vmem:[#allocation2 + $0xf4] sm:$0xf0] }
  0x6b   :  { %1481 = vmatpush.bf16.msrb.mxu2 %v5859_v62  ;;  %v8813_v56 = vld [vmem:[#allocation2 + $0x484] sm:$0xf]  ;;  %v6416_v57 = vld [vmem:[#allocation2 + $0x490] sm:$0xf0]  ;;  %v6163_v61 = vor.u32 %v8749_v53, %v6160_v54  ;;  %v6214_v50 = vld [vmem:[#allocation2 + $0x2e8] sm:$0xf] }
  0x6c   :  { %v8781_v59 = vld [vmem:[#allocation2 + $0x384] sm:$0xf]  ;;  %v6288_v60 = vld [vmem:[#allocation2 + $0x390] sm:$0xf0]  ;;  %v6419_v0 = vor.u32 %v8813_v56, %v6416_v57  ;;  %v8764_v51 = vld [vmem:[#allocation2 + $0x2f4] sm:$0xf0] }
  0x6d   :  { %1468 = vmatpush.bf16.msrb.mxu1 %v6495_v2  ;;  %v8845_v62 = vld [vmem:[#allocation2 + $0x584] sm:$0xf]  ;;  %v6544_v63 = vld [vmem:[#allocation2 + $0x590] sm:$0xf0]  ;;  %v6291_v3 = vor.u32 %v8781_v59, %v6288_v60  ;;  %v8732_v59 = vld [vmem:[#allocation2 + $0x1f4] sm:$0xf0] }
  0x6e   :  { %1494 = vmatpush.bf16.msrb.mxu3 %v5987_v6  ;;  %1456 = vmatpush.bf16.msrb.mxu0 %v6351_v10  ;;  %v8745_v1 = vld [vmem:[#allocation2 + $0x264] sm:$0xf]  ;;  %v6144_v2 = vld [vmem:[#allocation2 + $0x270] sm:$0xf0]  ;;  %v6547_v6 = vor.u32 %v8845_v62, %v6544_v63  ;;  %v6342_v62 = vld [vmem:[#allocation2 + $0x3e8] sm:$0xf] }
  0x6f   :  { %1482 = vmatpush.bf16.msrb.mxu2 %v5843_v17  ;;  %v8809_v4 = vld [vmem:[#allocation2 + $0x464] sm:$0xf]  ;;  %v6400_v5 = vld [vmem:[#allocation2 + $0x470] sm:$0xf0]  ;;  %v6147_v9 = vor.u32 %v8745_v1, %v6144_v2  ;;  %v8796_v63 = vld [vmem:[#allocation2 + $0x3f4] sm:$0xf0] }
  0x70   :  { %v8777_v7 = vld [vmem:[#allocation2 + $0x364] sm:$0xf]  ;;  %v6272_v8 = vld [vmem:[#allocation2 + $0x370] sm:$0xf0]  ;;  %v6403_v12 = vor.u32 %v8809_v4, %v6400_v5  ;;  %v5942_v2 = vld [vmem:[#allocation2 + $0xc8] sm:$0xf] }
  0x71   :  { %1469 = vmatpush.bf16.msrb.mxu1 %v6479_v23  ;;  %1457 = vmatmul.bf16.vlgmr.msrb.gmra.mxu0 %v9854_v35  ;;  %v8841_v10 = vld [vmem:[#allocation2 + $0x564] sm:$0xf]  ;;  %v6528_v11 = vld [vmem:[#allocation2 + $0x570] sm:$0xf0]  ;;  %v6275_v17 = vor.u32 %v8777_v7, %v6272_v8  ;;  %v8760_v7 = vld [vmem:[#allocation2 + $0x2d4] sm:$0xf0]  ;;  %v6343_v8 = vor.u32 %v8796_v63, %v6342_v62 }
  0x72   :  { %1501 = vmatpush.bf16.msra.mxu0 %v6211_v18  ;;  %1495 = vmatpush.bf16.msrb.mxu3 %v5971_v26  ;;  %v8741_v15 = vld [vmem:[#allocation2 + $0x244] sm:$0xf]  ;;  %v6128_v16 = vld [vmem:[#allocation2 + $0x250] sm:$0xf0]  ;;  %v6531_v20 = vor.u32 %v8841_v10, %v6528_v11  ;;  %v8728_v10 = vld [vmem:[#allocation2 + $0x1d4] sm:$0xf0] }
  0x73   :  { %1527 = vmatpush.bf16.msra.mxu2 %v6467_v22  ;;  %v8805_v18 = vld [vmem:[#allocation2 + $0x444] sm:$0xf]  ;;  %v6384_v19 = vld [vmem:[#allocation2 + $0x450] sm:$0xf0]  ;;  %v6131_v23 = vor.u32 %v8741_v15, %v6128_v16  ;;  %v8792_v15 = vld [vmem:[#allocation2 + $0x3d4] sm:$0xf0] }
  0x74   :  { %1470 = vmatmul.bf16.vlgmr.msrb.gmra.mxu1 %v9856_v39  ;;  %1483 = vmatmul.bf16.vlgmr.msrb.gmra.mxu2 %v9836_v13  ;;  %v8773_v21 = vld [vmem:[#allocation2 + $0x344] sm:$0xf]  ;;  %v6256_v22 = vld [vmem:[#allocation2 + $0x350] sm:$0xf0]  ;;  %v6387_v26 = vor.u32 %v8805_v18, %v6384_v19  ;;  %v8692_v18 = vld [vmem:[#allocation2 + $0xb4] sm:$0xf0] }
  0x75   :  { %1514 = vmatpush.bf16.msra.mxu1 %v6339_v27  ;;  %1496 = vmatmul.bf16.vlgmr.msrb.gmra.mxu3 %v9838_v14  ;;  %v8837_v24 = vld [vmem:[#allocation2 + $0x544] sm:$0xf]  ;;  %v6512_v25 = vld [vmem:[#allocation2 + $0x550] sm:$0xf0]  ;;  %v6259_v29 = vor.u32 %v8773_v21, %v6256_v22  ;;  %v8756_v21 = vld [vmem:[#allocation2 + $0x2b4] sm:$0xf0] }
  0x76   :  { %1540 = vmatpush.bf16.msra.mxu3 %v6595_v32  ;;  %1502 = vmatpush.bf16.msra.mxu0 %v6195_v36  ;;  %v8737_v27 = vld [vmem:[#allocation2 + $0x224] sm:$0xf]  ;;  %v6112_v28 = vld [vmem:[#allocation2 + $0x230] sm:$0xf0]  ;;  %v6515_v36 = vor.u32 %v8837_v24, %v6512_v25  ;;  %v8724_v24 = vld [vmem:[#allocation2 + $0x1b4] sm:$0xf0] }
  0x77   :  { %1528 = vmatpush.bf16.msra.mxu2 %v6451_v40  ;;  %v8801_v32 = vld [vmem:[#allocation2 + $0x424] sm:$0xf]  ;;  %v6368_v33 = vld [vmem:[#allocation2 + $0x430] sm:$0xf0]  ;;  %v6115_v41 = vor.u32 %v8737_v27, %v6112_v28  ;;  %v8788_v27 = vld [vmem:[#allocation2 + $0x3b4] sm:$0xf0] }
  0x78   :  { %v8769_v34 = vld [vmem:[#allocation2 + $0x324] sm:$0xf]  ;;  %v6240_v37 = vld [vmem:[#allocation2 + $0x330] sm:$0xf0]  ;;  %v6371_v45 = vor.u32 %v8801_v32, %v6368_v33  ;;  %v8688_v32 = vld [vmem:[#allocation2 + $0x94] sm:$0xf0] }
  0x79   :  { %1515 = vmatpush.bf16.msra.mxu1 %v6323_v43  ;;  %v8833_v38 = vld [vmem:[#allocation2 + $0x524] sm:$0xf]  ;;  %v6496_v40 = vld [vmem:[#allocation2 + $0x530] sm:$0xf0]  ;;  %v6006_v63 = vld [vmem:[#allocation2 + $0x148] sm:$0xf] }
  0x7a   :  { %1541 = vmatpush.bf16.msra.mxu3 %v6579_v46  ;;  %1503 = vmatpush.bf16.msra.mxu0 %v6179_v49  ;;  %v8733_v42 = vld [vmem:[#allocation2 + $0x204] sm:$0xf]  ;;  %v6096_v43 = vld [vmem:[#allocation2 + $0x210] sm:$0xf0]  ;;  %v6243_v49 = vor.u32 %v8769_v34, %v6240_v37  ;;  %v6166_v34 = vld [vmem:[#allocation2 + $0x288] sm:$0xf] }
  0x7b   :  { %1529 = vmatpush.bf16.msra.mxu2 %v6435_v52  ;;  %v8797_v44 = vld [vmem:[#allocation2 + $0x404] sm:$0xf]  ;;  %v6352_v46 = vld [vmem:[#allocation2 + $0x410] sm:$0xf0]  ;;  %v6499_v52 = vor.u32 %v8833_v38, %v6496_v40  ;;  %v6099_v56 = vor.u32 %v8733_v42, %v6096_v43  ;;  %v6038_v38 = vld [vmem:[#allocation2 + $0x188] sm:$0xf] }
  0x7c   :  { %v8765_v53 = vld [vmem:[#allocation2 + $0x304] sm:$0xf]  ;;  %v6224_v54 = vld [vmem:[#allocation2 + $0x310] sm:$0xf0]  ;;  %v6355_v60 = vor.u32 %v8797_v44, %v6352_v46  ;;  %v8720_v40 = vld [vmem:[#allocation2 + $0x194] sm:$0xf0] }
  0x7d   :  { %1516 = vmatpush.bf16.msra.mxu1 %v6307_v55  ;;  %v8829_v55 = vld [vmem:[#allocation2 + $0x504] sm:$0xf]  ;;  %v6480_v57 = vld [vmem:[#allocation2 + $0x510] sm:$0xf0]  ;;  %v6227_v1 = vor.u32 %v8765_v53, %v6224_v54  ;;  %v6294_v42 = vld [vmem:[#allocation2 + $0x388] sm:$0xf] }
  0x7e   :  { %1542 = vmatpush.bf16.msra.mxu3 %v6563_v58  ;;  %1504 = vmatpush.bf16.msra.mxu0 %v6163_v61  ;;  %v6086_v58 = vld [vmem:[#allocation2 + $0x1e8] sm:$0xf]  ;;  %v5959_v61 = vor.u32 %v8700_v48, %v5958_v47  ;;  %v6483_v4 = vor.u32 %v8829_v55, %v6480_v57  ;;  %v8784_v43 = vld [vmem:[#allocation2 + $0x394] sm:$0xf0]  ;;  %v6039_v47 = vor.u32 %v8720_v40, %v6038_v38 }
  0x7f   :  { %1530 = vmatpush.bf16.msra.mxu2 %v6419_v0  ;;  %v6215_v0 = vor.u32 %v8764_v51, %v6214_v50  ;;  %v6087_v5 = vor.u32 %v8732_v59, %v6086_v58  ;;  %v8684_v46 = vld [vmem:[#allocation2 + $0x74] sm:$0xf0]  ;;  %v6150_v48 = vld [vmem:[#allocation2 + $0x268] sm:$0xf]  ;;  %v6295_v50 = vor.u32 %v8784_v43, %v6294_v42  ;;  %v8730_v42 = vld [vmem:[#allocation2 + $0x1ec] sm:$0xf] }
  0x80   :  { %v6022_v51 = vld [vmem:[#allocation2 + $0x168] sm:$0xf]  ;;  %v8780_v55 = vld [vmem:[#allocation2 + $0x374] sm:$0xf0]  ;;  %v6088_v43 = vld [vmem:[#allocation2 + $0x1f8] sm:$0xf0] }
  0x81   :  { %1517 = vmatpush.bf16.msra.mxu1 %v6291_v3  ;;  %v8696_v3 = vld [vmem:[#allocation2 + $0xd4] sm:$0xf0]  ;;  %v6278_v54 = vld [vmem:[#allocation2 + $0x368] sm:$0xf] }
  0x82   :  { %1543 = vmatpush.bf16.msra.mxu3 %v6547_v6  ;;  %1505 = vmatpush.bf16.msra.mxu0 %v6147_v9  ;;  %v6198_v6 = vld [vmem:[#allocation2 + $0x2c8] sm:$0xf]  ;;  %v5943_v11 = vor.u32 %v8696_v3, %v5942_v2  ;;  %v8680_v58 = vld [vmem:[#allocation2 + $0x54] sm:$0xf0]  ;;  %v6279_v62 = vor.u32 %v8780_v55, %v6278_v54 }
  0x83   :  { %1531 = vmatpush.bf16.msra.mxu2 %v6403_v12  ;;  %v6070_v9 = vld [vmem:[#allocation2 + $0x1c8] sm:$0xf]  ;;  %v6199_v16 = vor.u32 %v8760_v7, %v6198_v6  ;;  %v8776_v3 = vld [vmem:[#allocation2 + $0x354] sm:$0xf0] }
  0x84   :  { %v6326_v12 = vld [vmem:[#allocation2 + $0x3c8] sm:$0xf]  ;;  %v6071_v19 = vor.u32 %v8728_v10, %v6070_v9  ;;  %v8676_v6 = vld [vmem:[#allocation2 + $0x34] sm:$0xf0] }
  0x85   :  { %1518 = vmatpush.bf16.msra.mxu1 %v6275_v17  ;;  %v5926_v17 = vld [vmem:[#allocation2 + $0xa8] sm:$0xf]  ;;  %v6327_v22 = vor.u32 %v8792_v15, %v6326_v12  ;;  %v8740_v9 = vld [vmem:[#allocation2 + $0x234] sm:$0xf0] }
  0x86   :  { %1544 = vmatpush.bf16.msra.mxu3 %v6531_v20  ;;  %1506 = vmatpush.bf16.msra.mxu0 %v6131_v23  ;;  %v6182_v20 = vld [vmem:[#allocation2 + $0x2a8] sm:$0xf]  ;;  %v5927_v25 = vor.u32 %v8692_v18, %v5926_v17  ;;  %v8708_v12 = vld [vmem:[#allocation2 + $0x134] sm:$0xf0] }
  0x87   :  { %1532 = vmatpush.bf16.msra.mxu2 %v6387_v26  ;;  %v6054_v23 = vld [vmem:[#allocation2 + $0x1a8] sm:$0xf]  ;;  %v6183_v28 = vor.u32 %v8756_v21, %v6182_v20  ;;  %v8772_v17 = vld [vmem:[#allocation2 + $0x334] sm:$0xf0] }
  0x88   :  { %v6310_v26 = vld [vmem:[#allocation2 + $0x3a8] sm:$0xf]  ;;  %v6055_v33 = vor.u32 %v8724_v24, %v6054_v23  ;;  %v8860_v38 = vld [vmem:[#allocation2 + $0x5f4] sm:$0xf0] }
  0x89   :  { %1519 = vmatpush.bf16.msra.mxu1 %v6259_v29  ;;  %v5910_v29 = vld [vmem:[#allocation2 + $0x88] sm:$0xf]  ;;  %v6311_v37 = vor.u32 %v8788_v27, %v6310_v26  ;;  %v8698_v26 = vld [vmem:[#allocation2 + $0xec] sm:$0xf]  ;;  %v5960_v27 = vld [vmem:[#allocation2 + $0xf8] sm:$0xf0] }
  0x8a   :  { %1545 = vmatpush.bf16.msra.mxu3 %v6515_v36  ;;  %1507 = vmatpush.bf16.msra.mxu0 %v6115_v41  ;;  %v8752_v36 = vld [vmem:[#allocation2 + $0x294] sm:$0xf0]  ;;  %v5911_v41 = vor.u32 %v8688_v32, %v5910_v29  ;;  %v5878_v57 = vld [vmem:[#allocation2 + $0x48] sm:$0xf] }
  0x8b   :  { %1533 = vmatpush.bf16.msra.mxu2 %v6371_v45  ;;  %v6167_v44 = vor.u32 %v8752_v36, %v6166_v34  ;;  %v5894_v45 = vld [vmem:[#allocation2 + $0x68] sm:$0xf]  ;;  %v8704_v32 = vld [vmem:[#allocation2 + $0x114] sm:$0xf0] }
  0x8c   :  { %v5895_v53 = vor.u32 %v8684_v46, %v5894_v45  ;;  %v6262_v2 = vld [vmem:[#allocation2 + $0x348] sm:$0xf]  ;;  %v8768_v36 = vld [vmem:[#allocation2 + $0x314] sm:$0xf0] }
  0x8d   :  { %1520 = vmatpush.bf16.msra.mxu1 %v6243_v49  ;;  %v8748_v49 = vld [vmem:[#allocation2 + $0x274] sm:$0xf0]  ;;  %v6263_v10 = vor.u32 %v8776_v3, %v6262_v2  ;;  %v6246_v15 = vld [vmem:[#allocation2 + $0x328] sm:$0xf] }
  0x8e   :  { %1546 = vmatpush.bf16.msra.mxu3 %v6499_v52  ;;  %1508 = vmatpush.bf16.msra.mxu0 %v6099_v56  ;;  %v8716_v52 = vld [vmem:[#allocation2 + $0x174] sm:$0xf0]  ;;  %v6151_v56 = vor.u32 %v8748_v49, %v6150_v48  ;;  %v5846_v18 = vld [vmem:[#allocation2 + $0x8] sm:$0xf] }
  0x8f   :  { %1534 = vmatpush.bf16.msra.mxu2 %v6355_v60  ;;  %v6023_v59 = vor.u32 %v8716_v52, %v6022_v51  ;;  %v6134_v60 = vld [vmem:[#allocation2 + $0x248] sm:$0xf]  ;;  %v5944_v51 = vld [vmem:[#allocation2 + $0xd8] sm:$0xf0]  ;;  %v6091_v52 = vor.u32 %v8730_v42, %v6088_v43  ;;  %v8856_v54 = vld [vmem:[#allocation2 + $0x5d4] sm:$0xf0] }
  0x90   :  { %v6102_v21 = vld [vmem:[#allocation2 + $0x208] sm:$0xf]  ;;  %v8852_v2 = vld [vmem:[#allocation2 + $0x5b4] sm:$0xf0] }
  0x91   :  { %1521 = vmatpush.bf16.msra.mxu1 %v6227_v1  ;;  %1509 = vmatmul.bf16.vlgmr.msra.gmra.mxu0 %v9845_v30  ;;  %v5879_v1 = vor.u32 %v8680_v58, %v5878_v57  ;;  %v6470_v23 = vld [vmem:[#allocation2 + $0x4e8] sm:$0xf]  ;;  %v6072_v57 = vld [vmem:[#allocation2 + $0x1d8] sm:$0xf0] }
  0x92   :  { %1553 = vmatpush.bf16.msrb.mxu0 %v5959_v61  ;;  %1547 = vmatpush.bf16.msra.mxu3 %v6483_v4  ;;  %v8744_v61 = vld [vmem:[#allocation2 + $0x254] sm:$0xf0]  ;;  %v5974_v29 = vld [vmem:[#allocation2 + $0x108] sm:$0xf] }
  0x93   :  { %1579 = vmatpush.bf16.msrb.mxu2 %v6215_v0  ;;  %v8712_v0 = vld [vmem:[#allocation2 + $0x154] sm:$0xf0]  ;;  %v6135_v4 = vor.u32 %v8744_v61, %v6134_v60  ;;  %v5975_v45 = vor.u32 %v8704_v32, %v5974_v29  ;;  %v6454_v46 = vld [vmem:[#allocation2 + $0x4c8] sm:$0xf]  ;;  %v8714_v32 = vld [vmem:[#allocation2 + $0x16c] sm:$0xf] }
  0x94   :  { %1535 = vmatmul.bf16.vlgmr.msra.gmra.mxu2 %v9854_v35  ;;  %1522 = vmatmul.bf16.vlgmr.msra.gmra.mxu1 %v9847_v31  ;;  %v6007_v7 = vor.u32 %v8712_v0, %v6006_v63  ;;  %v8820_v60 = vld [vmem:[#allocation2 + $0x4b4] sm:$0xf0]  ;;  %v5928_v63 = vld [vmem:[#allocation2 + $0xb8] sm:$0xf0]  ;;  %v6518_v43 = vld [vmem:[#allocation2 + $0x548] sm:$0xf] }
  0x95   :  { %1566 = vmatpush.bf16.msrb.mxu1 %v6087_v5  ;;  %1548 = vmatmul.bf16.vlgmr.msra.gmra.mxu3 %v9856_v39  ;;  %v5862_v5 = vld [vmem:[#allocation2 + $0x28] sm:$0xf] }
  0x96   :  { %1592 = vmatpush.bf16.msrb.mxu3 %v6343_v8  ;;  %1554 = vmatpush.bf16.msrb.mxu0 %v5943_v11  ;;  %v6118_v8 = vld [vmem:[#allocation2 + $0x228] sm:$0xf] }
  0x97   :  { %1580 = vmatpush.bf16.msrb.mxu2 %v6199_v16  ;;  %v5990_v11 = vld [vmem:[#allocation2 + $0x128] sm:$0xf]  ;;  %v5863_v16 = vor.u32 %v8676_v6, %v5862_v5  ;;  %v6119_v20 = vor.u32 %v8740_v9, %v6118_v8  ;;  %v6056_v5 = vld [vmem:[#allocation2 + $0x1b8] sm:$0xf0]  ;;  %v8816_v8 = vld [vmem:[#allocation2 + $0x494] sm:$0xf0] }
  0x98   :  { %v5991_v24 = vor.u32 %v8708_v12, %v5990_v11  ;;  %v5912_v11 = vld [vmem:[#allocation2 + $0x98] sm:$0xf0] }
  0x99   :  { %1567 = vmatpush.bf16.msrb.mxu1 %v6071_v19  ;;  %v8672_v19 = vld [vmem:[#allocation2 + $0x14] sm:$0xf0] }
  0x9a   :  { %1593 = vmatpush.bf16.msrb.mxu3 %v6327_v22  ;;  %1555 = vmatpush.bf16.msrb.mxu0 %v5927_v25  ;;  %v8736_v22 = vld [vmem:[#allocation2 + $0x214] sm:$0xf0]  ;;  %v5847_v34 = vor.u32 %v8672_v19, %v5846_v18  ;;  %v8718_v18 = vld [vmem:[#allocation2 + $0x18c] sm:$0xf]  ;;  %v6040_v19 = vld [vmem:[#allocation2 + $0x198] sm:$0xf0] }
  0x9b   :  { %1581 = vmatpush.bf16.msrb.mxu2 %v6183_v28  ;;  %v8828_v25 = vld [vmem:[#allocation2 + $0x4f4] sm:$0xf0]  ;;  %v6247_v28 = vor.u32 %v8772_v17, %v6246_v15  ;;  %v6103_v40 = vor.u32 %v8736_v22, %v6102_v21  ;;  %v6550_v15 = vld [vmem:[#allocation2 + $0x588] sm:$0xf] }
  0x9c   :  { %v6406_v21 = vld [vmem:[#allocation2 + $0x468] sm:$0xf]  ;;  %v8812_v22 = vld [vmem:[#allocation2 + $0x474] sm:$0xf0] }
  0x9d   :  { %1568 = vmatpush.bf16.msrb.mxu1 %v6055_v33  ;;  %v6230_v33 = vld [vmem:[#allocation2 + $0x308] sm:$0xf]  ;;  %v6407_v29 = vor.u32 %v8812_v22, %v6406_v21  ;;  %v8758_v22 = vld [vmem:[#allocation2 + $0x2cc] sm:$0xf] }
  0x9e   :  { %1594 = vmatpush.bf16.msrb.mxu3 %v6311_v37  ;;  %1556 = vmatpush.bf16.msrb.mxu0 %v5911_v41  ;;  %v6598_v37 = vld [vmem:[#allocation2 + $0x5e8] sm:$0xf]  ;;  %v6471_v41 = vor.u32 %v8828_v25, %v6470_v23  ;;  %v6231_v48 = vor.u32 %v8768_v36, %v6230_v33  ;;  %v5896_v25 = vld [vmem:[#allocation2 + $0x78] sm:$0xf0] }
  0x9f   :  { %1582 = vmatpush.bf16.msrb.mxu2 %v6167_v44  ;;  %v5963_v44 = vor.u32 %v8698_v26, %v5960_v27  ;;  %v6599_v49 = vor.u32 %v8860_v38, %v6598_v37  ;;  %v6043_v26 = vor.u32 %v8718_v18, %v6040_v19  ;;  %v6534_v27 = vld [vmem:[#allocation2 + $0x568] sm:$0xf]  ;;  %v6024_v33 = vld [vmem:[#allocation2 + $0x178] sm:$0xf0]  ;;  %v8808_v37 = vld [vmem:[#allocation2 + $0x454] sm:$0xf0] }
  0xa0   :  { %v6390_v36 = vld [vmem:[#allocation2 + $0x448] sm:$0xf]  ;;  %v6027_v42 = vor.u32 %v8714_v32, %v6024_v33  ;;  %v8858_v18 = vld [vmem:[#allocation2 + $0x5ec] sm:$0xf]  ;;  %v6600_v19 = vld [vmem:[#allocation2 + $0x5f8] sm:$0xf0] }
  0xa1   :  { %1569 = vmatpush.bf16.msrb.mxu1 %v6039_v47  ;;  %v8824_v47 = vld [vmem:[#allocation2 + $0x4d4] sm:$0xf0]  ;;  %v6328_v32 = vld [vmem:[#allocation2 + $0x3d8] sm:$0xf0] }
  0xa2   :  { %1595 = vmatpush.bf16.msrb.mxu3 %v6295_v50  ;;  %1557 = vmatpush.bf16.msrb.mxu0 %v5895_v53  ;;  %v8694_v50 = vld [vmem:[#allocation2 + $0xcc] sm:$0xf]  ;;  %v6582_v53 = vld [vmem:[#allocation2 + $0x5c8] sm:$0xf]  ;;  %v6455_v55 = vor.u32 %v8824_v47, %v6454_v46  ;;  %v6008_v47 = vld [vmem:[#allocation2 + $0x158] sm:$0xf0] }
  0xa3   :  { %1583 = vmatpush.bf16.msrb.mxu2 %v6151_v56  ;;  %v8726_v56 = vld [vmem:[#allocation2 + $0x1cc] sm:$0xf]  ;;  %v5947_v58 = vor.u32 %v8694_v50, %v5944_v51  ;;  %v6583_v61 = vor.u32 %v8856_v54, %v6582_v53  ;;  %v8804_v50 = vld [vmem:[#allocation2 + $0x434] sm:$0xf0]  ;;  %v5864_v53 = vld [vmem:[#allocation2 + $0x38] sm:$0xf0] }
  0xa4   :  { %v6075_v0 = vor.u32 %v8726_v56, %v6072_v57  ;;  %v8710_v46 = vld [vmem:[#allocation2 + $0x14c] sm:$0xf]  ;;  %v8836_v56 = vld [vmem:[#allocation2 + $0x534] sm:$0xf0] }
  0xa5   :  { %1570 = vmatpush.bf16.msrb.mxu1 %v6023_v59  ;;  %v6438_v59 = vld [vmem:[#allocation2 + $0x4a8] sm:$0xf]  ;;  %v6011_v54 = vor.u32 %v8710_v46, %v6008_v47  ;;  %v8706_v57 = vld [vmem:[#allocation2 + $0x12c] sm:$0xf]  ;;  %v6312_v46 = vld [vmem:[#allocation2 + $0x3b8] sm:$0xf0] }
  0xa6   :  { %1596 = vmatpush.bf16.msrb.mxu3 %v6279_v62  ;;  %1558 = vmatpush.bf16.msrb.mxu0 %v5879_v1  ;;  %v8690_v62 = vld [vmem:[#allocation2 + $0xac] sm:$0xf]  ;;  %v6566_v1 = vld [vmem:[#allocation2 + $0x5a8] sm:$0xf]  ;;  %v6439_v3 = vor.u32 %v8820_v60, %v6438_v59  ;;  %v5992_v59 = vld [vmem:[#allocation2 + $0x138] sm:$0xf0] }
  0xa7   :  { %1584 = vmatpush.bf16.msrb.mxu2 %v6135_v4  ;;  %v8722_v4 = vld [vmem:[#allocation2 + $0x1ac] sm:$0xf]  ;;  %v5931_v6 = vor.u32 %v8690_v62, %v5928_v63  ;;  %v6567_v9 = vor.u32 %v8852_v2, %v6566_v1  ;;  %v6358_v60 = vld [vmem:[#allocation2 + $0x408] sm:$0xf] }
  0xa8   :  { %v6059_v12 = vor.u32 %v8722_v4, %v6056_v5  ;;  %v8670_v63 = vld [vmem:[#allocation2 + $0xc] sm:$0xf]  ;;  %v6472_v5 = vld [vmem:[#allocation2 + $0x4f8] sm:$0xf0] }
  0xa9   :  { %1571 = vmatpush.bf16.msrb.mxu1 %v6007_v7  ;;  %v6422_v7 = vld [vmem:[#allocation2 + $0x488] sm:$0xf]  ;;  %v8762_v1 = vld [vmem:[#allocation2 + $0x2ec] sm:$0xf] }
  0xaa   :  { %1597 = vmatpush.bf16.msrb.mxu3 %v6263_v10  ;;  %1559 = vmatpush.bf16.msrb.mxu0 %v5863_v16  ;;  %v8686_v10 = vld [vmem:[#allocation2 + $0x8c] sm:$0xf]  ;;  %v8848_v16 = vld [vmem:[#allocation2 + $0x594] sm:$0xf0]  ;;  %v6423_v17 = vor.u32 %v8816_v8, %v6422_v7  ;;  %v6486_v7 = vld [vmem:[#allocation2 + $0x508] sm:$0xf] }
  0xab   :  { %1585 = vmatpush.bf16.msrb.mxu2 %v6119_v20  ;;  %v5915_v20 = vor.u32 %v8686_v10, %v5912_v11  ;;  %v6551_v23 = vor.u32 %v8848_v16, %v6550_v15  ;;  %v8826_v4 = vld [vmem:[#allocation2 + $0x4ec] sm:$0xf]  ;;  %v8832_v8 = vld [vmem:[#allocation2 + $0x514] sm:$0xf0]  ;;  %v5976_v11 = vld [vmem:[#allocation2 + $0x118] sm:$0xf0] }
  0xac   :  { %v6344_v15 = vld [vmem:[#allocation2 + $0x3f8] sm:$0xf0]  ;;  %v6487_v21 = vor.u32 %v8832_v8, %v6486_v7  ;;  %v9877_v8 = vld [vmem:[%s10138_s15] sm:$0xf] }
  0xad   :  { %1572 = vmatpush.bf16.msrb.mxu1 %v5991_v24  ;;  %v8682_v24 = vld [vmem:[#allocation2 + $0x6c] sm:$0xf]  ;;  %v6536_v7 = vld [vmem:[#allocation2 + $0x578] sm:$0xf0] }
  0xae   :  { %1598 = vmatpush.bf16.msrb.mxu3 %v6247_v28  ;;  %1560 = vmatpush.bf16.msrb.mxu0 %v5847_v34  ;;  %v8844_v28 = vld [vmem:[#allocation2 + $0x574] sm:$0xf0]  ;;  %v5899_v34 = vor.u32 %v8682_v24, %v5896_v25 }
  0xaf   :  { %1586 = vmatpush.bf16.msrb.mxu2 %v6103_v40  ;;  %v6535_v38 = vor.u32 %v8844_v28, %v6534_v27  ;;  %v8678_v40 = vld [vmem:[#allocation2 + $0x4c] sm:$0xf]  ;;  %v6456_v27 = vld [vmem:[#allocation2 + $0x4d8] sm:$0xf0]  ;;  %v6603_v28 = vor.u32 %v8858_v18, %v6600_v19 }
  0xb0   :  { %v8774_v18 = vld [vmem:[#allocation2 + $0x34c] sm:$0xf]  ;;  %v6264_v19 = vld [vmem:[#allocation2 + $0x358] sm:$0xf0] }
  0xb1   :  { %1573 = vmatpush.bf16.msrb.mxu1 %v5975_v45  ;;  %1561 = vmatmul.bf16.vlgmr.msrb.gmra.mxu0 %v9836_v13  ;;  %v6391_v45 = vor.u32 %v8808_v37, %v6390_v36  ;;  %v6584_v36 = vld [vmem:[#allocation2 + $0x5d8] sm:$0xf0] }
  0xb2   :  { %1605 = vmatpush.bf16.msra.mxu0 %v6471_v41  ;;  %1599 = vmatpush.bf16.msrb.mxu3 %v6231_v48  ;;  %v5880_v41 = vld [vmem:[#allocation2 + $0x58] sm:$0xf0] }
  0xb3   :  { %1631 = vmatpush.bf16.msra.mxu2 %v5963_v44  ;;  %v8840_v44 = vld [vmem:[#allocation2 + $0x554] sm:$0xf0]  ;;  %v5883_v48 = vor.u32 %v8678_v40, %v5880_v41  ;;  %v6184_v40 = vld [vmem:[#allocation2 + $0x2b8] sm:$0xf0] }
  0xb4   :  { %1574 = vmatmul.bf16.vlgmr.msrb.gmra.mxu1 %v9838_v14  ;;  %1587 = vmatmul.bf16.vlgmr.msrb.gmra.mxu2 %v9845_v30  ;;  %v6519_v51 = vor.u32 %v8840_v44, %v6518_v43  ;;  %v6440_v43 = vld [vmem:[#allocation2 + $0x4b8] sm:$0xf0] }
  0xb5   :  { %1618 = vmatpush.bf16.msra.mxu1 %v6599_v49  ;;  %1600 = vmatmul.bf16.vlgmr.msrb.gmra.mxu3 %v9847_v31  ;;  %v6374_v49 = vld [vmem:[#allocation2 + $0x428] sm:$0xf] }
  0xb6   :  { %1644 = vmatpush.bf16.msra.mxu3 %v6091_v52  ;;  %1606 = vmatpush.bf16.msra.mxu0 %v6455_v55  ;;  %v8674_v52 = vld [vmem:[#allocation2 + $0x2c] sm:$0xf]  ;;  %v6502_v55 = vld [vmem:[#allocation2 + $0x528] sm:$0xf] }
  0xb7   :  { %1632 = vmatpush.bf16.msra.mxu2 %v5947_v58  ;;  %v6375_v58 = vor.u32 %v8804_v50, %v6374_v49  ;;  %v5867_v62 = vor.u32 %v8674_v52, %v5864_v53  ;;  %v6503_v2 = vor.u32 %v8836_v56, %v6502_v55  ;;  %v6568_v49 = vld [vmem:[#allocation2 + $0x5b8] sm:$0xf0] }
  0xb8   :  { %v6168_v52 = vld [vmem:[#allocation2 + $0x298] sm:$0xf0] }
  0xb9   :  { %1619 = vmatpush.bf16.msra.mxu1 %v6583_v61  ;;  %v8800_v61 = vld [vmem:[#allocation2 + $0x414] sm:$0xf0]  ;;  %v6424_v55 = vld [vmem:[#allocation2 + $0x498] sm:$0xf0] }
  0xba   :  { %1645 = vmatpush.bf16.msra.mxu3 %v6075_v0  ;;  %1607 = vmatpush.bf16.msra.mxu0 %v6439_v3  ;;  %v5848_v0 = vld [vmem:[#allocation2 + $0x18] sm:$0xf0]  ;;  %v6359_v10 = vor.u32 %v8800_v61, %v6358_v60  ;;  %v8846_v60 = vld [vmem:[#allocation2 + $0x58c] sm:$0xf] }
  0xbb   :  { %1633 = vmatpush.bf16.msra.mxu2 %v5931_v6  ;;  %v6216_v3 = vld [vmem:[#allocation2 + $0x2f8] sm:$0xf0]  ;;  %v5995_v6 = vor.u32 %v8706_v57, %v5992_v59  ;;  %v5851_v16 = vor.u32 %v8670_v63, %v5848_v0  ;;  %v8782_v57 = vld [vmem:[#allocation2 + $0x38c] sm:$0xf] }
  0xbc   :  { %v6552_v61 = vld [vmem:[#allocation2 + $0x598] sm:$0xf0]  ;;  %v8746_v63 = vld [vmem:[#allocation2 + $0x26c] sm:$0xf] }
  0xbd   :  { %1620 = vmatpush.bf16.msra.mxu1 %v6567_v9  ;;  %v8702_v9 = vld [vmem:[#allocation2 + $0x10c] sm:$0xf]  ;;  %v6152_v0 = vld [vmem:[#allocation2 + $0x278] sm:$0xf0] }
  0xbe   :  { %1646 = vmatpush.bf16.msra.mxu3 %v6059_v12  ;;  %1608 = vmatpush.bf16.msra.mxu0 %v6423_v17  ;;  %v8794_v12 = vld [vmem:[#allocation2 + $0x3ec] sm:$0xf]  ;;  %v6219_v17 = vor.u32 %v8762_v1, %v6216_v3  ;;  %v5979_v24 = vor.u32 %v8702_v9, %v5976_v11  ;;  %v6555_v3 = vor.u32 %v8846_v60, %v6552_v61  ;;  %v6136_v11 = vld [vmem:[#allocation2 + $0x258] sm:$0xf0]  ;;  %v6726_v60 = vld [vmem:[#allocation5 + $0xf0] sm:$0xf] }
  0xbf   :  { %1634 = vmatpush.bf16.msra.mxu2 %v5915_v20  ;;  %v6475_v20 = vor.u32 %v8826_v4, %v6472_v5  ;;  %v6347_v25 = vor.u32 %v8794_v12, %v6344_v15  ;;  %v8810_v1 = vld [vmem:[#allocation2 + $0x46c] sm:$0xf]  ;;  %v6155_v5 = vor.u32 %v8746_v63, %v6152_v0  ;;  %v8892_v61 = vld [vmem:[#allocation5 + $0xf4] sm:$0xf0]  ;;  %v6854_v0 = vld [vmem:[#allocation5 + $0x1f0] sm:$0xf] }
  0xc0   :  { %v8778_v4 = vld [vmem:[#allocation2 + $0x36c] sm:$0xf] }
  0xc1   :  { %1621 = vmatpush.bf16.msra.mxu1 %v6551_v23  ;;  %v6200_v23 = vld [vmem:[#allocation2 + $0x2d8] sm:$0xf0]  ;;  %v8806_v15 = vld [vmem:[#allocation2 + $0x44c] sm:$0xf] }
  0xc2   :  { %1647 = vmatpush.bf16.msra.mxu3 %v6043_v26  ;;  %1609 = vmatpush.bf16.msra.mxu0 %v6407_v29  ;;  %v8822_v26 = vld [vmem:[#allocation2 + $0x4cc] sm:$0xf]  ;;  %v6203_v33 = vor.u32 %v8758_v22, %v6200_v23  ;;  %v6520_v23 = vld [vmem:[#allocation2 + $0x558] sm:$0xf0] }
  0xc3   :  { %1635 = vmatpush.bf16.msra.mxu2 %v5899_v34  ;;  %v8790_v29 = vld [vmem:[#allocation2 + $0x3cc] sm:$0xf]  ;;  %v6459_v37 = vor.u32 %v8822_v26, %v6456_v27  ;;  %v6120_v26 = vld [vmem:[#allocation2 + $0x238] sm:$0xf0]  ;;  %v6267_v27 = vor.u32 %v8774_v18, %v6264_v19  ;;  %v6846_v18 = vld [vmem:[#allocation5 + $0x1e0] sm:$0xf] }
  0xc4   :  { %v8854_v34 = vld [vmem:[#allocation2 + $0x5cc] sm:$0xf]  ;;  %v6331_v41 = vor.u32 %v8790_v29, %v6328_v32  ;;  %v6376_v29 = vld [vmem:[#allocation2 + $0x438] sm:$0xf0]  ;;  %v8922_v19 = vld [vmem:[#allocation5 + $0x1e4] sm:$0xf0] }
  0xc5   :  { %1622 = vmatpush.bf16.msra.mxu1 %v6535_v38  ;;  %v8754_v38 = vld [vmem:[#allocation2 + $0x2ac] sm:$0xf]  ;;  %v6587_v44 = vor.u32 %v8854_v34, %v6584_v36  ;;  %v6248_v36 = vld [vmem:[#allocation2 + $0x338] sm:$0xf0] }
  0xc6   :  { %1648 = vmatpush.bf16.msra.mxu3 %v6027_v42  ;;  %1610 = vmatpush.bf16.msra.mxu0 %v6391_v45  ;;  %v8818_v42 = vld [vmem:[#allocation2 + $0x4ac] sm:$0xf]  ;;  %v6187_v47 = vor.u32 %v8754_v38, %v6184_v40 }
  0xc7   :  { %1636 = vmatpush.bf16.msra.mxu2 %v5883_v48  ;;  %v8786_v45 = vld [vmem:[#allocation2 + $0x3ac] sm:$0xf]  ;;  %v6443_v50 = vor.u32 %v8818_v42, %v6440_v43  ;;  %v6104_v43 = vld [vmem:[#allocation2 + $0x218] sm:$0xf0] }
  0xc8   :  { %v8850_v48 = vld [vmem:[#allocation2 + $0x5ac] sm:$0xf]  ;;  %v6315_v53 = vor.u32 %v8786_v45, %v6312_v46 }
  0xc9   :  { %1623 = vmatpush.bf16.msra.mxu1 %v6519_v51  ;;  %v8750_v51 = vld [vmem:[#allocation2 + $0x28c] sm:$0xf]  ;;  %v6571_v56 = vor.u32 %v8850_v48, %v6568_v49  ;;  %v6662_v48 = vld [vmem:[#allocation5 + $0x70] sm:$0xf] }
  0xca   :  { %1649 = vmatpush.bf16.msra.mxu3 %v6011_v54  ;;  %1611 = vmatpush.bf16.msra.mxu0 %v6375_v58  ;;  %v8814_v54 = vld [vmem:[#allocation2 + $0x48c] sm:$0xf]  ;;  %v6296_v58 = vld [vmem:[#allocation2 + $0x398] sm:$0xf0]  ;;  %v6171_v59 = vor.u32 %v8750_v51, %v6168_v52  ;;  %v8876_v51 = vld [vmem:[#allocation5 + $0x74] sm:$0xf0] }
  0xcb   :  { %1637 = vmatpush.bf16.msra.mxu2 %v5867_v62  ;;  %v6427_v62 = vor.u32 %v8814_v54, %v6424_v55  ;;  %v8838_v22 = vld [vmem:[#allocation2 + $0x54c] sm:$0xf]  ;;  %v6790_v52 = vld [vmem:[#allocation5 + $0x170] sm:$0xf]  ;;  %v6663_v63 = vor.u32 %v8876_v51, %v6662_v48 }
  0xcc   :  { %v8770_v34 = vld [vmem:[#allocation2 + $0x32c] sm:$0xf] }
  0xcd   :  { %1624 = vmatpush.bf16.msra.mxu1 %v6503_v2  ;;  %v6408_v2 = vld [vmem:[#allocation2 + $0x478] sm:$0xf0]  ;;  %v8734_v42 = vld [vmem:[#allocation2 + $0x20c] sm:$0xf] }
  0xce   :  { %1650 = vmatpush.bf16.msra.mxu3 %v5995_v6  ;;  %1612 = vmatpush.bf16.msra.mxu0 %v6359_v10  ;;  %v8842_v6 = vld [vmem:[#allocation2 + $0x56c] sm:$0xf]  ;;  %v6411_v9 = vor.u32 %v8810_v1, %v6408_v2 }
  0xcf   :  { %1638 = vmatpush.bf16.msra.mxu2 %v5851_v16  ;;  %v8742_v10 = vld [vmem:[#allocation2 + $0x24c] sm:$0xf]  ;;  %v6392_v16 = vld [vmem:[#allocation2 + $0x458] sm:$0xf0] }
  0xd0   :  { %v8798_v46 = vld [vmem:[#allocation2 + $0x40c] sm:$0xf] }
  0xd1   :  { %1625 = vmatpush.bf16.msra.mxu1 %v6487_v21  ;;  %1613 = vmatmul.bf16.vlgmr.msra.gmra.mxu0 %v9854_v35  ;;  %v6139_v21 = vor.u32 %v8742_v10, %v6136_v11  ;;  %v8766_v55 = vld [vmem:[#allocation2 + $0x30c] sm:$0xf]  ;;  %v6718_v11 = vld [vmem:[#allocation5 + $0xe0] sm:$0xf] }
  0xd2   :  { %1657 = vmatpush.bf16.msrb.mxu0 %v6219_v17  ;;  %1651 = vmatpush.bf16.msra.mxu3 %v5979_v24  ;;  %v6539_v17 = vor.u32 %v8842_v6, %v6536_v7  ;;  %v6395_v24 = vor.u32 %v8806_v15, %v6392_v16  ;;  %v6727_v6 = vor.u32 %v8892_v61, %v6726_v60  ;;  %v6782_v7 = vld [vmem:[#allocation5 + $0x160] sm:$0xf]  ;;  %v6822_v60 = vld [vmem:[#allocation5 + $0x1b0] sm:$0xf]  ;;  %v8916_v61 = vld [vmem:[#allocation5 + $0x1b4] sm:$0xf0] }
  0xd3   :  { %1683 = vmatpush.bf16.msrb.mxu2 %v6475_v20  ;;  %v408_v20 = vperm.slane %v9877_v8, 0 }
  0xd4   :  { %1626 = vmatmul.bf16.vlgmr.msra.gmra.mxu1 %v9856_v39  ;;  %1639 = vmatmul.bf16.vlgmr.msra.gmra.mxu2 %v9836_v13  ;;  %v6280_v13 = vld [vmem:[#allocation2 + $0x378] sm:$0xf0] }
  0xd5   :  { %1670 = vmatpush.bf16.msrb.mxu1 %v6347_v25  ;;  %1652 = vmatmul.bf16.vlgmr.msra.gmra.mxu3 %v9838_v14  ;;  %v6299_v14 = vor.u32 %v8782_v57, %v6296_v58  ;;  %v6283_v12 = vor.u32 %v8778_v4, %v6280_v13  ;;  %v8738_v25 = vld [vmem:[#allocation2 + $0x22c] sm:$0xf]  ;;  %v6107_v58 = vor.u32 %v8734_v42, %v6104_v43  ;;  %v8874_v4 = vld [vmem:[#allocation5 + $0x64] sm:$0xf0]  ;;  %v6766_v43 = vld [vmem:[#allocation5 + $0x140] sm:$0xf] }
  0xd6   :  { %1696 = vmatpush.bf16.msrb.mxu3 %v6603_v28  ;;  %1658 = vmatpush.bf16.msrb.mxu0 %v6203_v33  ;;  %v8802_v28 = vld [vmem:[#allocation2 + $0x42c] sm:$0xf]  ;;  %v6523_v33 = vor.u32 %v8838_v22, %v6520_v23  ;;  %v6123_v40 = vor.u32 %v8738_v25, %v6120_v26  ;;  %v6646_v22 = vld [vmem:[#allocation5 + $0x50] sm:$0xf]  ;;  %v8872_v23 = vld [vmem:[#allocation5 + $0x54] sm:$0xf0] }
  0xd7   :  { %1684 = vmatpush.bf16.msrb.mxu2 %v6459_v37  ;;  %v8834_v37 = vld [vmem:[#allocation2 + $0x52c] sm:$0xf]  ;;  %v6379_v45 = vor.u32 %v8802_v28, %v6376_v29  ;;  %v6774_v26 = vld [vmem:[#allocation5 + $0x150] sm:$0xf]  ;;  %v6847_v28 = vor.u32 %v8922_v19, %v6846_v18  ;;  %v8896_v18 = vld [vmem:[#allocation5 + $0x114] sm:$0xf0] }
  0xd8   :  { %v1406_v32 = vpop.f32.mrf.mxu0  ;;  %v8830_v57 = vld [vmem:[#allocation2 + $0x50c] sm:$0xf]  ;;  %v1445_v16 = vpop.f32.mrf.mxu3  ;;  %v6710_v29 = vld [vmem:[#allocation5 + $0xd0] sm:$0xf] }
  0xd9   :  { %1671 = vmatpush.bf16.msrb.mxu1 %v6331_v41  ;;  %v1407_v38 = vadd.f32 %v1406_v32, %v408_v20  ;;  %v6504_v41 = vld [vmem:[#allocation2 + $0x538] sm:$0xf0]  ;;  %v1432_v20 = vpop.f32.mrf.mxu2  ;;  %v8888_v32 = vld [vmem:[#allocation5 + $0xd4] sm:$0xf0] }
  0xda   :  { %1697 = vmatpush.bf16.msrb.mxu3 %v6587_v44  ;;  %1659 = vmatpush.bf16.msrb.mxu0 %v6187_v47  ;;  %v1419_v44 = vpop.f32.mrf.mxu1  ;;  %v6360_v47 = vld [vmem:[#allocation2 + $0x418] sm:$0xf0]  ;;  %v6507_v54 = vor.u32 %v8834_v37, %v6504_v41  ;;  %v8920_v37 = vld [vmem:[#allocation5 + $0x1d4] sm:$0xf0]  ;;  %v8870_v41 = vld [vmem:[#allocation5 + $0x44] sm:$0xf0]  ;;  %v6711_v42 = vor.u32 %v8888_v32, %v6710_v29 }
  0xdb   :  { %1685 = vmatpush.bf16.msrb.mxu2 %v6443_v50  ;;  %v1420_v49 = vadd.f32 %v1419_v44, %v1407_v38  ;;  %v6251_v50 = vor.u32 %v8770_v34, %v6248_v36  ;;  %v6647_v34 = vor.u32 %v8872_v23, %v6646_v22  ;;  %v6838_v36 = vld [vmem:[#allocation5 + $0x1d0] sm:$0xf]  ;;  %v8902_v44 = vld [vmem:[#allocation5 + $0x144] sm:$0xf0]  ;;  %v8875_v32 = vld [vmem:[#allocation5 + $0x74] sm:$0xf] }
  0xdc   :  { %v6767_v51 = vor.u32 %v8902_v44, %v6766_v43  ;;  %v6806_v22 = vld [vmem:[#allocation5 + $0x190] sm:$0xf]  ;;  %v8894_v29 = vld [vmem:[#allocation5 + $0x104] sm:$0xf0]  ;;  %v6670_v43 = vld [vmem:[#allocation5 + $0x80] sm:$0xf] }
  0xdd   :  { %1672 = vmatpush.bf16.msrb.mxu1 %v6315_v53  ;;  %v8908_v53 = vld [vmem:[#allocation5 + $0x174] sm:$0xf0]  ;;  %v409_v44 = vperm.slane %v9877_v8, 1 }
  0xde   :  { %1698 = vmatpush.bf16.msrb.mxu3 %v6571_v56  ;;  %1660 = vmatpush.bf16.msrb.mxu0 %v6171_v59  ;;  %v6232_v56 = vld [vmem:[#allocation2 + $0x318] sm:$0xf0]  ;;  %v6791_v1 = vor.u32 %v8908_v53, %v6790_v52  ;;  %v6630_v52 = vld [vmem:[#allocation5 + $0x30] sm:$0xf] }
  0xdf   :  { %1686 = vmatpush.bf16.msrb.mxu2 %v6427_v62  ;;  %v6488_v59 = vld [vmem:[#allocation2 + $0x518] sm:$0xf0]  ;;  %v6363_v62 = vor.u32 %v8798_v46, %v6360_v47  ;;  %v6235_v2 = vor.u32 %v8766_v55, %v6232_v56  ;;  %v8886_v46 = vld [vmem:[#allocation5 + $0xc4] sm:$0xf0]  ;;  %v8900_v55 = vld [vmem:[#allocation5 + $0x134] sm:$0xf0] }
  0xe0   :  { %v1408_v13 = vpop.f32.mrf.mxu0  ;;  %v1447_v47 = vpop.f32.mrf.mxu3  ;;  %v6694_v56 = vld [vmem:[#allocation5 + $0xb0] sm:$0xf] }
  0xe1   :  { %1673 = vmatpush.bf16.msrb.mxu1 %v6299_v14  ;;  %v8924_v14 = vld [vmem:[#allocation5 + $0x1f4] sm:$0xf0]  ;;  %v6823_v13 = vor.u32 %v8916_v61, %v6822_v60  ;;  %v6798_v47 = vld [vmem:[#allocation5 + $0x180] sm:$0xf]  ;;  %v8873_v60 = vld [vmem:[#allocation5 + $0x64] sm:$0xf] }
  0xe2   :  { %1699 = vmatpush.bf16.msrb.mxu3 %v6555_v3  ;;  %1661 = vmatpush.bf16.msrb.mxu0 %v6155_v5  ;;  %v6654_v3 = vld [vmem:[#allocation5 + $0x60] sm:$0xf]  ;;  %v6491_v5 = vor.u32 %v8830_v57, %v6488_v59  ;;  %v6855_v10 = vor.u32 %v8924_v14, %v6854_v0  ;;  %v1421_v15 = vpop.f32.mrf.mxu1  ;;  %v8884_v57 = vld [vmem:[#allocation5 + $0xb4] sm:$0xf0]  ;;  %v6656_v61 = vld [vmem:[#allocation5 + $0x68] sm:$0xf0] }
  0xe3   :  { %1687 = vmatpush.bf16.msrb.mxu2 %v6411_v9  ;;  %v8906_v9 = vld [vmem:[#allocation5 + $0x164] sm:$0xf0]  ;;  %v6622_v14 = vld [vmem:[#allocation5 + $0x20] sm:$0xf] }
  0xe5   :  { %1674 = vmatpush.bf16.msrb.mxu1 %v6283_v12  ;;  %v8890_v12 = vld [vmem:[#allocation5 + $0xe4] sm:$0xf0] }
  0xe6   :  { %1700 = vmatpush.bf16.msrb.mxu3 %v6539_v17  ;;  %1662 = vmatpush.bf16.msrb.mxu0 %v6139_v21  ;;  %v6655_v17 = vor.u32 %v8874_v4, %v6654_v3  ;;  %v6783_v21 = vor.u32 %v8906_v9, %v6782_v7  ;;  %v6719_v25 = vor.u32 %v8890_v12, %v6718_v11  ;;  %v6750_v3 = vld [vmem:[#allocation5 + $0x120] sm:$0xf]  ;;  %v8898_v4 = vld [vmem:[#allocation5 + $0x124] sm:$0xf0]  ;;  %v6614_v12 = vld [vmem:[#allocation5 + $0x10] sm:$0xf] }
  0xe7   :  { %1688 = vmatpush.bf16.msrb.mxu2 %v6395_v24  ;;  %v1433_v24 = vadd.f32 %v1432_v20, %v1420_v49  ;;  %v8918_v49 = vld [vmem:[#allocation5 + $0x1c4] sm:$0xf0]  ;;  %v6751_v15 = vor.u32 %v8898_v4, %v6750_v3  ;;  %v6678_v20 = vld [vmem:[#allocation5 + $0x90] sm:$0xf] }
  0xe8   :  { %v8882_v7 = vld [vmem:[#allocation5 + $0xa4] sm:$0xf0] }
  0xe9   :  { %1675 = vmatpush.bf16.msrb.mxu1 %v6267_v27  ;;  %v8904_v27 = vld [vmem:[#allocation5 + $0x154] sm:$0xf0]  ;;  %v8914_v11 = vld [vmem:[#allocation5 + $0x1a4] sm:$0xf0] }
  0xea   :  { %1701 = vmatpush.bf16.msrb.mxu3 %v6523_v33  ;;  %1663 = vmatpush.bf16.msrb.mxu0 %v6123_v40  ;;  %v1446_v33 = vadd.f32 %v1445_v16, %v1433_v24  ;;  %v6775_v38 = vor.u32 %v8904_v27, %v6774_v26  ;;  %v6638_v40 = vld [vmem:[#allocation5 + $0x40] sm:$0xf]  ;;  %v8864_v16 = vld [vmem:[#allocation5 + $0x14] sm:$0xf0]  ;;  %v8862_v26 = vld [vmem:[#allocation5 + $0x4] sm:$0xf0] }
  0xeb   :  { %1689 = vmatpush.bf16.msrb.mxu2 %v6379_v45  ;;  %v6702_v45 = vld [vmem:[#allocation5 + $0xc0] sm:$0xf]  ;;  %v6639_v48 = vor.u32 %v8870_v41, %v6638_v40  ;;  %v8912_v24 = vld [vmem:[#allocation5 + $0x194] sm:$0xf0]  ;;  %v6615_v27 = vor.u32 %v8864_v16, %v6614_v12 }
  0xec   :  { %v6703_v53 = vor.u32 %v8886_v46, %v6702_v45  ;;  %v6807_v45 = vor.u32 %v8912_v24, %v6806_v22  ;;  %v8878_v46 = vld [vmem:[#allocation5 + $0x84] sm:$0xf0]  ;;  %v8903_v22 = vld [vmem:[#allocation5 + $0x154] sm:$0xf] }
  0xed   :  { %1676 = vmatpush.bf16.msrb.mxu1 %v6251_v50  ;;  %v1434_v50 = vpop.f32.mrf.mxu2 }
  0xee   :  { %1702 = vmatpush.bf16.msrb.mxu3 %v6507_v54  ;;  %1664 = vmatpush.bf16.msrb.mxu0 %v6107_v58  ;;  %v6758_v54 = vld [vmem:[#allocation5 + $0x130] sm:$0xf]  ;;  %v1458_v59 = vpop.f32.mrf.mxu0  ;;  %v8891_v50 = vld [vmem:[#allocation5 + $0xf4] sm:$0xf] }
  0xef   :  { %1690 = vmatpush.bf16.msrb.mxu2 %v6363_v62  ;;  %v6759_v62 = vor.u32 %v8900_v55, %v6758_v54 }
  0xf1   :  { %1677 = vmatpush.bf16.msrb.mxu1 %v6235_v2  ;;  %1665 = vmatmul.bf16.vlgmr.msrb.gmra.mxu0 %v9845_v30  ;;  %v8868_v30 = vld [vmem:[#allocation5 + $0x34] sm:$0xf0]  ;;  %v1471_v0 = vpop.f32.mrf.mxu1  ;;  %v6695_v2 = vor.u32 %v8884_v57, %v6694_v56  ;;  %v6856_v56 = vld [vmem:[#allocation5 + $0x1f8] sm:$0xf0] }
  0xf2   :  { %2119 = vmatpush.bf16.msra.mxu0 %v6663_v63  ;;  %1703 = vmatpush.bf16.msrb.mxu3 %v6491_v5  ;;  %v6631_v58 = vor.u32 %v8868_v30, %v6630_v52  ;;  %v1459_v63 = vadd.f32 %v1458_v59, %v1446_v33  ;;  %v6671_v59 = vor.u32 %v8878_v46, %v6670_v43  ;;  %v6704_v43 = vld [vmem:[#allocation5 + $0xc8] sm:$0xf0] }
  0xf3   :  { %2145 = vmatpush.bf16.msra.mxu2 %v6791_v1  ;;  %v8866_v1 = vld [vmem:[#allocation5 + $0x24] sm:$0xf0] }
  0xf4   :  { %1691 = vmatmul.bf16.vlgmr.msrb.gmra.mxu2 %v9854_v35  ;;  %1678 = vmatmul.bf16.vlgmr.msrb.gmra.mxu1 %v9847_v31  ;;  %v6839_v35 = vor.u32 %v8920_v37, %v6838_v36  ;;  %v6830_v31 = vld [vmem:[#allocation5 + $0x1c0] sm:$0xf]  ;;  %v9884_v5 = vadd.f32 %v1471_v0, %v1459_v63  ;;  %v6623_v9 = vor.u32 %v8866_v1, %v6622_v14  ;;  %v6664_v36 = vld [vmem:[#allocation5 + $0x78] sm:$0xf0]  ;;  %v8907_v37 = vld [vmem:[#allocation5 + $0x174] sm:$0xf] }
  0xf5   :  { %2132 = vmatpush.bf16.msra.mxu1 %v6727_v6  ;;  %1704 = vmatmul.bf16.vlgmr.msrb.gmra.mxu3 %v9856_v39  ;;  %v6831_v39 = vor.u32 %v8918_v49, %v6830_v31  ;;  %v6686_v6 = vld [vmem:[#allocation5 + $0xa0] sm:$0xf]  ;;  %v8910_v49 = vld [vmem:[#allocation5 + $0x184] sm:$0xf0]  ;;  %v6667_v55 = vor.u32 %v8875_v32, %v6664_v36  ;;  %v8905_v1 = vld [vmem:[#allocation5 + $0x164] sm:$0xf] }
  0xf6   :  { %2158 = vmatpush.bf16.msra.mxu3 %v6855_v10  ;;  %2120 = vmatpush.bf16.msra.mxu0 %v6655_v17  ;;  %v6814_v10 = vld [vmem:[#allocation5 + $0x1a0] sm:$0xf]  ;;  %v6742_v17 = vld [vmem:[#allocation5 + $0x110] sm:$0xf]  ;;  %v6687_v19 = vor.u32 %v8882_v7, %v6686_v6  ;;  %v1460_v33 = vpop.f32.mrf.mxu0  ;;  %v6799_v0 = vor.u32 %v8910_v49, %v6798_v47  ;;  %v8889_v6 = vld [vmem:[#allocation5 + $0xe4] sm:$0xf] }
  0xf7   :  { %2146 = vmatpush.bf16.msra.mxu2 %v6783_v21  ;;  %v8880_v21 = vld [vmem:[#allocation5 + $0x94] sm:$0xf0]  ;;  %v6815_v23 = vor.u32 %v8914_v11, %v6814_v10  ;;  %v6720_v7 = vld [vmem:[#allocation5 + $0xe8] sm:$0xf0]  ;;  %v8921_v10 = vld [vmem:[#allocation5 + $0x1e4] sm:$0xf] }
  0xf8   :  { %v6679_v41 = vor.u32 %v8880_v21, %v6678_v20  ;;  %v6848_v11 = vld [vmem:[#allocation5 + $0x1e8] sm:$0xf0]  ;;  %v6723_v20 = vor.u32 %v8889_v6, %v6720_v7  ;;  %v6840_v32 = vld [vmem:[#allocation5 + $0x1d8] sm:$0xf0]  ;;  %v8867_v47 = vld [vmem:[#allocation5 + $0x34] sm:$0xf] }
  0xf9   :  { %2133 = vmatpush.bf16.msra.mxu1 %v6719_v25  ;;  %v6606_v25 = vld [vmem:[#allocation5] sm:$0xf]  ;;  %v1473_v40 = vpop.f32.mrf.mxu1  ;;  %v6851_v24 = vor.u32 %v8921_v10, %v6848_v11  ;;  %v6640_v36 = vld [vmem:[#allocation5 + $0x48] sm:$0xf0]  ;;  %v8899_v49 = vld [vmem:[#allocation5 + $0x134] sm:$0xf] }
  0xfa   :  { %2159 = vmatpush.bf16.msra.mxu3 %v6847_v28  ;;  %2121 = vmatpush.bf16.msra.mxu0 %v6647_v34  ;;  %v6734_v28 = vld [vmem:[#allocation5 + $0x100] sm:$0xf]  ;;  %v6743_v34 = vor.u32 %v8896_v18, %v6742_v17  ;;  %v6607_v31 = vor.u32 %v8862_v26, %v6606_v25  ;;  %v8871_v17 = vld [vmem:[#allocation5 + $0x54] sm:$0xf]  ;;  %v6648_v18 = vld [vmem:[#allocation5 + $0x58] sm:$0xf0] }
  0xfb   :  { %2147 = vmatpush.bf16.msra.mxu2 %v6775_v38  ;;  %v1714_v38 = vld [vmem:[%s10124_s1 + $0x8] sm:$0xff]  ;;  %v6735_v54 = vor.u32 %v8894_v29, %v6734_v28  ;;  %v8887_v25 = vld [vmem:[#allocation5 + $0xd4] sm:$0xf]  ;;  %v6712_v26 = vld [vmem:[#allocation5 + $0xd8] sm:$0xf0]  ;;  %v6651_v28 = vor.u32 %v8871_v17, %v6648_v18 }
  0xfc   :  { %v1789_v52 = vunpack.c.l.b16 %v1714_v38  ;;  %v1790_v3 = vunpack.c.h.b16 %v1714_v38  ;;  %v8919_v29 = vld [vmem:[#allocation5 + $0x1d4] sm:$0xf]  ;;  %v8901_v38 = vld [vmem:[#allocation5 + $0x144] sm:$0xf]  ;;  %v6768_v40 = vld [vmem:[#allocation5 + $0x148] sm:$0xf0] }
  0xfd   :  { %2134 = vmatpush.bf16.msra.mxu1 %v6711_v42  ;;  %v6792_v42 = vld [vmem:[#allocation5 + $0x178] sm:$0xf0]  ;;  %v6771_v46 = vor.u32 %v8901_v38, %v6768_v40 }
  0xfe   :  { %2160 = vmatpush.bf16.msra.mxu3 %v6839_v35  ;;  %2122 = vmatpush.bf16.msra.mxu0 %v6639_v48  ;;  %v1484_v35 = vpop.f32.mrf.mxu2  ;;  %v1713_v48 = vld [vmem:[%s10124_s1] sm:$0xff]  ;;  %v9901_v21 = vpack.c.b16 %v1790_v3, %v1790_v3  ;;  %v6616_v10 = vld [vmem:[#allocation5 + $0x18] sm:$0xf0]  ;;  %s5819_s1 = sshll.u32 %s9690_s9, 4  ;;  %s5820_s1 = int_to_ptr.vmem [resolvable:$true] %s5819_s1 }
  0xff   :  { %2148 = vmatpush.bf16.msra.mxu2 %v6767_v51  ;;  %v6728_v51 = vld [vmem:[#allocation5 + $0xf8] sm:$0xf0]  ;;  %v1485_v30 = vadd.f32 %v1484_v35, %v409_v44  ;;  %v1788_v57 = vunpack.c.h.b16 %v1713_v48  ;;  %v8917_v35 = vld [vmem:[#allocation5 + $0x1c4] sm:$0xf] }
 0x100   :  { %v6731_v14 = vor.u32 %v8891_v50, %v6728_v51  ;;  %v6760_v50 = vld [vmem:[#allocation5 + $0x138] sm:$0xf0]  ;;  %v8913_v3 = vld [vmem:[#allocation5 + $0x1a4] sm:$0xf] }
 0x101   :  { %2135 = vmatpush.bf16.msra.mxu1 %v6703_v53  ;;  %v1497_v53 = vpop.f32.mrf.mxu3  ;;  %v9897_v12 = vpack.c.b16 %v1788_v57, %v1788_v57  ;;  %v8865_v57 = vld [vmem:[#allocation5 + $0x24] sm:$0xf]  ;;  %v6744_v17 = vld [vmem:[#allocation5 + $0x118] sm:$0xf0] }
 0x102   :  { %2161 = vmatpush.bf16.msra.mxu3 %v6831_v39  ;;  %2123 = vmatpush.bf16.msra.mxu0 %v6631_v58  ;;  %v8923_v39 = vld [vmem:[#allocation5 + $0x1f4] sm:$0xf]  ;;  %v6795_v58 = vor.u32 %v8907_v37, %v6792_v42  ;;  %v9893_v63 = vadd.f32 %v1497_v53, %v1485_v30  ;;  %v6715_v37 = vor.u32 %v8887_v25, %v6712_v26  ;;  %v8885_v42 = vld [vmem:[#allocation5 + $0xc4] sm:$0xf]  ;;  %v6696_v30 = vld [vmem:[#allocation5 + $0xb8] sm:$0xf0] }
 0x103   :  { %2149 = vmatpush.bf16.msra.mxu2 %v6759_v62  ;;  %v1787_v62 = vunpack.c.l.b16 %v1713_v48  ;;  %v6859_v4 = vor.u32 %v8923_v39, %v6856_v56  ;;  %v6632_v48 = vld [vmem:[#allocation5 + $0x38] sm:$0xf0]  ;;  %v6763_v56 = vor.u32 %v8899_v49, %v6760_v50 }
 0x104   :  { %v6635_v53 = vor.u32 %v8867_v47, %v6632_v48  ;;  %v6808_v25 = vld [vmem:[#allocation5 + $0x198] sm:$0xf0] }
 0x105   :  { %2136 = vmatpush.bf16.msra.mxu1 %v6695_v2  ;;  %v6784_v2 = vld [vmem:[#allocation5 + $0x168] sm:$0xf0]  ;;  %v9899_v16 = vpack.c.b16 %v1787_v62, %v1787_v62  ;;  %v8928_v47 = vld [vmem:[%s10129_s6 + $0x18] sm:$0xff] }
 0x106   :  { %2162 = vmatpush.bf16.msra.mxu3 %v6823_v13  ;;  %2124 = vmatpush.bf16.msra.mxu0 %v6623_v9  ;;  %v9895_v13 = vpack.c.b16 %v1789_v52, %v1789_v52  ;;  %v6659_v9 = vor.u32 %v8873_v60, %v6656_v61  ;;  %v8883_v52 = vld [vmem:[#allocation5 + $0xb4] sm:$0xf]  ;;  %v8897_v61 = vld [vmem:[#allocation5 + $0x124] sm:$0xf]  ;;  %v6752_v62 = vld [vmem:[#allocation5 + $0x128] sm:$0xf0] }
 0x107   :  { %2150 = vmatpush.bf16.msra.mxu2 %v6751_v15  ;;  %v6787_v15 = vor.u32 %v8905_v1, %v6784_v2  ;;  %v6699_v60 = vor.u32 %v8883_v52, %v6696_v30  ;;  %v6688_v1 = vld [vmem:[#allocation5 + $0xa8] sm:$0xf0]  ;;  %v6755_v7 = vor.u32 %v8897_v61, %v6752_v62  ;;  %v8925_v30 = vld [vmem:[%s10129_s6] sm:$0xff]  ;;  %v8944_v61 = vld [vmem:[#allocation7 + $0x74] sm:$0xf0] }
 0x108   :  { %v8926_v52 = vld [vmem:[%s10129_s6 + $0x8] sm:$0xff] }
 0x109   :  { %2137 = vmatpush.bf16.msra.mxu1 %v6687_v19  ;;  %v1486_v19 = vpop.f32.mrf.mxu2 }
 0x10a   :  { %2163 = vmatpush.bf16.msra.mxu3 %v6815_v23  ;;  %2125 = vmatpush.bf16.msra.mxu0 %v6615_v27  ;;  %v6776_v23 = vld [vmem:[#allocation5 + $0x158] sm:$0xf0]  ;;  %v1499_v27 = vpop.f32.mrf.mxu3  ;;  %v8879_v19 = vld [vmem:[#allocation5 + $0x94] sm:$0xf] }
 0x10b   :  { %2151 = vmatpush.bf16.msra.mxu2 %v6743_v34  ;;  %v6779_v33 = vor.u32 %v8903_v22, %v6776_v23  ;;  %v8869_v34 = vld [vmem:[#allocation5 + $0x44] sm:$0xf] }
 0x10c   :  { %v6643_v44 = vor.u32 %v8869_v34, %v6640_v36  ;;  %v8893_v36 = vld [vmem:[#allocation5 + $0x104] sm:$0xf] }
 0x10d   :  { %2138 = vmatpush.bf16.msra.mxu1 %v6679_v41  ;;  %v6843_v41 = vor.u32 %v8919_v29, %v6840_v32  ;;  %v8861_v32 = vld [vmem:[#allocation5 + $0x4] sm:$0xf] }
 0x10e   :  { %2164 = vmatpush.bf16.msra.mxu3 %v6807_v45  ;;  %2126 = vmatpush.bf16.msra.mxu0 %v6607_v31  ;;  %v6832_v45 = vld [vmem:[#allocation5 + $0x1c8] sm:$0xf0]  ;;  %v6707_v31 = vor.u32 %v8885_v42, %v6704_v43  ;;  %v1510_v39 = vpop.f32.mrf.mxu0 }
 0x10f   :  { %2152 = vmatpush.bf16.msra.mxu2 %v6735_v54  ;;  %v6835_v51 = vor.u32 %v8917_v35, %v6832_v45  ;;  %v8915_v54 = vld [vmem:[#allocation5 + $0x1b4] sm:$0xf]  ;;  %v6672_v42 = vld [vmem:[#allocation5 + $0x88] sm:$0xf0] }
 0x110   :  { %v6800_v35 = vld [vmem:[#allocation5 + $0x188] sm:$0xf0] }
 0x111   :  { %2139 = vmatpush.bf16.msra.mxu1 %v6671_v59  ;;  %2127 = vmatmul.bf16.vlgmr.msra.gmra.mxu0 %v9899_v16  ;;  %v1511_v59 = vadd.f32 %v1510_v39, %v9893_v63  ;;  %v1523_v6 = vpop.f32.mrf.mxu1 }
 0x112   :  { %2171 = vmatpush.bf16.msrb.mxu0 %v6667_v55  ;;  %2165 = vmatpush.bf16.msra.mxu3 %v6799_v0  ;;  %v6824_v55 = vld [vmem:[#allocation5 + $0x1b8] sm:$0xf0] }
 0x113   :  { %2197 = vmatpush.bf16.msrb.mxu2 %v6795_v58  ;;  %v6624_v58 = vld [vmem:[#allocation5 + $0x28] sm:$0xf0]  ;;  %v6827_v0 = vor.u32 %v8915_v54, %v6824_v55  ;;  %v1524_v11 = vadd.f32 %v1523_v6, %v1511_v59  ;;  %v8942_v6 = vld [vmem:[#allocation7 + $0x64] sm:$0xf0] }
 0x114   :  { %2153 = vmatmul.bf16.vlgmr.msra.gmra.mxu2 %v9895_v13  ;;  %2140 = vmatmul.bf16.vlgmr.msra.gmra.mxu1 %v9897_v12  ;;  %v6627_v2 = vor.u32 %v8865_v57, %v6624_v58 }
 0x115   :  { %2184 = vmatpush.bf16.msrb.mxu1 %v6731_v14  ;;  %2166 = vmatmul.bf16.vlgmr.msra.gmra.mxu3 %v9901_v21  ;;  %v8881_v14 = vld [vmem:[#allocation5 + $0xa4] sm:$0xf] }
 0x116   :  { %2210 = vmatpush.bf16.msrb.mxu3 %v6859_v4  ;;  %2172 = vmatpush.bf16.msrb.mxu0 %v6659_v9  ;;  %v6816_v4 = vld [vmem:[#allocation5 + $0x1a8] sm:$0xf0]  ;;  %v8863_v9 = vld [vmem:[#allocation5 + $0x14] sm:$0xf]  ;;  %v6691_v63 = vor.u32 %v8881_v14, %v6688_v1  ;;  %v1512_v26 = vpop.f32.mrf.mxu0 }
 0x117   :  { %2198 = vmatpush.bf16.msrb.mxu2 %v6787_v15  ;;  %v8895_v15 = vld [vmem:[#allocation5 + $0x114] sm:$0xf]  ;;  %v6819_v18 = vor.u32 %v8913_v3, %v6816_v4  ;;  %v1536_v22 = vpop.f32.mrf.mxu2  ;;  %v6619_v23 = vor.u32 %v8863_v9, %v6616_v10  ;;  %v6991_v4 = vld [vmem:[#allocation7 + $0x60] sm:$0xf]  ;;  %v411_v10 = vperm.slane %v9877_v8, 3 }
 0x118   :  { %v1537_v27 = vadd.f32 %v1536_v22, %v1524_v11  ;;  %v6747_v29 = vor.u32 %v8895_v15, %v6744_v17  ;;  %v6992_v9 = vor.u32 %v8942_v6, %v6991_v4  ;;  %v6975_v22 = vld [vmem:[#allocation7 + $0x40] sm:$0xf]  ;;  %v8958_v4 = vld [vmem:[#allocation7 + $0xe4] sm:$0xf0] }
 0x119   :  { %2185 = vmatpush.bf16.msrb.mxu1 %v6723_v20  ;;  %v6680_v20 = vld [vmem:[#allocation5 + $0x98] sm:$0xf0]  ;;  %v1525_v45 = vpop.f32.mrf.mxu1 }
 0x11a   :  { %2211 = vmatpush.bf16.msrb.mxu3 %v6851_v24  ;;  %2173 = vmatpush.bf16.msrb.mxu0 %v6651_v28  ;;  %v8911_v24 = vld [vmem:[#allocation5 + $0x194] sm:$0xf]  ;;  %v1549_v28 = vpop.f32.mrf.mxu3  ;;  %v6683_v34 = vor.u32 %v8879_v19, %v6680_v20  ;;  %v6983_v19 = vld [vmem:[#allocation7 + $0x50] sm:$0xf]  ;;  %v8940_v20 = vld [vmem:[#allocation7 + $0x54] sm:$0xf0] }
 0x11b   :  { %2199 = vmatpush.bf16.msrb.mxu2 %v6779_v33  ;;  %v6608_v33 = vld [vmem:[#allocation5 + $0x8] sm:$0xf0]  ;;  %v9908_v38 = vadd.f32 %v1549_v28, %v1537_v27  ;;  %v6811_v40 = vor.u32 %v8911_v24, %v6808_v25  ;;  %v6984_v24 = vor.u32 %v8940_v20, %v6983_v19  ;;  %v8938_v25 = vld [vmem:[#allocation7 + $0x44] sm:$0xf0]  ;;  %v6967_v27 = vld [vmem:[#allocation7 + $0x30] sm:$0xf] }
 0x11c   :  { %v6611_v43 = vor.u32 %v8861_v32, %v6608_v33  ;;  %v6976_v26 = vor.u32 %v8938_v25, %v6975_v22  ;;  %v8936_v28 = vld [vmem:[#allocation7 + $0x34] sm:$0xf0]  ;;  %v6937_v45 = vld [vmem:[#allocation8 + $0x78] sm:$0xf0]  ;;  %v7047_v19 = vld [vmem:[#allocation7 + $0xd0] sm:$0xf] }
 0x11d   :  { %2186 = vmatpush.bf16.msrb.mxu1 %v6715_v37  ;;  %v6736_v37 = vld [vmem:[#allocation5 + $0x108] sm:$0xf0]  ;;  %v6968_v33 = vor.u32 %v8936_v28, %v6967_v27  ;;  %v8956_v20 = vld [vmem:[#allocation7 + $0xd4] sm:$0xf0]  ;;  %v6905_v27 = vld [vmem:[#allocation8 + $0x38] sm:$0xf0] }
 0x11e   :  { %2212 = vmatpush.bf16.msrb.mxu3 %v6843_v41  ;;  %2174 = vmatpush.bf16.msrb.mxu0 %v6643_v44  ;;  %v8877_v41 = vld [vmem:[#allocation5 + $0x84] sm:$0xf]  ;;  %v8968_v25 = vld [vmem:[#allocation8 + $0x34] sm:$0xf0]  ;;  %v7039_v28 = vld [vmem:[#allocation7 + $0xc0] sm:$0xf] }
 0x11f   :  { %2200 = vmatpush.bf16.msrb.mxu2 %v6771_v46  ;;  %v8909_v44 = vld [vmem:[#allocation5 + $0x184] sm:$0xf]  ;;  %v6739_v46 = vor.u32 %v8893_v36, %v6736_v37  ;;  %v6675_v48 = vor.u32 %v8877_v41, %v6672_v42  ;;  %v1538_v49 = vpop.f32.mrf.mxu2  ;;  %v8934_v36 = vld [vmem:[#allocation7 + $0x24] sm:$0xf0]  ;;  %v6935_v41 = vld [vmem:[#allocation8 + $0x70] sm:$0xf] }
 0x120   :  { %v8976_v42 = vld [vmem:[#allocation8 + $0x74] sm:$0xf0] }
 0x121   :  { %2187 = vmatpush.bf16.msrb.mxu1 %v6707_v31  ;;  %v6803_v31 = vor.u32 %v8909_v44, %v6800_v35  ;;  %v6936_v35 = vor.u32 %v8976_v42, %v6935_v41  ;;  %v6897_v41 = vld [vmem:[#allocation8 + $0x28] sm:$0xf0] }
 0x122   :  { %2213 = vmatpush.bf16.msrb.mxu3 %v6835_v51  ;;  %2175 = vmatpush.bf16.msrb.mxu0 %v6635_v53  ;;  %v1551_v50 = vpop.f32.mrf.mxu3  ;;  %v8927_v51 = vld [vmem:[%s10129_s6 + $0x10] sm:$0xff]  ;;  %v410_v53 = vperm.slane %v9877_v8, 2 }
 0x123   :  { %2201 = vmatpush.bf16.msrb.mxu2 %v6763_v56 }
 0x125   :  { %2188 = vmatpush.bf16.msrb.mxu1 %v6699_v60  ;;  %v6999_v60 = vld [vmem:[#allocation7 + $0x70] sm:$0xf] }
 0x126   :  { %2214 = vmatpush.bf16.msrb.mxu3 %v6827_v0  ;;  %2176 = vmatpush.bf16.msrb.mxu0 %v6627_v2  ;;  %v7000_v62 = vor.u32 %v8944_v61, %v6999_v60 }
 0x127   :  { %2202 = vmatpush.bf16.msrb.mxu2 %v6755_v7 }
 0x129   :  { %2189 = vmatpush.bf16.msrb.mxu1 %v6691_v63 }
 0x12a   :  { %2215 = vmatpush.bf16.msrb.mxu3 %v6819_v18  ;;  %2177 = vmatpush.bf16.msrb.mxu0 %v6619_v23 }
 0x12b   :  { %2203 = vmatpush.bf16.msrb.mxu2 %v6747_v29 }
 0x12d   :  { %2190 = vmatpush.bf16.msrb.mxu1 %v6683_v34  ;;  %v6959_v34 = vld [vmem:[#allocation7 + $0x20] sm:$0xf] }
 0x12e   :  { %2216 = vmatpush.bf16.msrb.mxu3 %v6811_v40  ;;  %2178 = vmatpush.bf16.msrb.mxu0 %v6611_v43  ;;  %v6960_v40 = vor.u32 %v8934_v36, %v6959_v34  ;;  %v8975_v43 = vld [vmem:[#allocation8 + $0x74] sm:$0xf]  ;;  %v6895_v36 = vld [vmem:[#allocation8 + $0x20] sm:$0xf] }
 0x12f   :  { %2204 = vmatpush.bf16.msrb.mxu2 %v6739_v46  ;;  %v6940_v46 = vor.u32 %v8975_v43, %v6937_v45 }
 0x131   :  { %2191 = vmatpush.bf16.msrb.mxu1 %v6675_v48  ;;  %2179 = vmatmul.bf16.vlgmr.msrb.gmra.mxu0 %v9899_v16  ;;  %v1562_v16 = vpop.f32.mrf.mxu0  ;;  %v6951_v48 = vld [vmem:[#allocation7 + $0x10] sm:$0xf] }
 0x132   :  { %2270 = vmatpush.bf16.msra.mxu0 %v8928_v47  ;;  %2217 = vmatpush.bf16.msrb.mxu3 %v6803_v31  ;;  %v1563_v54 = vadd.f32 %v1562_v16, %v410_v53  ;;  %v8932_v31 = vld [vmem:[#allocation7 + $0x14] sm:$0xf0] }
 0x133   :  { %2205 = vmatmul.bf16.vlgmr.msrb.gmra.mxu2 %v9895_v13  ;;  %v1575_v13 = vpop.f32.mrf.mxu1  ;;  %v6952_v50 = vor.u32 %v8932_v31, %v6951_v48  ;;  %v8964_v48 = vld [vmem:[#allocation8 + $0x14] sm:$0xf0]  ;;  %v8963_v31 = vld [vmem:[#allocation8 + $0x14] sm:$0xf] }
 0x134   :  { %2192 = vmatmul.bf16.vlgmr.msrb.gmra.mxu1 %v9897_v12  ;;  %v2225_v12 = vld [vmem:[%s10125_s2] sm:$0xf]  ;;  %v1576_v55 = vadd.f32 %v1575_v13, %v1563_v54  ;;  %2424 = vmatpush.bf16.msra.mxu2 %v6940_v46  ;;  %v6929_v54 = vld [vmem:[#allocation8 + $0x68] sm:$0xf0]  ;;  %v7063_v13 = vld [vmem:[#allocation7 + $0xf0] sm:$0xf] }
 0x135   :  { %2218 = vmatmul.bf16.vlgmr.msrb.gmra.mxu3 %v9901_v21  ;;  %2411 = vmatpush.bf16.msra.mxu1 %v6936_v35  ;;  %v8952_v35 = vld [vmem:[#allocation7 + $0xb4] sm:$0xf0]  ;;  %v9938_v46 = vld [vmem:[%s10138_s15 + $0x8] sm:$0x3] }
 0x136   :  { %2271 = vmatpush.bf16.msra.mxu0 %v8927_v51  ;;  %2597 = vmatpush.bf16.msra.mxu3 %v7000_v62  ;;  %v6927_v51 = vld [vmem:[#allocation8 + $0x60] sm:$0xf]  ;;  %v6919_v62 = vld [vmem:[#allocation8 + $0x50] sm:$0xf] }
 0x137   :  { %v1588_v57 = vpop.f32.mrf.mxu2 }
 0x138   :  { %v1601_v21 = vpop.f32.mrf.mxu3  ;;  %v1589_v58 = vadd.f32 %v1588_v57, %v1576_v55  ;;  %v6943_v57 = vld [vmem:[#allocation7] sm:$0xf] }
 0x139   :  { %v1564_v39 = vpop.f32.mrf.mxu0 }
 0x13a   :  { %2272 = vmatpush.bf16.msra.mxu0 %v8926_v52  ;;  %v1602_v59 = vadd.f32 %v1601_v21, %v1589_v58  ;;  %2598 = vmatpush.bf16.msra.mxu3 %v6992_v9  ;;  %v8974_v52 = vld [vmem:[#allocation8 + $0x64] sm:$0xf0] }
 0x13b   :  { %v1577_v56 = vpop.f32.mrf.mxu1  ;;  %v6928_v16 = vor.u32 %v8974_v52, %v6927_v51  ;;  %v8930_v58 = vld [vmem:[#allocation7 + $0x4] sm:$0xf0]  ;;  %v7023_v51 = vld [vmem:[#allocation7 + $0xa0] sm:$0xf] }
 0x13c   :  { %v6944_v61 = vor.u32 %v8930_v58, %v6943_v57  ;;  %v8950_v52 = vld [vmem:[#allocation7 + $0xa4] sm:$0xf0]  ;;  %v7015_v57 = vld [vmem:[#allocation7 + $0x90] sm:$0xf]  ;;  %v8948_v58 = vld [vmem:[#allocation7 + $0x94] sm:$0xf0] }
 0x13d   :  { %2412 = vmatpush.bf16.msra.mxu1 %v6928_v16  ;;  %v7024_v16 = vor.u32 %v8950_v52, %v7023_v51  ;;  %v7033_v51 = vld [vmem:[#allocation7 + $0xb8] sm:$0xf0] }
 0x13e   :  { %2273 = vmatpush.bf16.msra.mxu0 %v8925_v30  ;;  %2599 = vmatpush.bf16.msra.mxu3 %v6984_v24  ;;  %v8973_v30 = vld [vmem:[#allocation8 + $0x64] sm:$0xf]  ;;  %v6903_v24 = vld [vmem:[#allocation8 + $0x30] sm:$0xf] }
 0x13f   :  { %v1590_v14 = vpop.f32.mrf.mxu2  ;;  %v6932_v55 = vor.u32 %v8973_v30, %v6929_v54  ;;  %v1781_v30 = vperm.slane %v9938_v46, 0 }
 0x140   :  { %v1603_v0 = vpop.f32.mrf.mxu3  ;;  %v8971_v14 = vld [vmem:[#allocation8 + $0x54] sm:$0xf] }
 0x141   :  { %6876 = vmatmul.msk.bf16.vlgmr.msra.gmra.mxu0 %vm2262_vm0, %v2225_v12  ;;  %v8960_v12 = vld [vmem:[#allocation7 + $0xf4] sm:$0xf0]  ;;  %2425 = vmatpush.bf16.msra.mxu2 %v6932_v55  ;;  %v8961_v55 = vld [vmem:[#allocation8 + $0x4] sm:$0xf] }
 0x142   :  { %2600 = vmatpush.bf16.msra.mxu3 %v6976_v26  ;;  %v7064_v39 = vor.u32 %v8960_v12, %v7063_v13  ;;  %v8972_v0 = vld [vmem:[#allocation8 + $0x54] sm:$0xf0]  ;;  %v8967_v26 = vld [vmem:[#allocation8 + $0x34] sm:$0xf]  ;;  %v6879_v13 = vld [vmem:[#allocation8] sm:$0xf] }
 0x143   :  { %v8962_v12 = vld [vmem:[#allocation8 + $0x4] sm:$0xf0] }
 0x144   :  { %2610 = vmatpush.bf16.msrb.mxu0 %v7064_v39 }
 0x146   :  { %2601 = vmatpush.bf16.msra.mxu3 %v6968_v33  ;;  %v6904_v33 = vor.u32 %v8968_v25, %v6903_v24 }
 0x14a   :  { %2602 = vmatpush.bf16.msra.mxu3 %v6960_v40  ;;  %v8965_v40 = vld [vmem:[#allocation8 + $0x24] sm:$0xf] }
 0x14b   :  { %v6900_v43 = vor.u32 %v8965_v40, %v6897_v41  ;;  %v8937_v41 = vld [vmem:[#allocation7 + $0x44] sm:$0xf] }
 0x14e   :  { %v1614_v1 = vpop.f32.mrf.mxu0  ;;  %2603 = vmatpush.bf16.msra.mxu3 %v6952_v50  ;;  %v6889_v50 = vld [vmem:[#allocation8 + $0x18] sm:$0xf0] }
 0x14f   :  { %v1615_v2 = vadd.f32 %v1614_v1, %v1602_v59  ;;  %v6920_v1 = vor.u32 %v8972_v0, %v6919_v62  ;;  %v7016_v62 = vor.u32 %v8948_v58, %v7015_v57  ;;  %v8943_v0 = vld [vmem:[#allocation7 + $0x74] sm:$0xf]  ;;  %v1782_v57 = vperm.slane %v9938_v46, 1  ;;  %v7127_v46 = vld [vmem:[#allocation10 + $0x70] sm:$0xf] }
 0x151   :  { %v1627_v3 = vpop.f32.mrf.mxu1  ;;  %2413 = vmatpush.bf16.msra.mxu1 %v6920_v1  ;;  %v8959_v1 = vld [vmem:[#allocation7 + $0xf4] sm:$0xf] }
 0x152   :  { %v9930_v7 = vadd.f32 %v1627_v3, %v1615_v2  ;;  %v6921_v2 = vld [vmem:[#allocation8 + $0x58] sm:$0xf0]  ;;  %v7055_v3 = vld [vmem:[#allocation7 + $0xe0] sm:$0xf]  ;;  %2604 = vmatpush.bf16.msra.mxu3 %v6944_v61 }
 0x153   :  { %v6924_v6 = vor.u32 %v8971_v14, %v6921_v2  ;;  %v7056_v9 = vor.u32 %v8958_v4, %v7055_v3  ;;  %v7001_v14 = vld [vmem:[#allocation7 + $0x78] sm:$0xf0] }
 0x154   :  { %v7004_v2 = vor.u32 %v8943_v0, %v7001_v14  ;;  %v7065_v3 = vld [vmem:[#allocation7 + $0xf8] sm:$0xf0]  ;;  %v8945_v14 = vld [vmem:[#allocation7 + $0x84] sm:$0xf] }
 0x155   :  { %2426 = vmatpush.bf16.msra.mxu2 %v6924_v6  ;;  %2611 = vmatpush.bf16.msrb.mxu0 %v7056_v9  ;;  %v7068_v6 = vor.u32 %v8959_v1, %v7065_v3  ;;  %v7009_v1 = vld [vmem:[#allocation7 + $0x88] sm:$0xf0] }
 0x156   :  { %v1616_v11 = vpop.f32.mrf.mxu0 }
 0x157   :  { %v1640_v15 = vpop.f32.mrf.mxu2  ;;  %v8970_v11 = vld [vmem:[#allocation8 + $0x44] sm:$0xf0] }
 0x158   :  { %v1653_v63 = vpop.f32.mrf.mxu3  ;;  %v1641_v18 = vadd.f32 %v1640_v15, %v411_v10  ;;  %v6911_v10 = vld [vmem:[#allocation8 + $0x40] sm:$0xf] }
 0x159   :  { %v1629_v17 = vpop.f32.mrf.mxu1 }
 0x15a   :  { %v1654_v23 = vadd.f32 %v1653_v63, %v1641_v18  ;;  %v8969_v63 = vld [vmem:[#allocation8 + $0x44] sm:$0xf]  ;;  %v6912_v17 = vor.u32 %v8970_v11, %v6911_v10  ;;  %v6913_v18 = vld [vmem:[#allocation8 + $0x48] sm:$0xf0]  ;;  %v7007_v10 = vld [vmem:[#allocation7 + $0x80] sm:$0xf] }
 0x15b   :  { %v6916_v22 = vor.u32 %v8969_v63, %v6913_v18  ;;  %v8946_v11 = vld [vmem:[#allocation7 + $0x84] sm:$0xf0]  ;;  %v8941_v63 = vld [vmem:[#allocation7 + $0x64] sm:$0xf]  ;;  %v6993_v18 = vld [vmem:[#allocation7 + $0x68] sm:$0xf0] }
 0x15c   :  { %2414 = vmatpush.bf16.msra.mxu1 %v6912_v17  ;;  %v7008_v17 = vor.u32 %v8946_v11, %v7007_v10  ;;  %v8992_v11 = vld [vmem:[#allocation10 + $0x74] sm:$0xf0] }
 0x15d   :  { %2427 = vmatpush.bf16.msra.mxu2 %v6916_v22  ;;  %v6996_v22 = vor.u32 %v8941_v63, %v6993_v18  ;;  %v7119_v18 = vld [vmem:[#allocation10 + $0x60] sm:$0xf] }
 0x15f   :  { %v1642_v32 = vpop.f32.mrf.mxu2 }
 0x160   :  { %v1655_v29 = vpop.f32.mrf.mxu3  ;;  %2415 = vmatpush.bf16.msra.mxu1 %v6904_v33 }
 0x161   :  { %v8954_v29 = vld [vmem:[#allocation7 + $0xc4] sm:$0xf0] }
 0x162   :  { %v7040_v34 = vor.u32 %v8954_v29, %v7039_v28  ;;  %v8939_v28 = vld [vmem:[#allocation7 + $0x54] sm:$0xf]  ;;  %v6985_v29 = vld [vmem:[#allocation7 + $0x58] sm:$0xf0] }
 0x163   :  { %v6988_v33 = vor.u32 %v8939_v28, %v6985_v29  ;;  %v9394_v28 = vld [vmem:[%s10138_s15 + $0x10] ss:$0 sm:$0xff] }
 0x16e   :  { %v1666_v37 = vpop.f32.mrf.mxu0 }
 0x16f   :  { %v1667_v44 = vadd.f32 %v1666_v37, %v1654_v23  ;;  %v7048_v23 = vor.u32 %v8956_v20, %v7047_v19  ;;  %v8966_v37 = vld [vmem:[#allocation8 + $0x24] sm:$0xf0]  ;;  %v8957_v19 = vld [vmem:[#allocation7 + $0xe4] sm:$0xf]  ;;  %v7057_v20 = vld [vmem:[#allocation7 + $0xe8] sm:$0xf0] }
 0x170   :  { %v6896_v42 = vor.u32 %v8966_v37, %v6895_v36 }
 0x171   :  { %v1679_v8 = vpop.f32.mrf.mxu1  ;;  %2612 = vmatpush.bf16.msrb.mxu0 %v7048_v23  ;;  %v7060_v23 = vor.u32 %v8957_v19, %v7057_v20  ;;  %v8990_v19 = vld [vmem:[#allocation10 + $0x64] sm:$0xf0] }
 0x172   :  { %v1680_v47 = vadd.f32 %v1679_v8, %v1667_v44  ;;  %v6908_v8 = vor.u32 %v8967_v26, %v6905_v27  ;;  %v7031_v44 = vld [vmem:[#allocation7 + $0xb0] sm:$0xf]  ;;  %2416 = vmatpush.bf16.msra.mxu1 %v6896_v42  ;;  %v6977_v42 = vld [vmem:[#allocation7 + $0x48] sm:$0xf0] }
 0x173   :  { %v7032_v45 = vor.u32 %v8952_v35, %v7031_v44  ;;  %v6980_v44 = vor.u32 %v8937_v41, %v6977_v42  ;;  %v7041_v35 = vld [vmem:[#allocation7 + $0xc8] sm:$0xf0]  ;;  %v7255_v42 = vld [vmem:[#allocation10 + $0x170] sm:$0xf] }
 0x174   :  { %2428 = vmatpush.bf16.msra.mxu2 %v6908_v8  ;;  %v7049_v8 = vld [vmem:[#allocation7 + $0xd8] sm:$0xf0] }
 0x175   :  { %2613 = vmatpush.bf16.msrb.mxu0 %v7040_v34 }
 0x176   :  { %v1668_v60 = vpop.f32.mrf.mxu0 }
 0x177   :  { %v1692_v49 = vpop.f32.mrf.mxu2 }
 0x178   :  { %v1693_v53 = vadd.f32 %v1692_v49, %v1680_v47  ;;  %v1705_v21 = vpop.f32.mrf.mxu3  ;;  %2429 = vmatpush.bf16.msra.mxu2 %v6900_v43  ;;  %v6887_v47 = vld [vmem:[#allocation8 + $0x10] sm:$0xf]  ;;  %v8953_v43 = vld [vmem:[#allocation7 + $0xc4] sm:$0xf] }
 0x179   :  { %v1681_v56 = vpop.f32.mrf.mxu1  ;;  %2614 = vmatpush.bf16.msrb.mxu0 %v7032_v45  ;;  %v6888_v49 = vor.u32 %v8964_v48, %v6887_v47  ;;  %v7044_v45 = vor.u32 %v8953_v43, %v7041_v35  ;;  %v8935_v48 = vld [vmem:[#allocation7 + $0x34] sm:$0xf]  ;;  %v9024_v43 = vld [vmem:[#allocation10 + $0x174] sm:$0xf0]  ;;  %v7319_v35 = vld [vmem:[#allocation10 + $0x1f0] sm:$0xf] }
 0x17a   :  { %v9933_v59 = vadd.f32 %v1705_v21, %v1693_v53  ;;  %v6892_v53 = vor.u32 %v8963_v31, %v6889_v50  ;;  %v6880_v21 = vor.u32 %v8962_v12, %v6879_v13  ;;  %v6881_v56 = vld [vmem:[#allocation8 + $0x8] sm:$0xf0]  ;;  %v6969_v31 = vld [vmem:[#allocation7 + $0x38] sm:$0xf0] }
 0x17b   :  { %2417 = vmatpush.bf16.msra.mxu1 %v6888_v49  ;;  %v6884_v61 = vor.u32 %v8961_v55, %v6881_v56  ;;  %v8951_v49 = vld [vmem:[#allocation7 + $0xb4] sm:$0xf]  ;;  %v6972_v50 = vor.u32 %v8935_v48, %v6969_v31  ;;  %v7017_v56 = vld [vmem:[#allocation7 + $0x98] sm:$0xf0]  ;;  %v9040_v48 = vld [vmem:[#allocation10 + $0x1f4] sm:$0xf0] }
 0x17c   :  { %2430 = vmatpush.bf16.msra.mxu2 %v6892_v53  ;;  %v7036_v52 = vor.u32 %v8951_v49, %v7033_v51  ;;  %v6961_v53 = vld [vmem:[#allocation7 + $0x28] sm:$0xf0]  ;;  %v8931_v55 = vld [vmem:[#allocation7 + $0x14] sm:$0xf]  ;;  %v7183_v31 = vld [vmem:[#allocation10 + $0xe0] sm:$0xf] }
 0x17d   :  { %2615 = vmatpush.bf16.msrb.mxu0 %v7024_v16  ;;  %v8949_v16 = vld [vmem:[#allocation7 + $0xa4] sm:$0xf]  ;;  %v9006_v49 = vld [vmem:[#allocation10 + $0xe4] sm:$0xf0] }
 0x17e   :  { %v7184_v51 = vor.u32 %v9006_v49, %v7183_v31  ;;  %v8996_v31 = vld [vmem:[#allocation10 + $0x94] sm:$0xf0] }
 0x17f   :  { %v1694_v15 = vpop.f32.mrf.mxu2  ;;  %2418 = vmatpush.bf16.msra.mxu1 %v6880_v21  ;;  %v8947_v21 = vld [vmem:[#allocation7 + $0x94] sm:$0xf] }
 0x180   :  { %v1707_v32 = vpop.f32.mrf.mxu3  ;;  %2431 = vmatpush.bf16.msra.mxu2 %v6884_v61  ;;  %v8929_v61 = vld [vmem:[#allocation7 + $0x4] sm:$0xf] }
 0x181   :  { %2616 = vmatpush.bf16.msrb.mxu0 %v7016_v62  ;;  %v8955_v32 = vld [vmem:[#allocation7 + $0xd4] sm:$0xf]  ;;  %v6945_v62 = vld [vmem:[#allocation7 + $0x8] sm:$0xf0] }
 0x182   :  { %v7052_v36 = vor.u32 %v8955_v32, %v7049_v8 }
 0x183   :  { %2623 = vmatpush.bf16.msrb.mxu1 %v7004_v2 }
 0x184   :  { %2636 = vmatpush.bf16.msrb.mxu2 %v7068_v6  ;;  %v7012_v6 = vor.u32 %v8945_v14, %v7009_v1 }
 0x185   :  { %2617 = vmatpush.bf16.msrb.mxu0 %v7008_v17  ;;  %v7128_v17 = vor.u32 %v8992_v11, %v7127_v46  ;;  %v7079_v11 = vld [vmem:[#allocation10 + $0x10] sm:$0xf] }
 0x187   :  { %2624 = vmatpush.bf16.msrb.mxu1 %v6996_v22  ;;  %3065 = vmatpush.bf16.msrb.mxu3 %v7128_v17  ;;  %v7159_v17 = vld [vmem:[#allocation10 + $0xb0] sm:$0xf] }
 0x188   :  { %2637 = vmatpush.bf16.msrb.mxu2 %v7060_v23 }
 0x18b   :  { %2625 = vmatpush.bf16.msrb.mxu1 %v6988_v33  ;;  %v7191_v33 = vld [vmem:[#allocation10 + $0xf0] sm:$0xf] }
 0x18c   :  { %2638 = vmatpush.bf16.msrb.mxu2 %v7052_v36  ;;  %v8986_v36 = vld [vmem:[#allocation10 + $0x44] sm:$0xf0] }
 0x18e   :  { %v2128_v39 = vpop.f32.mrf.mxu0 }
 0x18f   :  { %v2129_v60 = vadd.f32 %v2128_v39, %v1781_v30  ;;  %2626 = vmatpush.bf16.msrb.mxu1 %v6980_v44  ;;  %v8933_v30 = vld [vmem:[#allocation7 + $0x24] sm:$0xf]  ;;  %v6953_v39 = vld [vmem:[#allocation7 + $0x18] sm:$0xf0] }
 0x190   :  { %2639 = vmatpush.bf16.msrb.mxu2 %v7044_v45  ;;  %v6964_v13 = vor.u32 %v8933_v30, %v6961_v53  ;;  %v6956_v58 = vor.u32 %v8931_v55, %v6953_v39  ;;  %v7095_v30 = vld [vmem:[#allocation10 + $0x30] sm:$0xf]  ;;  %v8984_v53 = vld [vmem:[#allocation10 + $0x34] sm:$0xf0] }
 0x191   :  { %v2141_v54 = vpop.f32.mrf.mxu1  ;;  %v9004_v55 = vld [vmem:[#allocation10 + $0xd4] sm:$0xf0] }
 0x192   :  { %v2142_v4 = vadd.f32 %v2141_v54, %v2129_v60  ;;  %v7025_v54 = vld [vmem:[#allocation7 + $0xa8] sm:$0xf0]  ;;  %v7020_v60 = vor.u32 %v8947_v21, %v7017_v56  ;;  %v9022_v21 = vld [vmem:[#allocation10 + $0x164] sm:$0xf0]  ;;  %v7311_v56 = vld [vmem:[#allocation10 + $0x1e0] sm:$0xf] }
 0x193   :  { %2627 = vmatpush.bf16.msrb.mxu1 %v6972_v50  ;;  %v7028_v12 = vor.u32 %v8949_v16, %v7025_v54  ;;  %v7256_v16 = vor.u32 %v9024_v43, %v7255_v42  ;;  %v7247_v54 = vld [vmem:[#allocation10 + $0x160] sm:$0xf]  ;;  %v8991_v42 = vld [vmem:[#allocation10 + $0x74] sm:$0xf]  ;;  %v7129_v43 = vld [vmem:[#allocation10 + $0x78] sm:$0xf0] }
 0x194   :  { %2640 = vmatpush.bf16.msrb.mxu2 %v7036_v52  ;;  %v7248_v1 = vor.u32 %v9022_v21, %v7247_v54  ;;  %v7279_v54 = vld [vmem:[#allocation10 + $0x1a0] sm:$0xf] }
 0x196   :  { %v2130_v27 = vpop.f32.mrf.mxu0 }
 0x197   :  { %v2154_v9 = vpop.f32.mrf.mxu2  ;;  %2628 = vmatpush.bf16.msrb.mxu1 %v6964_v13  ;;  %v7320_v13 = vor.u32 %v9040_v48, %v7319_v35  ;;  %v7287_v35 = vld [vmem:[#allocation10 + $0x1b0] sm:$0xf] }
 0x198   :  { %v2155_v15 = vadd.f32 %v2154_v9, %v2142_v4  ;;  %v2167_v24 = vpop.f32.mrf.mxu3  ;;  %2641 = vmatpush.bf16.msrb.mxu2 %v7028_v12  ;;  %v6948_v4 = vor.u32 %v8929_v61, %v6945_v62  ;;  %v7175_v12 = vld [vmem:[#allocation10 + $0xd0] sm:$0xf]  ;;  %v7087_v61 = vld [vmem:[#allocation10 + $0x20] sm:$0xf]  ;;  %v8982_v62 = vld [vmem:[#allocation10 + $0x24] sm:$0xf0] }
 0x199   :  { %v2143_v25 = vpop.f32.mrf.mxu1  ;;  %v7088_v46 = vor.u32 %v8982_v62, %v7087_v61  ;;  %v7143_v48 = vld [vmem:[#allocation10 + $0x90] sm:$0xf]  ;;  %v9012_v61 = vld [vmem:[#allocation10 + $0x114] sm:$0xf0]  ;;  %v8987_v62 = vld [vmem:[#allocation10 + $0x54] sm:$0xf] }
 0x19a   :  { %v2168_v26 = vadd.f32 %v2167_v24, %v2155_v15  ;;  %v7120_v24 = vor.u32 %v8990_v19, %v7119_v18  ;;  %v7111_v25 = vld [vmem:[#allocation10 + $0x50] sm:$0xf]  ;;  %v9000_v18 = vld [vmem:[#allocation10 + $0xb4] sm:$0xf0] }
 0x19b   :  { %2629 = vmatpush.bf16.msrb.mxu1 %v6956_v58  ;;  %v7096_v58 = vor.u32 %v8984_v53, %v7095_v30  ;;  %v8989_v30 = vld [vmem:[#allocation10 + $0x64] sm:$0xf]  ;;  %v7121_v53 = vld [vmem:[#allocation10 + $0x68] sm:$0xf0] }
 0x19c   :  { %v2223_v34 = vmax.f32 %v2168_v26, 0.0  ;;  %2642 = vmatpush.bf16.msrb.mxu2 %v7020_v60  ;;  %v8988_v26 = vld [vmem:[#allocation10 + $0x54] sm:$0xf0]  ;;  %3066 = vmatpush.bf16.msrb.mxu3 %v7120_v24  ;;  %v7176_v60 = vor.u32 %v9004_v55, %v7175_v12  ;;  %v7295_v24 = vld [vmem:[#allocation10 + $0x1c0] sm:$0xf]  ;;  %v7144_v12 = vor.u32 %v8996_v31, %v7143_v48 }
 0x19d   :  { %v7112_v32 = vor.u32 %v8988_v26, %v7111_v25  ;;  %v9034_v25 = vld [vmem:[#allocation10 + $0x1c4] sm:$0xf0]  ;;  %v7135_v55 = vld [vmem:[#allocation10 + $0x80] sm:$0xf] }
 0x19e   :  { %v9941_v37 = vpack.c.bf16 %v2223_v34, %v2223_v34  ;;  %v7103_v34 = vld [vmem:[#allocation10 + $0x40] sm:$0xf] }
 0x19f   :  { %v2156_v40 = vpop.f32.mrf.mxu2  ;;  %2630 = vmatpush.bf16.msrb.mxu1 %v6948_v4  ;;  %v7104_v50 = vor.u32 %v8986_v36, %v7103_v34  ;;  %v9002_v4 = vld [vmem:[#allocation10 + $0xc4] sm:$0xf0]  ;;  %v7223_v36 = vld [vmem:[#allocation10 + $0x130] sm:$0xf] }
 0x1a0   :  { %2605 = vmatmul.bf16.vlgmr.msra.gmra.mxu3 %v9941_v37  ;;  %v2169_v47 = vpop.f32.mrf.mxu3  ;;  %2643 = vmatpush.bf16.msrb.mxu2 %v7012_v6  ;;  %v9008_v40 = vld [vmem:[#allocation10 + $0xf4] sm:$0xf0] }
 0x1a1   :  { %v7192_v44 = vor.u32 %v9008_v40, %v7191_v33  ;;  %3067 = vmatpush.bf16.msrb.mxu3 %v7112_v32  ;;  %v9020_v6 = vld [vmem:[#allocation10 + $0x154] sm:$0xf0]  ;;  %v8978_v32 = vld [vmem:[#allocation10 + $0x4] sm:$0xf0]  ;;  %v7151_v33 = vld [vmem:[#allocation10 + $0xa0] sm:$0xf]  ;;  %v7296_v40 = vor.u32 %v9034_v25, %v7295_v24 }
 0x1a3   :  { %3078 = vmatpush.bf16.msra.mxu0 %v7192_v44 }
 0x1a5   :  { %3068 = vmatpush.bf16.msrb.mxu3 %v7104_v50  ;;  %v7215_v50 = vld [vmem:[#allocation10 + $0x120] sm:$0xf] }
 0x1a7   :  { %3079 = vmatpush.bf16.msra.mxu0 %v7184_v51  ;;  %v7132_v51 = vor.u32 %v8991_v42, %v7129_v43 }
 0x1a9   :  { %3069 = vmatpush.bf16.msrb.mxu3 %v7096_v58  ;;  %v9007_v58 = vld [vmem:[#allocation10 + $0xf4] sm:$0xf] }
 0x1ab   :  { %3080 = vmatpush.bf16.msra.mxu0 %v7176_v60  ;;  %v7193_v60 = vld [vmem:[#allocation10 + $0xf8] sm:$0xf0] }
 0x1ad   :  { %3070 = vmatpush.bf16.msrb.mxu3 %v7088_v46  ;;  %v7185_v46 = vld [vmem:[#allocation10 + $0xe8] sm:$0xf0] }
 0x1ae   :  { %v2180_v0 = vpop.f32.mrf.mxu0 }
 0x1af   :  { %v2181_v2 = vadd.f32 %v2180_v0, %v1782_v57  ;;  %v9038_v57 = vld [vmem:[#allocation10 + $0x1e4] sm:$0xf0]  ;;  %v7167_v0 = vld [vmem:[#allocation10 + $0xc0] sm:$0xf] }
 0x1b1   :  { %v2193_v3 = vpop.f32.mrf.mxu1 }
 0x1b2   :  { %v2194_v9 = vadd.f32 %v2193_v3, %v2181_v2  ;;  %v7239_v2 = vld [vmem:[#allocation10 + $0x150] sm:$0xf]  ;;  %v7312_v3 = vor.u32 %v9038_v57, %v7311_v56  ;;  %v7124_v57 = vor.u32 %v8989_v30, %v7121_v53  ;;  %v8981_v30 = vld [vmem:[#allocation10 + $0x24] sm:$0xf]  ;;  %v7089_v53 = vld [vmem:[#allocation10 + $0x28] sm:$0xf0] }
 0x1b3   :  { %v7240_v19 = vor.u32 %v9020_v6, %v7239_v2  ;;  %v7207_v56 = vld [vmem:[#allocation10 + $0x110] sm:$0xf]  ;;  %v9028_v2 = vld [vmem:[#allocation10 + $0x194] sm:$0xf0]  ;;  %v9010_v6 = vld [vmem:[#allocation10 + $0x104] sm:$0xf0] }
 0x1b6   :  { %v2206_v10 = vpop.f32.mrf.mxu2  ;;  %v2182_v15 = vpop.f32.mrf.mxu0 }
 0x1b7   :  { %v2207_v63 = vadd.f32 %v2206_v10, %v2194_v9  ;;  %v7303_v9 = vld [vmem:[#allocation10 + $0x1d0] sm:$0xf]  ;;  %v9036_v10 = vld [vmem:[#allocation10 + $0x1d4] sm:$0xf0] }
 0x1b8   :  { %v2219_v20 = vpop.f32.mrf.mxu3  ;;  %v8980_v15 = vld [vmem:[#allocation10 + $0x14] sm:$0xf0] }
 0x1b9   :  { %v2220_v22 = vadd.f32 %v2219_v20, %v2207_v63  ;;  %v2195_v23 = vpop.f32.mrf.mxu1  ;;  %v7168_v63 = vor.u32 %v9002_v4, %v7167_v0  ;;  %v7231_v20 = vld [vmem:[#allocation10 + $0x140] sm:$0xf]  ;;  %v7080_v26 = vor.u32 %v8980_v15, %v7079_v11  ;;  %v7113_v0 = vld [vmem:[#allocation10 + $0x58] sm:$0xf0]  ;;  %v7208_v4 = vor.u32 %v9012_v61, %v7207_v56  ;;  %v9023_v11 = vld [vmem:[#allocation10 + $0x174] sm:$0xf] }
 0x1ba   :  { %v9018_v23 = vld [vmem:[#allocation10 + $0x144] sm:$0xf0]  ;;  %v7105_v15 = vld [vmem:[#allocation10 + $0x48] sm:$0xf0]  ;;  %v7092_v56 = vor.u32 %v8981_v30, %v7089_v53  ;;  %v8979_v61 = vld [vmem:[#allocation10 + $0x14] sm:$0xf] }
 0x1bb   :  { %v2224_v27 = vmax.f32 %v2220_v22, 0.0  ;;  %v7304_v22 = vor.u32 %v9036_v10, %v7303_v9  ;;  %3081 = vmatpush.bf16.msra.mxu0 %v7168_v63  ;;  %v7232_v34 = vor.u32 %v9018_v23, %v7231_v20  ;;  %3071 = vmatpush.bf16.msrb.mxu3 %v7080_v26  ;;  %v7116_v9 = vor.u32 %v8987_v62, %v7113_v0  ;;  %v9005_v10 = vld [vmem:[#allocation10 + $0xe4] sm:$0xf]  ;;  %v9026_v20 = vld [vmem:[#allocation10 + $0x184] sm:$0xf0] }
 0x1bc   :  { %v8985_v63 = vld [vmem:[#allocation10 + $0x44] sm:$0xf]  ;;  %v7321_v23 = vld [vmem:[#allocation10 + $0x1f8] sm:$0xf0]  ;;  %v7188_v24 = vor.u32 %v9005_v10, %v7185_v46 }
 0x1bd   :  { %v9948_v29 = vpack.c.bf16 %v2224_v27, %v2224_v27  ;;  %v7071_v27 = vld [vmem:[#allocation10] sm:$0xf]  ;;  %v7108_v26 = vor.u32 %v8985_v63, %v7105_v15  ;;  %v7081_v62 = vld [vmem:[#allocation10 + $0x18] sm:$0xf0]  ;;  %v9017_v0 = vld [vmem:[#allocation10 + $0x144] sm:$0xf] }
 0x1be   :  { %v2208_v8 = vpop.f32.mrf.mxu2  ;;  %v2275_v41 = vpop.f32.mrf.mxu0  ;;  %v7072_v44 = vor.u32 %v8978_v32, %v7071_v27  ;;  %v9003_v27 = vld [vmem:[#allocation10 + $0xd4] sm:$0xf]  ;;  %v8977_v63 = vld [vmem:[#allocation10 + $0x4] sm:$0xf]  ;;  %v7073_v15 = vld [vmem:[#allocation10 + $0x8] sm:$0xf0] }
 0x1bf   :  { %2618 = vmatmul.bf16.vlgmr.msrb.gmra.mxu0 %v9948_v29  ;;  %v2276_v45 = vadd.f32 %v9394_v28, %v2275_v41  ;;  %v7160_v28 = vor.u32 %v9000_v18, %v7159_v17  ;;  %v8998_v8 = vld [vmem:[#allocation10 + $0xa4] sm:$0xf0]  ;;  %v9016_v41 = vld [vmem:[#allocation10 + $0x134] sm:$0xf0]  ;;  %v7257_v18 = vld [vmem:[#allocation10 + $0x178] sm:$0xf0] }
 0x1c0   :  { %v2221_v47 = vpop.f32.mrf.mxu3  ;;  %v7224_v49 = vor.u32 %v9016_v41, %v7223_v36  ;;  %3072 = vmatpush.bf16.msrb.mxu3 %v7072_v44  ;;  %v7260_v32 = vor.u32 %v9023_v11, %v7257_v18  ;;  %v9956_v36 = vld [vmem:[%s10126_s3] sm:$0xff]  ;;  %v7249_v41 = vld [vmem:[#allocation10 + $0x168] sm:$0xf0]  ;;  %v9015_v11 = vld [vmem:[#allocation10 + $0x134] sm:$0xf] }
 0x1c1   :  { %v2279_v52 = vmax.f32 %v2276_v45, 0.0  ;;  %3082 = vmatpush.bf16.msra.mxu0 %v7160_v28  ;;  %v9032_v45 = vld [vmem:[#allocation10 + $0x1b4] sm:$0xf0]  ;;  %v7152_v47 = vor.u32 %v8998_v8, %v7151_v33  ;;  %v7177_v28 = vld [vmem:[#allocation10 + $0xd8] sm:$0xf0]  ;;  %v2733_v43 = vunpack.c.l.b16 %v9956_v36  ;;  %v2660_v44 = vld [vmem:[%s10126_s3 + $0x8] sm:$0xff] }
 0x1c2   :  { %v8983_v33 = vld [vmem:[#allocation10 + $0x34] sm:$0xf]  ;;  %v7097_v8 = vld [vmem:[#allocation10 + $0x38] sm:$0xf0]  ;;  %v2735_v48 = vunpack.c.l.b16 %v2660_v44  ;;  %v7439_v18 = vld [vmem:[#allocation13 + $0xe0] sm:$0xf] }
 0x1c3   :  { %v2314_v39 = vpack.c.bf16 %v2279_v52, %v2279_v52  ;;  %v9014_v52 = vld [vmem:[#allocation10 + $0x124] sm:$0xf0]  ;;  %v7100_v31 = vor.u32 %v8983_v33, %v7097_v8  ;;  %v7217_v8 = vld [vmem:[#allocation10 + $0x128] sm:$0xf0]  ;;  %v7273_v30 = vld [vmem:[#allocation10 + $0x198] sm:$0xf0] }
 0x1c4   :  { %v7216_v21 = vor.u32 %v9014_v52, %v7215_v50  ;;  %3117 = vmatpush.bf16.msra.mxu3 %v7132_v51  ;;  %v9001_v50 = vld [vmem:[#allocation10 + $0xc4] sm:$0xf]  ;;  %v7169_v51 = vld [vmem:[#allocation10 + $0xc8] sm:$0xf0] }
 0x1c5   :  { %2419 = vmatmul.bf16.vlgmr.msra.gmra.mxu1 %v2314_v39  ;;  %2432 = vmatmul.bf16.vlgmr.msra.gmra.mxu2 %v2314_v39  ;;  %v8994_v39 = vld [vmem:[#allocation10 + $0x84] sm:$0xf0] }
 0x1c6   :  { %v2277_v14 = vpop.f32.mrf.mxu0  ;;  %3091 = vmatpush.bf16.msra.mxu1 %v7256_v16  ;;  %3104 = vmatpush.bf16.msra.mxu2 %v7320_v13  ;;  %v7288_v16 = vor.u32 %v9032_v45, %v7287_v35  ;;  %v9030_v13 = vld [vmem:[#allocation10 + $0x1a4] sm:$0xf0]  ;;  %v9037_v35 = vld [vmem:[#allocation10 + $0x1e4] sm:$0xf]  ;;  %v7313_v45 = vld [vmem:[#allocation10 + $0x1e8] sm:$0xf0] }
 0x1c7   :  { %3083 = vmatpush.bf16.msra.mxu0 %v7152_v47  ;;  %v7280_v14 = vor.u32 %v9030_v13, %v7279_v54  ;;  %v7180_v47 = vor.u32 %v9003_v27, %v7177_v28  ;;  %v9019_v54 = vld [vmem:[#allocation10 + $0x154] sm:$0xf]  ;;  %v7241_v13 = vld [vmem:[#allocation10 + $0x158] sm:$0xf0] }
 0x1c8   :  { %3118 = vmatpush.bf16.msra.mxu3 %v7124_v57  ;;  %v8999_v57 = vld [vmem:[#allocation10 + $0xb4] sm:$0xf]  ;;  %v7145_v27 = vld [vmem:[#allocation10 + $0x98] sm:$0xf0] }
 0x1ca   :  { %3092 = vmatpush.bf16.msra.mxu1 %v7248_v1  ;;  %3105 = vmatpush.bf16.msra.mxu2 %v7312_v3  ;;  %v7271_v1 = vld [vmem:[#allocation10 + $0x190] sm:$0xf]  ;;  %v7199_v3 = vld [vmem:[#allocation10 + $0x100] sm:$0xf] }
 0x1cb   :  { %3084 = vmatpush.bf16.msra.mxu0 %v7144_v12  ;;  %v7272_v17 = vor.u32 %v9028_v2, %v7271_v1  ;;  %v7200_v25 = vor.u32 %v9010_v6, %v7199_v3  ;;  %v7316_v12 = vor.u32 %v9037_v35, %v7313_v45  ;;  %v2736_v2 = vunpack.c.h.b16 %v2660_v44  ;;  %v7297_v3 = vld [vmem:[#allocation10 + $0x1c8] sm:$0xf0]  ;;  %v8997_v6 = vld [vmem:[#allocation10 + $0xa4] sm:$0xf]  ;;  %v9011_v45 = vld [vmem:[#allocation10 + $0x114] sm:$0xf] }
 0x1cc   :  { %3119 = vmatpush.bf16.msra.mxu3 %v7116_v9  ;;  %v7153_v9 = vld [vmem:[#allocation10 + $0xa8] sm:$0xf0] }
 0x1cd   :  { %v9968_v10 = vpack.c.b16 %v2736_v2, %v2736_v2 }
 0x1ce   :  { %3093 = vmatpush.bf16.msra.mxu1 %v7240_v19  ;;  %3106 = vmatpush.bf16.msra.mxu2 %v7304_v22  ;;  %v7263_v19 = vld [vmem:[#allocation10 + $0x180] sm:$0xf]  ;;  %v9039_v22 = vld [vmem:[#allocation10 + $0x1f4] sm:$0xf] }
 0x1cf   :  { %v7324_v42 = vor.u32 %v9039_v22, %v7321_v23  ;;  %v9031_v22 = vld [vmem:[#allocation10 + $0x1b4] sm:$0xf]  ;;  %v7289_v23 = vld [vmem:[#allocation10 + $0x1b8] sm:$0xf0] }
 0x1d0   :  { %3120 = vmatpush.bf16.msra.mxu3 %v7108_v26  ;;  %v8995_v26 = vld [vmem:[#allocation10 + $0x94] sm:$0xf] }
 0x1d1   :  { %v7148_v44 = vor.u32 %v8995_v26, %v7145_v27  ;;  %v9229_v26 = vld [vmem:[#allocation13 + $0x1e4] sm:$0xf]  ;;  %v7569_v27 = vld [vmem:[#allocation13 + $0x1f0] sm:$0xf0] }
 0x1d2   :  { %3094 = vmatpush.bf16.msra.mxu1 %v7232_v34  ;;  %3107 = vmatpush.bf16.msra.mxu2 %v7296_v40  ;;  %v7264_v34 = vor.u32 %v9026_v20, %v7263_v19  ;;  %v9021_v40 = vld [vmem:[#allocation10 + $0x164] sm:$0xf]  ;;  %v9199_v19 = vld [vmem:[#allocation13 + $0xec] sm:$0xf0] }
 0x1d3   :  { %v7252_v52 = vor.u32 %v9021_v40, %v7249_v41  ;;  %v7440_v33 = vor.u32 %v9199_v19, %v7439_v18  ;;  %v9195_v40 = vld [vmem:[#allocation13 + $0xcc] sm:$0xf0]  ;;  %v7292_v41 = vor.u32 %v9031_v22, %v7289_v23  ;;  %v7359_v18 = vld [vmem:[#allocation13 + $0x40] sm:$0xf] }
 0x1d4   :  { %3121 = vmatpush.bf16.msra.mxu3 %v7100_v31  ;;  %v7407_v31 = vld [vmem:[#allocation13 + $0xa0] sm:$0xf]  ;;  %v9179_v19 = vld [vmem:[#allocation13 + $0x4c] sm:$0xf0] }
 0x1d5   :  { %2631 = vmatmul.bf16.vlgmr.msrb.gmra.mxu1 %v9941_v37  ;;  %2644 = vmatmul.bf16.vlgmr.msrb.gmra.mxu2 %v9948_v29  ;;  %v7136_v37 = vor.u32 %v8994_v39, %v7135_v55  ;;  %v7196_v29 = vor.u32 %v9007_v58, %v7193_v60  ;;  %v9035_v55 = vld [vmem:[#allocation10 + $0x1d4] sm:$0xf]  ;;  %v7305_v39 = vld [vmem:[#allocation10 + $0x1d8] sm:$0xf0]  ;;  %v7244_v60 = vor.u32 %v9019_v54, %v7241_v13  ;;  %v9009_v54 = vld [vmem:[#allocation10 + $0x104] sm:$0xf] }
 0x1d6   :  { %3095 = vmatpush.bf16.msra.mxu1 %v7224_v49  ;;  %3108 = vmatpush.bf16.msra.mxu2 %v7288_v16  ;;  %v9962_v49 = vpack.c.b16 %v2733_v43, %v2733_v43  ;;  %v9964_v16 = vpack.c.b16 %v2735_v48, %v2735_v48  ;;  %v7161_v58 = vld [vmem:[#allocation10 + $0xb8] sm:$0xf0]  ;;  %v7308_v1 = vor.u32 %v9035_v55, %v7305_v39  ;;  %v7281_v43 = vld [vmem:[#allocation10 + $0x1a8] sm:$0xf0]  ;;  %v7391_v55 = vld [vmem:[#allocation13 + $0x80] sm:$0xf] }
 0x1d7   :  { %3085 = vmatpush.bf16.msra.mxu0 %v7136_v37  ;;  %v9033_v37 = vld [vmem:[#allocation10 + $0x1c4] sm:$0xf]  ;;  %v7209_v48 = vld [vmem:[#allocation10 + $0x118] sm:$0xf0]  ;;  %v9187_v39 = vld [vmem:[#allocation13 + $0x8c] sm:$0xf0]  ;;  %v7360_v23 = vor.u32 %v9179_v19, %v7359_v18 }
 0x1d8   :  { %3073 = vmatmul.bf16.vlgmr.msrb.gmra.mxu3 %v9962_v49  ;;  %v7300_v20 = vor.u32 %v9033_v37, %v7297_v3  ;;  %v7212_v53 = vor.u32 %v9011_v45, %v7209_v48  ;;  %v9189_v37 = vld [vmem:[#allocation13 + $0xa4] sm:$0xf]  ;;  %v7409_v3 = vld [vmem:[#allocation13 + $0xb0] sm:$0xf0]  ;;  %v7449_v18 = vld [vmem:[#allocation13 + $0xf8] sm:$0xf0] }
 0x1d9   :  { %3122 = vmatpush.bf16.msra.mxu3 %v7092_v56  ;;  %v9197_v56 = vld [vmem:[#allocation13 + $0xe4] sm:$0xf] }
 0x1da   :  { %3096 = vmatpush.bf16.msra.mxu1 %v7216_v21  ;;  %3109 = vmatpush.bf16.msra.mxu2 %v7280_v14  ;;  %v7172_v21 = vor.u32 %v9001_v50, %v7169_v51  ;;  %v7233_v14 = vld [vmem:[#allocation10 + $0x148] sm:$0xf0]  ;;  %v9191_v50 = vld [vmem:[#allocation13 + $0xac] sm:$0xf0]  ;;  %v9177_v48 = vld [vmem:[#allocation13 + $0x44] sm:$0xf] }
 0x1db   :  { %3130 = vmatpush.bf16.msrb.mxu0 %v7196_v29  ;;  %v7164_v29 = vor.u32 %v8999_v57, %v7161_v58  ;;  %v7236_v46 = vor.u32 %v9017_v0, %v7233_v14  ;;  %v7408_v13 = vor.u32 %v9191_v50, %v7407_v31  ;;  %v7441_v57 = vld [vmem:[#allocation13 + $0xf0] sm:$0xf0]  ;;  %v9193_v0 = vld [vmem:[#allocation13 + $0xc4] sm:$0xf]  ;;  %v7327_v50 = vld [vmem:[#allocation13] sm:$0xf] }
 0x1dc   :  { %v7425_v14 = vld [vmem:[#allocation13 + $0xd0] sm:$0xf0] }
 0x1dd   :  { %v7428_v2 = vor.u32 %v9193_v0, %v7425_v14  ;;  %v7361_v31 = vld [vmem:[#allocation13 + $0x50] sm:$0xf0]  ;;  %v7431_v14 = vld [vmem:[#allocation13 + $0xc8] sm:$0xf] }
 0x1de   :  { %3097 = vmatpush.bf16.msra.mxu1 %v7208_v4  ;;  %3110 = vmatpush.bf16.msra.mxu2 %v7272_v17  ;;  %v7084_v4 = vor.u32 %v8979_v61, %v7081_v62  ;;  %v7225_v17 = vld [vmem:[#allocation10 + $0x138] sm:$0xf0]  ;;  %v7444_v61 = vor.u32 %v9197_v56, %v7441_v57  ;;  %v7375_v62 = vld [vmem:[#allocation13 + $0x60] sm:$0xf]  ;;  %v9200_v57 = vld [vmem:[#allocation13 + $0xf4] sm:$0xf0] }
 0x1df   :  { %3131 = vmatpush.bf16.msrb.mxu0 %v7188_v24  ;;  %v7156_v24 = vor.u32 %v8997_v6, %v7153_v9  ;;  %v7228_v28 = vor.u32 %v9015_v11, %v7225_v17  ;;  %v7412_v6 = vor.u32 %v9189_v37, %v7409_v3  ;;  %v8993_v9 = vld [vmem:[#allocation10 + $0x84] sm:$0xf]  ;;  %v7265_v17 = vld [vmem:[#allocation10 + $0x188] sm:$0xf0]  ;;  %v7521_v0 = vld [vmem:[#allocation13 + $0x190] sm:$0xf0] }
 0x1e0   :  { %3123 = vmatpush.bf16.msra.mxu3 %v7084_v4  ;;  %v7393_v4 = vld [vmem:[#allocation13 + $0x90] sm:$0xf0]  ;;  %v9025_v11 = vld [vmem:[#allocation10 + $0x184] sm:$0xf] }
 0x1e2   :  { %3098 = vmatpush.bf16.msra.mxu1 %v7200_v25  ;;  %3111 = vmatpush.bf16.msra.mxu2 %v7264_v34  ;;  %v7076_v25 = vor.u32 %v8977_v63, %v7073_v15  ;;  %v7423_v34 = vld [vmem:[#allocation13 + $0xc0] sm:$0xf]  ;;  %v2734_v63 = vunpack.c.h.b16 %v9956_v36  ;;  %v9175_v36 = vld [vmem:[#allocation13 + $0x2c] sm:$0xf0] }
 0x1e3   :  { %3132 = vmatpush.bf16.msrb.mxu0 %v7180_v47  ;;  %v7424_v47 = vor.u32 %v9195_v40, %v7423_v34  ;;  %v9181_v34 = vld [vmem:[#allocation13 + $0x64] sm:$0xf]  ;;  %v7377_v40 = vld [vmem:[#allocation13 + $0x70] sm:$0xf0] }
 0x1e4   :  { %3124 = vmatpush.bf16.msra.mxu3 %v7076_v25  ;;  %v9974_v22 = vpack.c.b16 %v2734_v63, %v2734_v63  ;;  %v7415_v63 = vld [vmem:[#allocation13 + $0xa8] sm:$0xf] }
 0x1e5   :  { %3099 = vmatmul.bf16.vlgmr.msra.gmra.mxu1 %v9964_v16  ;;  %3112 = vmatmul.bf16.vlgmr.msra.gmra.mxu2 %v9968_v10 }
 0x1e6   :  { %3143 = vmatpush.bf16.msrb.mxu1 %v7260_v32  ;;  %3156 = vmatpush.bf16.msrb.mxu2 %v7324_v42  ;;  %v9013_v32 = vld [vmem:[#allocation10 + $0x124] sm:$0xf] }
 0x1e7   :  { %3133 = vmatpush.bf16.msrb.mxu0 %v7172_v21  ;;  %v9029_v42 = vld [vmem:[#allocation10 + $0x1a4] sm:$0xf]  ;;  %v7220_v35 = vor.u32 %v9013_v32, %v7217_v8  ;;  %v7572_v32 = vor.u32 %v9229_v26, %v7569_v27  ;;  %v7551_v8 = vld [vmem:[#allocation13 + $0x1c0] sm:$0xf] }
 0x1e8   :  { %3689 = vmatpush.bf16.msrb.mxu3 %v7440_v33  ;;  %v7284_v51 = vor.u32 %v9029_v42, %v7281_v43  ;;  %v7343_v33 = vld [vmem:[#allocation13 + $0x20] sm:$0xf]  ;;  %3086 = vmatmul.bf16.vlgmr.msra.gmra.mxu0 %v9974_v22  ;;  %v9227_v42 = vld [vmem:[#allocation13 + $0x1cc] sm:$0xf0] }
 0x1e9   :  { %3125 = vmatmul.bf16.vlgmr.msra.gmra.mxu3 %v9962_v49  ;;  %v9183_v49 = vld [vmem:[#allocation13 + $0x6c] sm:$0xf0]  ;;  %v7552_v43 = vor.u32 %v9227_v42, %v7551_v8  ;;  %v7487_v27 = vld [vmem:[#allocation13 + $0x140] sm:$0xf]  ;;  %v7399_v8 = vld [vmem:[#allocation13 + $0x88] sm:$0xf] }
 0x1ea   :  { %3144 = vmatpush.bf16.msrb.mxu1 %v7252_v52  ;;  %3157 = vmatpush.bf16.msrb.mxu2 %v7316_v12  ;;  %v9027_v52 = vld [vmem:[#allocation10 + $0x194] sm:$0xf]  ;;  %v7201_v12 = vld [vmem:[#allocation10 + $0x108] sm:$0xf0]  ;;  %v7471_v42 = vld [vmem:[#allocation13 + $0x120] sm:$0xf] }
 0x1eb   :  { %3134 = vmatpush.bf16.msrb.mxu0 %v7164_v29  ;;  %v7276_v21 = vor.u32 %v9027_v52, %v7273_v30  ;;  %v7204_v58 = vor.u32 %v9009_v54, %v7201_v12  ;;  %v9185_v29 = vld [vmem:[#allocation13 + $0x84] sm:$0xf]  ;;  %v7535_v52 = vld [vmem:[#allocation13 + $0x1a0] sm:$0xf]  ;;  %v7537_v12 = vld [vmem:[#allocation13 + $0x1b0] sm:$0xf0] }
 0x1ec   :  { %3690 = vmatpush.bf16.msrb.mxu3 %v7424_v47  ;;  %v7380_v47 = vor.u32 %v9181_v34, %v7377_v40  ;;  %v9188_v34 = vld [vmem:[#allocation13 + $0x94] sm:$0xf0] }
 0x1ee   :  { %3145 = vmatpush.bf16.msrb.mxu1 %v7244_v60  ;;  %3158 = vmatpush.bf16.msrb.mxu2 %v7308_v1  ;;  %v7392_v60 = vor.u32 %v9187_v39, %v7391_v55  ;;  %v7376_v1 = vor.u32 %v9183_v49, %v7375_v62  ;;  %v7447_v55 = vld [vmem:[#allocation13 + $0xe8] sm:$0xf]  ;;  %v7364_v39 = vor.u32 %v9177_v48, %v7361_v31  ;;  %v9217_v62 = vld [vmem:[#allocation13 + $0x184] sm:$0xf]  ;;  %v9184_v48 = vld [vmem:[#allocation13 + $0x74] sm:$0xf0] }
 0x1ef   :  { %3135 = vmatpush.bf16.msrb.mxu0 %v7156_v24  ;;  %v7567_v24 = vld [vmem:[#allocation13 + $0x1e0] sm:$0xf]  ;;  %v7524_v37 = vor.u32 %v9217_v62, %v7521_v0  ;;  %v9190_v31 = vld [vmem:[#allocation13 + $0xac] sm:$0xf]  ;;  %v7577_v0 = vld [vmem:[#allocation13 + $0x1f8] sm:$0xf0] }
 0x1f0   :  { %3691 = vmatpush.bf16.msrb.mxu3 %v7408_v13  ;;  %v9221_v13 = vld [vmem:[#allocation13 + $0x1a4] sm:$0xf] }
 0x1f1   :  { %v7540_v56 = vor.u32 %v9221_v13, %v7537_v12  ;;  %v7455_v13 = vld [vmem:[#allocation13 + $0x100] sm:$0xf]  ;;  %v9203_v12 = vld [vmem:[#allocation13 + $0x10c] sm:$0xf0] }
 0x1f2   :  { %3146 = vmatpush.bf16.msrb.mxu1 %v7236_v46  ;;  %3159 = vmatpush.bf16.msrb.mxu2 %v7300_v20  ;;  %v7137_v46 = vld [vmem:[#allocation10 + $0x88] sm:$0xf0]  ;;  %v7268_v20 = vor.u32 %v9025_v11, %v7265_v17  ;;  %v7329_v11 = vld [vmem:[#allocation13 + $0x10] sm:$0xf0] }
 0x1f3   :  { %3136 = vmatpush.bf16.msrb.mxu0 %v7148_v44  ;;  %v7140_v15 = vor.u32 %v8993_v9, %v7137_v46  ;;  %v9225_v44 = vld [vmem:[#allocation13 + $0x1c4] sm:$0xf]  ;;  %v7505_v46 = vld [vmem:[#allocation13 + $0x170] sm:$0xf0]  ;;  %v9198_v17 = vld [vmem:[#allocation13 + $0xec] sm:$0xf] }
 0x1f4   :  { %3692 = vmatpush.bf16.msrb.mxu3 %v7392_v60  ;;  %v7519_v60 = vld [vmem:[#allocation13 + $0x180] sm:$0xf]  ;;  %v9213_v9 = vld [vmem:[#allocation13 + $0x164] sm:$0xf]  ;;  %v7452_v26 = vor.u32 %v9198_v17, %v7449_v18  ;;  %v9178_v18 = vld [vmem:[#allocation13 + $0x4c] sm:$0xf] }
 0x1f6   :  { %3147 = vmatpush.bf16.msrb.mxu1 %v7228_v28  ;;  %3160 = vmatpush.bf16.msrb.mxu2 %v7292_v41  ;;  %v7396_v28 = vor.u32 %v9185_v29, %v7393_v4  ;;  %v7344_v41 = vor.u32 %v9175_v36, %v7343_v33  ;;  %v7503_v29 = vld [vmem:[#allocation13 + $0x160] sm:$0xf]  ;;  %v7489_v36 = vld [vmem:[#allocation13 + $0x150] sm:$0xf0] }
 0x1f7   :  { %3137 = vmatpush.bf16.msrb.mxu0 %v7140_v15  ;;  %v9192_v15 = vld [vmem:[#allocation13 + $0xb4] sm:$0xf0] }
 0x1f8   :  { %3693 = vmatpush.bf16.msrb.mxu3 %v7376_v1  ;;  %v9196_v1 = vld [vmem:[#allocation13 + $0xd4] sm:$0xf0] }
 0x1f9   :  { %v7432_v3 = vor.u32 %v9196_v1, %v7431_v14 }
 0x1fa   :  { %3148 = vmatpush.bf16.msrb.mxu1 %v7220_v35  ;;  %3161 = vmatpush.bf16.msrb.mxu2 %v7284_v51  ;;  %v7553_v35 = vld [vmem:[#allocation13 + $0x1d0] sm:$0xf0]  ;;  %v9171_v51 = vld [vmem:[#allocation13 + $0xc] sm:$0xf0] }
 0x1fb   :  { %v7556_v45 = vor.u32 %v9225_v44, %v7553_v35  ;;  %v7328_v30 = vor.u32 %v9171_v51, %v7327_v50  ;;  %3138 = vmatmul.bf16.vlgmr.msrb.gmra.mxu0 %v9974_v22  ;;  %v9205_v44 = vld [vmem:[#allocation13 + $0x124] sm:$0xf]  ;;  %v7473_v35 = vld [vmem:[#allocation13 + $0x130] sm:$0xf0]  ;;  %v7417_v22 = vld [vmem:[#allocation13 + $0xb8] sm:$0xf0] }
 0x1fc   :  { %3694 = vmatpush.bf16.msrb.mxu3 %v7360_v23  ;;  %v7416_v23 = vor.u32 %v9192_v15, %v7415_v63  ;;  %v7476_v51 = vor.u32 %v9205_v44, %v7473_v35  ;;  %v9226_v63 = vld [vmem:[#allocation13 + $0x1cc] sm:$0xf]  ;;  %v7561_v15 = vld [vmem:[#allocation13 + $0x1d8] sm:$0xf0] }
 0x1fd   :  { %v7529_v35 = vld [vmem:[#allocation13 + $0x198] sm:$0xf0] }
 0x1fe   :  { %3149 = vmatpush.bf16.msrb.mxu1 %v7212_v53  ;;  %3162 = vmatpush.bf16.msrb.mxu2 %v7276_v21  ;;  %v9223_v53 = vld [vmem:[#allocation13 + $0x1ac] sm:$0xf0]  ;;  %v9173_v21 = vld [vmem:[#allocation13 + $0x24] sm:$0xf] }
 0x1ff   :  { %v7536_v54 = vor.u32 %v9223_v53, %v7535_v52  ;;  %v7401_v53 = vld [vmem:[#allocation13 + $0x98] sm:$0xf0] }
 0x200   :  { %3695 = vmatpush.bf16.msrb.mxu3 %v7344_v41  ;;  %v7400_v41 = vor.u32 %v9188_v34, %v7399_v8  ;;  %v9174_v8 = vld [vmem:[#allocation13 + $0x2c] sm:$0xf]  ;;  %v7353_v34 = vld [vmem:[#allocation13 + $0x38] sm:$0xf0] }
 0x202   :  { %3150 = vmatpush.bf16.msrb.mxu1 %v7204_v58  ;;  %3163 = vmatpush.bf16.msrb.mxu2 %v7268_v20  ;;  %v7448_v58 = vor.u32 %v9200_v57, %v7447_v55  ;;  %v7508_v20 = vor.u32 %v9213_v9, %v7505_v46  ;;  %v9201_v55 = vld [vmem:[#allocation13 + $0x104] sm:$0xf]  ;;  %v7559_v9 = vld [vmem:[#allocation13 + $0x1c8] sm:$0xf]  ;;  %v9228_v46 = vld [vmem:[#allocation13 + $0x1d4] sm:$0xf0] }
 0x204   :  { %3696 = vmatpush.bf16.msrb.mxu3 %v7328_v30  ;;  %v9186_v30 = vld [vmem:[#allocation13 + $0x8c] sm:$0xf] }
 0x205   :  { %3151 = vmatmul.bf16.vlgmr.msrb.gmra.mxu1 %v9964_v16  ;;  %v9231_v16 = vld [vmem:[#allocation13 + $0x1ec] sm:$0xf0]  ;;  %3164 = vmatmul.bf16.vlgmr.msrb.gmra.mxu2 %v9968_v10  ;;  %v7345_v10 = vld [vmem:[#allocation13 + $0x30] sm:$0xf0]  ;;  %v7404_v1 = vor.u32 %v9186_v30, %v7401_v53  ;;  %v7513_v30 = vld [vmem:[#allocation13 + $0x178] sm:$0xf0] }
 0x206   :  { %3715 = vmatpush.bf16.msra.mxu1 %v7444_v61  ;;  %v7568_v25 = vor.u32 %v9231_v16, %v7567_v24  ;;  %3728 = vmatpush.bf16.msra.mxu2 %v7572_v32  ;;  %v9219_v61 = vld [vmem:[#allocation13 + $0x18c] sm:$0xf0]  ;;  %v7348_v4 = vor.u32 %v9173_v21, %v7345_v10  ;;  %v9194_v16 = vld [vmem:[#allocation13 + $0xcc] sm:$0xf]  ;;  %v9209_v32 = vld [vmem:[#allocation13 + $0x144] sm:$0xf] }
 0x207   :  { %v7520_v49 = vor.u32 %v9219_v61, %v7519_v60  ;;  %v7492_v40 = vor.u32 %v9209_v32, %v7489_v36  ;;  %v7457_v21 = vld [vmem:[#allocation13 + $0x110] sm:$0xf0]  ;;  %v7367_v10 = vld [vmem:[#allocation13 + $0x48] sm:$0xf]  ;;  %v9232_v61 = vld [vmem:[#allocation13 + $0x1f4] sm:$0xf0] }
 0x208   :  { %3702 = vmatpush.bf16.msra.mxu0 %v7568_v25  ;;  %3741 = vmatpush.bf16.msra.mxu3 %v7448_v58  ;;  %v7433_v25 = vld [vmem:[#allocation13 + $0xd8] sm:$0xf0]  ;;  %v7460_v57 = vor.u32 %v9201_v55, %v7457_v21  ;;  %v7575_v60 = vld [vmem:[#allocation13 + $0x1e8] sm:$0xf]  ;;  %v9210_v55 = vld [vmem:[#allocation13 + $0x14c] sm:$0xf] }
 0x209   :  { %v7576_v62 = vor.u32 %v9232_v61, %v7575_v60  ;;  %v7545_v32 = vld [vmem:[#allocation13 + $0x1b8] sm:$0xf0] }
 0x20a   :  { %3716 = vmatpush.bf16.msra.mxu1 %v7428_v2  ;;  %3729 = vmatpush.bf16.msra.mxu2 %v7556_v45  ;;  %v9169_v2 = vld [vmem:[#allocation13 + $0x4] sm:$0xf]  ;;  %v7436_v45 = vor.u32 %v9194_v16, %v7433_v25  ;;  %v7543_v16 = vld [vmem:[#allocation13 + $0x1a8] sm:$0xf]  ;;  %v7497_v21 = vld [vmem:[#allocation13 + $0x158] sm:$0xf0] }
 0x20b   :  { %v7332_v24 = vor.u32 %v9169_v2, %v7329_v11  ;;  %v9182_v2 = vld [vmem:[#allocation13 + $0x6c] sm:$0xf]  ;;  %v7560_v11 = vor.u32 %v9228_v46, %v7559_v9 }
 0x20c   :  { %3703 = vmatpush.bf16.msra.mxu0 %v7552_v43  ;;  %3742 = vmatpush.bf16.msra.mxu3 %v7432_v3  ;;  %v9207_v43 = vld [vmem:[#allocation13 + $0x12c] sm:$0xf0]  ;;  %v7385_v3 = vld [vmem:[#allocation13 + $0x78] sm:$0xf0] }
 0x20d   :  { %v7472_v50 = vor.u32 %v9207_v43, %v7471_v42  ;;  %v7388_v17 = vor.u32 %v9182_v2, %v7385_v3  ;;  %v9220_v42 = vld [vmem:[#allocation13 + $0x194] sm:$0xf0]  ;;  %v9218_v43 = vld [vmem:[#allocation13 + $0x18c] sm:$0xf]  ;;  %v7465_v3 = vld [vmem:[#allocation13 + $0x118] sm:$0xf0] }
 0x20e   :  { %3717 = vmatpush.bf16.msra.mxu1 %v7412_v6  ;;  %3730 = vmatpush.bf16.msra.mxu2 %v7540_v56  ;;  %v9215_v6 = vld [vmem:[#allocation13 + $0x16c] sm:$0xf0]  ;;  %v9180_v56 = vld [vmem:[#allocation13 + $0x54] sm:$0xf0]  ;;  %v9202_v2 = vld [vmem:[#allocation13 + $0x10c] sm:$0xf] }
 0x20f   :  { %v7504_v19 = vor.u32 %v9215_v6, %v7503_v29  ;;  %v7368_v58 = vor.u32 %v9180_v56, %v7367_v10  ;;  %v7351_v29 = vld [vmem:[#allocation13 + $0x28] sm:$0xf]  ;;  %v7500_v10 = vor.u32 %v9210_v55, %v7497_v21 }
 0x210   :  { %3704 = vmatpush.bf16.msra.mxu0 %v7536_v54  ;;  %3743 = vmatpush.bf16.msra.mxu3 %v7416_v23  ;;  %v7420_v54 = vor.u32 %v9190_v31, %v7417_v22  ;;  %v7335_v23 = vld [vmem:[#allocation13 + $0x8] sm:$0xf]  ;;  %v7337_v31 = vld [vmem:[#allocation13 + $0x18] sm:$0xf0] }
 0x211   :  { %v7511_v22 = vld [vmem:[#allocation13 + $0x168] sm:$0xf] }
 0x212   :  { %3718 = vmatpush.bf16.msra.mxu1 %v7396_v28  ;;  %3731 = vmatpush.bf16.msra.mxu2 %v7524_v37  ;;  %v9211_v28 = vld [vmem:[#allocation13 + $0x14c] sm:$0xf0]  ;;  %v7479_v56 = vld [vmem:[#allocation13 + $0x128] sm:$0xf] }
 0x213   :  { %v7488_v33 = vor.u32 %v9211_v28, %v7487_v27  ;;  %v9222_v28 = vld [vmem:[#allocation13 + $0x1ac] sm:$0xf] }
 0x214   :  { %3705 = vmatpush.bf16.msra.mxu0 %v7520_v49  ;;  %3744 = vmatpush.bf16.msra.mxu3 %v7400_v41  ;;  %v9230_v49 = vld [vmem:[#allocation13 + $0x1ec] sm:$0xf]  ;;  %v7527_v41 = vld [vmem:[#allocation13 + $0x188] sm:$0xf] }
 0x215   :  { %v7580_v37 = vor.u32 %v9230_v49, %v7577_v0  ;;  %v7528_v44 = vor.u32 %v9220_v42, %v7527_v41  ;;  %v7463_v0 = vld [vmem:[#allocation13 + $0x108] sm:$0xf]  ;;  %v7919_v41 = vld [vmem:[#allocation11 + $0x2a0] sm:$0xf]  ;;  %v9127_v42 = vld [vmem:[#allocation11 + $0x2ac] sm:$0xf0] }
 0x216   :  { %3719 = vmatpush.bf16.msra.mxu1 %v7380_v47  ;;  %3732 = vmatpush.bf16.msra.mxu2 %v7508_v20  ;;  %v7383_v47 = vld [vmem:[#allocation13 + $0x68] sm:$0xf]  ;;  %v7564_v20 = vor.u32 %v9226_v63, %v7561_v15  ;;  %v7695_v15 = vld [vmem:[#allocation11 + $0xe0] sm:$0xf] }
 0x217   :  { %v7384_v52 = vor.u32 %v9184_v48, %v7383_v47  ;;  %v7356_v47 = vor.u32 %v9174_v8, %v7353_v34  ;;  %v9170_v48 = vld [vmem:[#allocation13 + $0xc] sm:$0xf]  ;;  %v7663_v34 = vld [vmem:[#allocation11 + $0xa0] sm:$0xf] }
 0x218   :  { %3706 = vmatpush.bf16.msra.mxu0 %v7504_v19  ;;  %v7369_v19 = vld [vmem:[#allocation13 + $0x58] sm:$0xf0] }
 0x219   :  { %3745 = vmatpush.bf16.msra.mxu3 %v7384_v52  ;;  %v7372_v36 = vor.u32 %v9178_v18, %v7369_v19  ;;  %v9071_v18 = vld [vmem:[#allocation11 + $0xec] sm:$0xf0]  ;;  %v7951_v19 = vld [vmem:[#allocation11 + $0x2e0] sm:$0xf] }
 0x21a   :  { %3720 = vmatpush.bf16.msra.mxu1 %v7364_v39  ;;  %3733 = vmatpush.bf16.msra.mxu2 %v7492_v40  ;;  %v7456_v39 = vor.u32 %v9203_v12, %v7455_v13  ;;  %v7548_v40 = vor.u32 %v9222_v28, %v7545_v32  ;;  %v7495_v13 = vld [vmem:[#allocation13 + $0x148] sm:$0xf]  ;;  %v9212_v12 = vld [vmem:[#allocation13 + $0x154] sm:$0xf0]  ;;  %v9067_v32 = vld [vmem:[#allocation11 + $0xcc] sm:$0xf0] }
 0x21c   :  { %3707 = vmatpush.bf16.msra.mxu0 %v7488_v33 }
 0x21d   :  { %3746 = vmatpush.bf16.msra.mxu3 %v7368_v58  ;;  %v9206_v58 = vld [vmem:[#allocation13 + $0x12c] sm:$0xf] }
 0x21e   :  { %3721 = vmatpush.bf16.msra.mxu1 %v7348_v4  ;;  %3734 = vmatpush.bf16.msra.mxu2 %v7476_v51  ;;  %v9176_v4 = vld [vmem:[#allocation13 + $0x34] sm:$0xf0]  ;;  %v9214_v51 = vld [vmem:[#allocation13 + $0x16c] sm:$0xf] }
 0x21f   :  { %v7352_v6 = vor.u32 %v9176_v4, %v7351_v29  ;;  %v7516_v53 = vor.u32 %v9214_v51, %v7513_v30  ;;  %v9984_v29 = vld [vmem:[%s10138_s15 + $0xa] sm:$0x3]  ;;  %v7468_v4 = vor.u32 %v9202_v2, %v7465_v3  ;;  %v7631_v30 = vld [vmem:[#allocation11 + $0x60] sm:$0xf]  ;;  %v9167_v2 = vld [vmem:[#allocation11 + $0x3ec] sm:$0xf0] }
 0x220   :  { %3708 = vmatpush.bf16.msra.mxu0 %v7472_v50  ;;  %v9216_v50 = vld [vmem:[#allocation13 + $0x174] sm:$0xf0]  ;;  %v2651_v46 = vperm.slane %v9984_v29, 0 }
 0x221   :  { %3747 = vmatpush.bf16.msra.mxu3 %v7352_v6  ;;  %v7512_v52 = vor.u32 %v9216_v50, %v7511_v22  ;;  %v9123_v22 = vld [vmem:[#allocation11 + $0x28c] sm:$0xf0]  ;;  %v2652_v50 = vperm.slane %v9984_v29, 1 }
 0x222   :  { %3722 = vmatpush.bf16.msra.mxu1 %v7332_v24  ;;  %3735 = vmatpush.bf16.msra.mxu2 %v7460_v57  ;;  %v9172_v24 = vld [vmem:[#allocation13 + $0x14] sm:$0xf0] }
 0x223   :  { %v9979_v14 = vpop.f32.mrf.mxu3  ;;  %v7336_v25 = vor.u32 %v9172_v24, %v7335_v23  ;;  %v9208_v57 = vld [vmem:[#allocation13 + $0x134] sm:$0xf0] }
 0x224   :  { %3709 = vmatpush.bf16.msra.mxu0 %v7456_v39  ;;  %v7496_v39 = vor.u32 %v9212_v12, %v7495_v13  ;;  %v7480_v61 = vor.u32 %v9208_v57, %v7479_v56  ;;  %v7887_v13 = vld [vmem:[#allocation11 + $0x260] sm:$0xf]  ;;  %v9119_v12 = vld [vmem:[#allocation11 + $0x26c] sm:$0xf0] }
 0x225   :  { %3748 = vmatpush.bf16.msra.mxu3 %v7336_v25  ;;  %v7696_v25 = vor.u32 %v9071_v18, %v7695_v15  ;;  %v7888_v56 = vor.u32 %v9119_v12, %v7887_v13  ;;  %v7615_v57 = vld [vmem:[#allocation11 + $0x40] sm:$0xf]  ;;  %v9099_v15 = vld [vmem:[#allocation11 + $0x1cc] sm:$0xf0]  ;;  %v7681_v13 = vld [vmem:[#allocation11 + $0xd0] sm:$0xf0] }
 0x226   :  { %3767 = vmatpush.bf16.msrb.mxu1 %v7452_v26  ;;  %3780 = vmatpush.bf16.msrb.mxu2 %v7580_v37  ;;  %v9224_v26 = vld [vmem:[#allocation13 + $0x1b4] sm:$0xf0]  ;;  %v9129_v12 = vld [vmem:[#allocation11 + $0x2c4] sm:$0xf] }
 0x227   :  { %v7544_v27 = vor.u32 %v9224_v26, %v7543_v16 }
 0x228   :  { %3754 = vmatpush.bf16.msrb.mxu0 %v7576_v62  ;;  %v7481_v62 = vld [vmem:[#allocation13 + $0x138] sm:$0xf0] }
 0x229   :  { %v7484_v49 = vor.u32 %v9206_v58, %v7481_v62  ;;  %v9051_v58 = vld [vmem:[#allocation11 + $0x4c] sm:$0xf0] }
 0x22a   :  { %3768 = vmatpush.bf16.msrb.mxu1 %v7436_v45  ;;  %3781 = vmatpush.bf16.msrb.mxu2 %v7564_v20  ;;  %v7532_v45 = vor.u32 %v9218_v43, %v7529_v35  ;;  %v9135_v20 = vld [vmem:[#allocation11 + $0x2ec] sm:$0xf0]  ;;  %v7616_v3 = vor.u32 %v9051_v58, %v7615_v57 }
 0x22b   :  { %v2608_v33 = vpop.f32.mrf.mxu3  ;;  %v7952_v26 = vor.u32 %v9135_v20, %v7951_v19  ;;  %v9103_v62 = vld [vmem:[#allocation11 + $0x1ec] sm:$0xf0]  ;;  %v8063_v20 = vld [vmem:[#allocation11 + $0x3c0] sm:$0xf] }
 0x22c   :  { %3755 = vmatpush.bf16.msrb.mxu0 %v7560_v11  ;;  %v9131_v33 = vld [vmem:[#allocation11 + $0x2cc] sm:$0xf0] }
 0x22d   :  { %v9111_v19 = vld [vmem:[#allocation11 + $0x22c] sm:$0xf0] }
 0x22e   :  { %3769 = vmatpush.bf16.msrb.mxu1 %v7420_v54  ;;  %3782 = vmatpush.bf16.msrb.mxu2 %v7548_v40  ;;  %v7340_v54 = vor.u32 %v9170_v48, %v7337_v31  ;;  %v9063_v40 = vld [vmem:[#allocation11 + $0xac] sm:$0xf0]  ;;  %v7903_v31 = vld [vmem:[#allocation11 + $0x280] sm:$0xf] }
 0x22f   :  { %v7664_v35 = vor.u32 %v9063_v40, %v7663_v34  ;;  %v9059_v48 = vld [vmem:[#allocation11 + $0x8c] sm:$0xf0]  ;;  %v9069_v40 = vld [vmem:[#allocation11 + $0xe4] sm:$0xf] }
 0x230   :  { %3756 = vmatpush.bf16.msrb.mxu0 %v7544_v27  ;;  %v7679_v27 = vld [vmem:[#allocation11 + $0xc0] sm:$0xf]  ;;  %v9159_v34 = vld [vmem:[#allocation11 + $0x3ac] sm:$0xf0] }
 0x232   :  { %3770 = vmatpush.bf16.msrb.mxu1 %v7404_v1  ;;  %3783 = vmatpush.bf16.msrb.mxu2 %v7532_v45  ;;  %v9204_v1 = vld [vmem:[#allocation13 + $0x114] sm:$0xf0]  ;;  %v7920_v45 = vor.u32 %v9127_v42, %v7919_v41  ;;  %v7697_v41 = vld [vmem:[#allocation11 + $0xf0] sm:$0xf0]  ;;  %v9133_v42 = vld [vmem:[#allocation11 + $0x2e4] sm:$0xf] }
 0x233   :  { %v7464_v37 = vor.u32 %v9204_v1, %v7463_v0  ;;  %v9115_v0 = vld [vmem:[#allocation11 + $0x24c] sm:$0xf0]  ;;  %v8079_v1 = vld [vmem:[#allocation11 + $0x3e0] sm:$0xf] }
 0x234   :  { %3757 = vmatpush.bf16.msrb.mxu0 %v7528_v44 }
 0x236   :  { %3771 = vmatpush.bf16.msrb.mxu1 %v7388_v17  ;;  %3784 = vmatpush.bf16.msrb.mxu2 %v7516_v53 }
 0x238   :  { %3758 = vmatpush.bf16.msrb.mxu0 %v7512_v52  ;;  %v7904_v52 = vor.u32 %v9123_v22, %v7903_v31  ;;  %v7775_v22 = vld [vmem:[#allocation11 + $0x180] sm:$0xf] }
 0x23a   :  { %3772 = vmatpush.bf16.msrb.mxu1 %v7372_v36  ;;  %3785 = vmatpush.bf16.msrb.mxu2 %v7500_v10  ;;  %v7680_v36 = vor.u32 %v9067_v32, %v7679_v27  ;;  %v7791_v27 = vld [vmem:[#allocation11 + $0x1a0] sm:$0xf] }
 0x23c   :  { %v2619_v60 = vpop.f32.mrf.mxu0  ;;  %3759 = vmatpush.bf16.msrb.mxu0 %v7496_v39 }
 0x23e   :  { %3773 = vmatpush.bf16.msrb.mxu1 %v7356_v47  ;;  %3786 = vmatpush.bf16.msrb.mxu2 %v7484_v49  ;;  %v7647_v47 = vld [vmem:[#allocation11 + $0x80] sm:$0xf] }
 0x23f   :  { %v7648_v51 = vor.u32 %v9059_v48, %v7647_v47  ;;  %v7871_v49 = vld [vmem:[#allocation11 + $0x240] sm:$0xf]  ;;  %v1711_v47 = vmax.f32 %v9930_v7, 0.0 }
 0x240   :  { %3760 = vmatpush.bf16.msrb.mxu0 %v7480_v61  ;;  %v7823_v61 = vld [vmem:[#allocation11 + $0x1e0] sm:$0xf] }
 0x241   :  { %v7824_v29 = vor.u32 %v9103_v62, %v7823_v61  ;;  %v9151_v61 = vld [vmem:[#allocation11 + $0x36c] sm:$0xf0]  ;;  %v9061_v62 = vld [vmem:[#allocation11 + $0xa4] sm:$0xf] }
 0x242   :  { %3774 = vmatpush.bf16.msrb.mxu1 %v7340_v54  ;;  %v2420_v6 = vpop.f32.mrf.mxu1  ;;  %3787 = vmatpush.bf16.msrb.mxu2 %v7468_v4  ;;  %v9055_v54 = vld [vmem:[#allocation11 + $0x6c] sm:$0xf0]  ;;  %v7599_v4 = vld [vmem:[#allocation11 + $0x20] sm:$0xf] }
 0x243   :  { %v2607_v9 = vadd.f32 %v9979_v14, %v2420_v6  ;;  %v7935_v14 = vld [vmem:[#allocation11 + $0x2c0] sm:$0xf]  ;;  %v7632_v10 = vor.u32 %v9055_v54, %v7631_v30  ;;  %v9047_v6 = vld [vmem:[#allocation11 + $0x2c] sm:$0xf0]  ;;  %v9065_v54 = vld [vmem:[#allocation11 + $0xc4] sm:$0xf] }
 0x244   :  { %v2621_v11 = vpop.f32.mrf.mxu0  ;;  %3761 = vmatpush.bf16.msrb.mxu0 %v7464_v37  ;;  %v7936_v8 = vor.u32 %v9131_v33, %v7935_v14  ;;  %v9095_v14 = vld [vmem:[#allocation11 + $0x1ac] sm:$0xf0]  ;;  %v7839_v33 = vld [vmem:[#allocation11 + $0x200] sm:$0xf]  ;;  %v7684_v57 = vor.u32 %v9065_v54, %v7681_v13 }
 0x245   :  { %v2620_v63 = vadd.f32 %v2619_v60, %v2607_v9  ;;  %v8080_v11 = vor.u32 %v9167_v2, %v8079_v1  ;;  %v8031_v30 = vld [vmem:[#allocation11 + $0x380] sm:$0xf]  ;;  %v7921_v1 = vld [vmem:[#allocation11 + $0x2b0] sm:$0xf0] }
 0x247   :  { %v2655_v17 = vadd.f32 %v2651_v46, %v2620_v63  ;;  %v7872_v46 = vor.u32 %v9115_v0, %v7871_v49  ;;  %v7807_v63 = vld [vmem:[#allocation11 + $0x1c0] sm:$0xf]  ;;  %v7665_v49 = vld [vmem:[#allocation11 + $0xb0] sm:$0xf0]  ;;  %v9125_v0 = vld [vmem:[#allocation11 + $0x2a4] sm:$0xf] }
 0x248   :  { %v2433_v23 = vpop.f32.mrf.mxu2 }
 0x249   :  { %v2657_v24 = vmax.f32 %v2655_v17, 0.0  ;;  %v7855_v17 = vld [vmem:[#allocation11 + $0x220] sm:$0xf] }
 0x24a   :  { %v2422_v16 = vpop.f32.mrf.mxu1 }
 0x24b   :  { %v3303_v28 = vpack.c.bf16 %v2657_v24, %v2657_v24  ;;  %v7600_v24 = vor.u32 %v9047_v6, %v7599_v4  ;;  %v7808_v16 = vor.u32 %v9099_v15, %v7807_v63  ;;  %v7668_v4 = vor.u32 %v9061_v62, %v7665_v49  ;;  %v9057_v63 = vld [vmem:[#allocation11 + $0x84] sm:$0xf]  ;;  %v7649_v15 = vld [vmem:[#allocation11 + $0x90] sm:$0xf0] }
 0x24c   :  { %v7924_v6 = vor.u32 %v9125_v0, %v7921_v1  ;;  %v9041_v62 = vld [vmem:[#allocation11 + $0x4] sm:$0xf] }
 0x24d   :  { %3697 = vmatmul.bf16.vlgmr.msrb.gmra.mxu3 %v3303_v28  ;;  %3723 = vmatmul.bf16.vlgmr.msra.gmra.mxu1 %v3303_v28 }
 0x24e   :  { %4433 = vmatpush.bf16.msrb.mxu3 %v7696_v25  ;;  %4459 = vmatpush.bf16.msra.mxu1 %v7952_v26  ;;  %v7583_v25 = vld [vmem:[#allocation11] sm:$0xf]  ;;  %v9043_v26 = vld [vmem:[#allocation11 + $0xc] sm:$0xf0] }
 0x250   :  { %v2435_v43 = vpop.f32.mrf.mxu2 }
 0x251   :  { %v7953_v43 = vld [vmem:[#allocation11 + $0x2f0] sm:$0xf0] }
 0x252   :  { %4434 = vmatpush.bf16.msrb.mxu3 %v7680_v36  ;;  %4460 = vmatpush.bf16.msra.mxu1 %v7936_v8  ;;  %v2632_v44 = vpop.f32.mrf.mxu1  ;;  %v9107_v36 = vld [vmem:[#allocation11 + $0x20c] sm:$0xf0]  ;;  %v8047_v8 = vld [vmem:[#allocation11 + $0x3a0] sm:$0xf] }
 0x253   :  { %v2633_v53 = vadd.f32 %v2632_v44, %v2433_v23  ;;  %v9163_v23 = vld [vmem:[#allocation11 + $0x3cc] sm:$0xf0]  ;;  %v7584_v44 = vor.u32 %v9043_v26, %v7583_v25  ;;  %v7840_v48 = vor.u32 %v9107_v36, %v7839_v33  ;;  %v8048_v31 = vor.u32 %v9159_v34, %v8047_v8  ;;  %v7983_v26 = vld [vmem:[#allocation11 + $0x320] sm:$0xf]  ;;  %v7889_v33 = vld [vmem:[#allocation11 + $0x270] sm:$0xf0] }
 0x254   :  { %v8064_v32 = vor.u32 %v9163_v23, %v8063_v20  ;;  %v7727_v23 = vld [vmem:[#allocation11 + $0x120] sm:$0xf]  ;;  %v9075_v34 = vld [vmem:[#allocation11 + $0x10c] sm:$0xf0] }
 0x255   :  { %v7711_v36 = vld [vmem:[#allocation11 + $0x100] sm:$0xf] }
 0x256   :  { %4435 = vmatpush.bf16.msrb.mxu3 %v7664_v35  ;;  %4461 = vmatpush.bf16.msra.mxu1 %v7920_v45  ;;  %v7792_v35 = vor.u32 %v9095_v14, %v7791_v27  ;;  %v1709_v45 = vmax.f32 %v9884_v5, 0.0  ;;  %v9143_v27 = vld [vmem:[#allocation11 + $0x32c] sm:$0xf0]  ;;  %v9117_v14 = vld [vmem:[#allocation11 + $0x264] sm:$0xf] }
 0x257   :  { %v7984_v8 = vor.u32 %v9143_v27, %v7983_v26 }
 0x258   :  { %v2645_v55 = vpop.f32.mrf.mxu2  ;;  %v9995_v5 = vpack.c.bf16 %v1709_v45, %v1709_v45  ;;  %v7825_v45 = vld [vmem:[#allocation11 + $0x1f0] sm:$0xf0] }
 0x259   :  { %v2646_v39 = vadd.f32 %v2645_v55, %v2633_v53  ;;  %v9155_v53 = vld [vmem:[#allocation11 + $0x38c] sm:$0xf0]  ;;  %v7937_v55 = vld [vmem:[#allocation11 + $0x2d0] sm:$0xf0] }
 0x25a   :  { %4436 = vmatpush.bf16.msrb.mxu3 %v7648_v51  ;;  %4462 = vmatpush.bf16.msra.mxu1 %v7904_v52  ;;  %v2634_v21 = vpop.f32.mrf.mxu1  ;;  %v7700_v51 = vor.u32 %v9069_v40, %v7697_v41  ;;  %v7956_v52 = vor.u32 %v9133_v42, %v7953_v43  ;;  %v8032_v7 = vor.u32 %v9155_v53, %v8031_v30  ;;  %v7967_v40 = vld [vmem:[#allocation11 + $0x300] sm:$0xf]  ;;  %v9139_v41 = vld [vmem:[#allocation11 + $0x30c] sm:$0xf0]  ;;  %v1712_v30 = vmax.f32 %v9933_v59, 0.0 }
 0x25b   :  { %v2656_v60 = vadd.f32 %v2652_v50, %v2646_v39  ;;  %v9091_v50 = vld [vmem:[#allocation11 + $0x18c] sm:$0xf0]  ;;  %v7759_v21 = vld [vmem:[#allocation11 + $0x160] sm:$0xf]  ;;  %v7940_v58 = vor.u32 %v9129_v12, %v7937_v55  ;;  %v7892_v43 = vor.u32 %v9117_v14, %v7889_v33  ;;  %v7968_v53 = vor.u32 %v9139_v41, %v7967_v40  ;;  %v9045_v55 = vld [vmem:[#allocation11 + $0x24] sm:$0xf] }
 0x25c   :  { %v7776_v39 = vor.u32 %v9091_v50, %v7775_v22  ;;  %v7712_v22 = vor.u32 %v9075_v34, %v7711_v36  ;;  %v9165_v50 = vld [vmem:[#allocation11 + $0x3e4] sm:$0xf]  ;;  %v10007_v49 = vpack.c.bf16 %v1712_v30, %v1712_v30  ;;  %v8033_v14 = vld [vmem:[#allocation11 + $0x390] sm:$0xf0]  ;;  %v9068_v36 = vld [vmem:[#allocation11 + $0xd4] sm:$0xf0] }
 0x25d   :  { %v2658_v37 = vmax.f32 %v2656_v60, 0.0  ;;  %3749 = vmatmul.bf16.vlgmr.msra.gmra.mxu3 %v3303_v28  ;;  %3775 = vmatmul.bf16.vlgmr.msrb.gmra.mxu1 %v3303_v28  ;;  %v7856_v28 = vor.u32 %v9111_v19, %v7855_v17  ;;  %v8015_v60 = vld [vmem:[#allocation11 + $0x360] sm:$0xf]  ;;  %v9121_v17 = vld [vmem:[#allocation11 + $0x284] sm:$0xf] }
 0x25e   :  { %4437 = vmatpush.bf16.msrb.mxu3 %v7632_v10  ;;  %4463 = vmatpush.bf16.msra.mxu1 %v7888_v56  ;;  %v9087_v10 = vld [vmem:[#allocation11 + $0x16c] sm:$0xf0]  ;;  %v9997_v56 = vpack.c.bf16 %v1711_v47, %v1711_v47  ;;  %v7617_v47 = vld [vmem:[#allocation11 + $0x50] sm:$0xf0]  ;;  %v7943_v34 = vld [vmem:[#allocation11 + $0x2c8] sm:$0xf] }
 0x25f   :  { %v9989_v9 = vpack.c.bf16 %v2658_v37, %v2658_v37  ;;  %v7760_v2 = vor.u32 %v9087_v10, %v7759_v21  ;;  %v8016_v37 = vor.u32 %v9151_v61, %v8015_v60  ;;  %v7601_v10 = vld [vmem:[#allocation11 + $0x30] sm:$0xf0]  ;;  %v9161_v60 = vld [vmem:[#allocation11 + $0x3c4] sm:$0xf]  ;;  %v9132_v40 = vld [vmem:[#allocation11 + $0x2d4] sm:$0xf0] }
 0x260   :  { %v2647_v18 = vpop.f32.mrf.mxu2  ;;  %v8065_v61 = vld [vmem:[#allocation11 + $0x3d0] sm:$0xf0]  ;;  %v7604_v0 = vor.u32 %v9045_v55, %v7601_v10  ;;  %v9064_v30 = vld [vmem:[#allocation11 + $0xb4] sm:$0xf0]  ;;  %v9081_v10 = vld [vmem:[#allocation11 + $0x144] sm:$0xf] }
 0x261   :  { %3710 = vmatmul.bf16.vlgmr.msra.gmra.mxu0 %v9989_v9  ;;  %3736 = vmatmul.bf16.vlgmr.msra.gmra.mxu2 %v9989_v9  ;;  %v7905_v18 = vld [vmem:[#allocation11 + $0x290] sm:$0xf0] }
 0x262   :  { %4438 = vmatpush.bf16.msrb.mxu3 %v7616_v3  ;;  %4446 = vmatpush.bf16.msra.mxu0 %v7824_v29  ;;  %v7743_v3 = vld [vmem:[#allocation11 + $0x140] sm:$0xf]  ;;  %v9083_v29 = vld [vmem:[#allocation11 + $0x14c] sm:$0xf0]  ;;  %v7908_v25 = vor.u32 %v9121_v17, %v7905_v18  ;;  %v7959_v18 = vld [vmem:[#allocation11 + $0x2e8] sm:$0xf] }
 0x263   :  { %4464 = vmatpush.bf16.msra.mxu1 %v7872_v46  ;;  %4472 = vmatpush.bf16.msra.mxu2 %v8080_v11  ;;  %v7999_v46 = vld [vmem:[#allocation11 + $0x340] sm:$0xf]  ;;  %v9147_v11 = vld [vmem:[#allocation11 + $0x34c] sm:$0xf0]  ;;  %v7744_v19 = vor.u32 %v9083_v29, %v7743_v3  ;;  %v7793_v3 = vld [vmem:[#allocation11 + $0x1b0] sm:$0xf0]  ;;  %v8068_v29 = vor.u32 %v9161_v60, %v8065_v61 }
 0x264   :  { %v8000_v20 = vor.u32 %v9147_v11, %v7999_v46  ;;  %v9157_v46 = vld [vmem:[#allocation11 + $0x3a4] sm:$0xf]  ;;  %v8049_v11 = vld [vmem:[#allocation11 + $0x3b0] sm:$0xf0] }
 0x265   :  { %v8052_v26 = vor.u32 %v9157_v46, %v8049_v11  ;;  %v9077_v11 = vld [vmem:[#allocation11 + $0x124] sm:$0xf] }
 0x266   :  { %4439 = vmatpush.bf16.msrb.mxu3 %v7600_v24  ;;  %4447 = vmatpush.bf16.msra.mxu0 %v7808_v16  ;;  %v9079_v24 = vld [vmem:[#allocation11 + $0x12c] sm:$0xf0]  ;;  %v7652_v16 = vor.u32 %v9057_v63, %v7649_v15  ;;  %v7703_v63 = vld [vmem:[#allocation11 + $0xe8] sm:$0xf]  ;;  %v9072_v15 = vld [vmem:[#allocation11 + $0xf4] sm:$0xf0] }
 0x267   :  { %4465 = vmatpush.bf16.msra.mxu1 %v7856_v28  ;;  %4473 = vmatpush.bf16.msra.mxu2 %v8064_v32  ;;  %v9053_v28 = vld [vmem:[#allocation11 + $0x64] sm:$0xf]  ;;  %v7633_v32 = vld [vmem:[#allocation11 + $0x70] sm:$0xf0]  ;;  %v7704_v27 = vor.u32 %v9072_v15, %v7703_v63 }
 0x268   :  { %v7636_v42 = vor.u32 %v9053_v28, %v7633_v32  ;;  %v7777_v28 = vld [vmem:[#allocation11 + $0x190] sm:$0xf0]  ;;  %v9153_v32 = vld [vmem:[#allocation11 + $0x384] sm:$0xf] }
 0x269   :  { %v7729_v63 = vld [vmem:[#allocation11 + $0x130] sm:$0xf0]  ;;  %v9141_v15 = vld [vmem:[#allocation11 + $0x324] sm:$0xf] }
 0x26a   :  { %4440 = vmatpush.bf16.msrb.mxu3 %v7584_v44  ;;  %4448 = vmatpush.bf16.msra.mxu0 %v7792_v35  ;;  %v9049_v44 = vld [vmem:[#allocation11 + $0x44] sm:$0xf] }
 0x26b   :  { %4466 = vmatpush.bf16.msra.mxu1 %v7840_v48  ;;  %4474 = vmatpush.bf16.msra.mxu2 %v8048_v31  ;;  %v9101_v35 = vld [vmem:[#allocation11 + $0x1e4] sm:$0xf]  ;;  %v7873_v31 = vld [vmem:[#allocation11 + $0x250] sm:$0xf0]  ;;  %v7620_v13 = vor.u32 %v9049_v44, %v7617_v47  ;;  %v3087_v44 = vpop.f32.mrf.mxu0 }
 0x26c   :  { %v9113_v48 = vld [vmem:[#allocation11 + $0x244] sm:$0xf]  ;;  %v7828_v54 = vor.u32 %v9101_v35, %v7825_v45  ;;  %v8036_v35 = vor.u32 %v9153_v32, %v8033_v14  ;;  %v7969_v14 = vld [vmem:[#allocation11 + $0x310] sm:$0xf0] }
 0x26d   :  { %4441 = vmatmul.bf16.vlgmr.msrb.gmra.mxu3 %v9995_v5  ;;  %v7876_v12 = vor.u32 %v9113_v48, %v7873_v31  ;;  %v9085_v47 = vld [vmem:[#allocation11 + $0x164] sm:$0xf]  ;;  %v7761_v48 = vld [vmem:[#allocation11 + $0x170] sm:$0xf0] }
 0x26e   :  { %4485 = vmatpush.bf16.msra.mxu3 %v7700_v51  ;;  %4449 = vmatpush.bf16.msra.mxu0 %v7776_v39  ;;  %v8081_v51 = vld [vmem:[#allocation11 + $0x3f0] sm:$0xf0]  ;;  %v9097_v39 = vld [vmem:[#allocation11 + $0x1c4] sm:$0xf] }
 0x26f   :  { %4511 = vmatpush.bf16.msrb.mxu1 %v7956_v52  ;;  %4475 = vmatpush.bf16.msra.mxu2 %v8032_v7  ;;  %v1710_v52 = vmax.f32 %v9908_v38, 0.0  ;;  %v7809_v7 = vld [vmem:[#allocation11 + $0x1d0] sm:$0xf0]  ;;  %v8084_v21 = vor.u32 %v9165_v50, %v8081_v51  ;;  %v9149_v31 = vld [vmem:[#allocation11 + $0x364] sm:$0xf]  ;;  %v7944_v50 = vor.u32 %v9132_v40, %v7943_v34 }
 0x270   :  { %4467 = vmatmul.bf16.vlgmr.msra.gmra.mxu1 %v9997_v56  ;;  %v7812_v59 = vor.u32 %v9097_v39, %v7809_v7  ;;  %v8017_v51 = vld [vmem:[#allocation11 + $0x370] sm:$0xf0]  ;;  %v7764_v39 = vor.u32 %v9085_v47, %v7761_v48  ;;  %v9137_v32 = vld [vmem:[#allocation11 + $0x304] sm:$0xf]  ;;  %v7831_v34 = vld [vmem:[#allocation11 + $0x1e8] sm:$0xf] }
 0x271   :  { %3762 = vmatmul.bf16.vlgmr.msrb.gmra.mxu0 %v9989_v9  ;;  %3788 = vmatmul.bf16.vlgmr.msrb.gmra.mxu2 %v9989_v9  ;;  %v7728_v9 = vor.u32 %v9079_v24, %v7727_v23  ;;  %v10005_v38 = vpack.c.bf16 %v1710_v52, %v1710_v52  ;;  %v3113_v23 = vpop.f32.mrf.mxu2  ;;  %v7671_v52 = vld [vmem:[#allocation11 + $0xa8] sm:$0xf]  ;;  %v8020_v7 = vor.u32 %v9149_v31, %v8017_v51  ;;  %v9104_v40 = vld [vmem:[#allocation11 + $0x1f4] sm:$0xf0] }
 0x272   :  { %4486 = vmatpush.bf16.msra.mxu3 %v7684_v57  ;;  %4450 = vmatpush.bf16.msra.mxu0 %v7760_v2  ;;  %v9109_v57 = vld [vmem:[#allocation11 + $0x224] sm:$0xf]  ;;  %v7585_v2 = vld [vmem:[#allocation11 + $0x10] sm:$0xf0]  ;;  %v7832_v48 = vor.u32 %v9104_v40, %v7831_v34  ;;  %v7815_v51 = vld [vmem:[#allocation11 + $0x1c8] sm:$0xf] }
 0x273   :  { %4512 = vmatpush.bf16.msrb.mxu1 %v7940_v58  ;;  %4476 = vmatpush.bf16.msra.mxu2 %v8016_v37  ;;  %v7857_v58 = vld [vmem:[#allocation11 + $0x230] sm:$0xf0]  ;;  %v9093_v37 = vld [vmem:[#allocation11 + $0x1a4] sm:$0xf]  ;;  %v7588_v24 = vor.u32 %v9041_v62, %v7585_v2  ;;  %v7655_v62 = vld [vmem:[#allocation11 + $0x88] sm:$0xf] }
 0x274   :  { %v7860_v1 = vor.u32 %v9109_v57, %v7857_v58  ;;  %v7796_v17 = vor.u32 %v9093_v37, %v7793_v3  ;;  %v7745_v57 = vld [vmem:[#allocation11 + $0x150] sm:$0xf0]  ;;  %v9145_v58 = vld [vmem:[#allocation11 + $0x344] sm:$0xf]  ;;  %v9124_v2 = vld [vmem:[#allocation11 + $0x294] sm:$0xf0] }
 0x275   :  { %v7767_v40 = vld [vmem:[#allocation11 + $0x168] sm:$0xf] }
 0x276   :  { %4487 = vmatpush.bf16.msra.mxu3 %v7668_v4  ;;  %4451 = vmatpush.bf16.msra.mxu0 %v7744_v19  ;;  %v9105_v4 = vld [vmem:[#allocation11 + $0x204] sm:$0xf]  ;;  %v9136_v19 = vld [vmem:[#allocation11 + $0x2f4] sm:$0xf0] }
 0x277   :  { %4513 = vmatpush.bf16.msrb.mxu1 %v7924_v6  ;;  %4477 = vmatpush.bf16.msra.mxu2 %v8000_v20  ;;  %v7841_v6 = vld [vmem:[#allocation11 + $0x210] sm:$0xf0]  ;;  %v3100_v20 = vpop.f32.mrf.mxu1  ;;  %v7960_v33 = vor.u32 %v9136_v19, %v7959_v18  ;;  %v7639_v19 = vld [vmem:[#allocation11 + $0x68] sm:$0xf] }
 0x278   :  { %v7985_v18 = vld [vmem:[#allocation11 + $0x330] sm:$0xf0] }
 0x279   :  { %v3115_v55 = vpop.f32.mrf.mxu2 }
 0x27a   :  { %4488 = vmatpush.bf16.msra.mxu3 %v7652_v16  ;;  %4452 = vmatpush.bf16.msra.mxu0 %v7728_v9  ;;  %v7844_v16 = vor.u32 %v9105_v4, %v7841_v6  ;;  %v7687_v9 = vld [vmem:[#allocation11 + $0xc8] sm:$0xf]  ;;  %v3089_v4 = vpop.f32.mrf.mxu0 }
 0x27b   :  { %4514 = vmatpush.bf16.msrb.mxu1 %v7908_v25  ;;  %4478 = vmatpush.bf16.msra.mxu2 %v7984_v8  ;;  %v9089_v25 = vld [vmem:[#allocation11 + $0x184] sm:$0xf]  ;;  %v10014_v8 = vld [vmem:[%s10138_s15 + $0xc] sm:$0x3]  ;;  %v7688_v45 = vor.u32 %v9068_v36, %v7687_v9  ;;  %v7623_v9 = vld [vmem:[#allocation11 + $0x48] sm:$0xf] }
 0x27c   :  { %v2727_v41 = vperm.slane %v10014_v8, 0  ;;  %v9052_v36 = vld [vmem:[#allocation11 + $0x54] sm:$0xf0]  ;;  %v9134_v4 = vld [vmem:[#allocation11 + $0x2ec] sm:$0xf] }
 0x27d   :  { %v7624_v47 = vor.u32 %v9052_v36, %v7623_v9 }
 0x27e   :  { %4489 = vmatpush.bf16.msra.mxu3 %v7636_v42  ;;  %4453 = vmatpush.bf16.msra.mxu0 %v7712_v22  ;;  %v3074_v42 = vpop.f32.mrf.mxu3 }
 0x27f   :  { %4515 = vmatpush.bf16.msrb.mxu1 %v7892_v43  ;;  %4479 = vmatpush.bf16.msra.mxu2 %v7968_v53  ;;  %v7780_v43 = vor.u32 %v9089_v25, %v7777_v28  ;;  %v3075_v22 = vadd.f32 %v3074_v42, %v2727_v41  ;;  %v7927_v53 = vld [vmem:[#allocation11 + $0x2a8] sm:$0xf]  ;;  %v9073_v25 = vld [vmem:[#allocation11 + $0x104] sm:$0xf]  ;;  %v7713_v28 = vld [vmem:[#allocation11 + $0x110] sm:$0xf0] }
 0x280   :  { %v7879_v41 = vld [vmem:[#allocation11 + $0x248] sm:$0xf]  ;;  %v9116_v42 = vld [vmem:[#allocation11 + $0x254] sm:$0xf0] }
 0x281   :  { %4454 = vmatmul.bf16.vlgmr.msra.gmra.mxu0 %v10005_v38  ;;  %v7880_v31 = vor.u32 %v9116_v42, %v7879_v41  ;;  %v9088_v41 = vld [vmem:[#allocation11 + $0x174] sm:$0xf0]  ;;  %v8023_v42 = vld [vmem:[#allocation11 + $0x368] sm:$0xf] }
 0x282   :  { %4498 = vmatpush.bf16.msrb.mxu0 %v7828_v54  ;;  %4490 = vmatpush.bf16.msra.mxu3 %v7620_v13  ;;  %v9128_v54 = vld [vmem:[#allocation11 + $0x2b4] sm:$0xf0]  ;;  %v3088_v13 = vadd.f32 %v3087_v44, %v3075_v22  ;;  %v8087_v44 = vld [vmem:[#allocation11 + $0x3e8] sm:$0xf]  ;;  %v3139_v9 = vpop.f32.mrf.mxu0 }
 0x283   :  { %4516 = vmatpush.bf16.msrb.mxu1 %v7876_v12  ;;  %4524 = vmatpush.bf16.msrb.mxu2 %v8084_v21  ;;  %v3102_v12 = vpop.f32.mrf.mxu1  ;;  %v7672_v21 = vor.u32 %v9064_v30, %v7671_v52  ;;  %v7928_v61 = vor.u32 %v9128_v54, %v7927_v53  ;;  %v7607_v22 = vld [vmem:[#allocation11 + $0x28] sm:$0xf]  ;;  %v9100_v30 = vld [vmem:[#allocation11 + $0x1d4] sm:$0xf0] }
 0x284   :  { %4480 = vmatmul.bf16.vlgmr.msra.gmra.mxu2 %v10007_v49  ;;  %v3101_v60 = vadd.f32 %v3100_v20, %v3088_v13  ;;  %v9056_v20 = vld [vmem:[#allocation11 + $0x74] sm:$0xf0]  ;;  %v7863_v53 = vld [vmem:[#allocation11 + $0x228] sm:$0xf] }
 0x285   :  { %v9112_v54 = vld [vmem:[#allocation11 + $0x234] sm:$0xf0]  ;;  %v8071_v13 = vld [vmem:[#allocation11 + $0x3c8] sm:$0xf] }
 0x286   :  { %4499 = vmatpush.bf16.msrb.mxu0 %v7812_v59  ;;  %4491 = vmatpush.bf16.msra.mxu3 %v7604_v0  ;;  %v8001_v59 = vld [vmem:[#allocation11 + $0x350] sm:$0xf0]  ;;  %v9060_v0 = vld [vmem:[#allocation11 + $0x94] sm:$0xf0]  ;;  %v10019_v37 = vadd.f32 %v3113_v23, %v3101_v60  ;;  %v3076_v3 = vpop.f32.mrf.mxu3  ;;  %v7732_v23 = vor.u32 %v9077_v11, %v7729_v63  ;;  %v2728_v11 = vperm.slane %v10014_v8, 1 }
 0x287   :  { %4517 = vmatpush.bf16.msrb.mxu1 %v7860_v1  ;;  %4525 = vmatpush.bf16.msrb.mxu2 %v8068_v29  ;;  %v7911_v1 = vld [vmem:[#allocation11 + $0x288] sm:$0xf]  ;;  %v7748_v29 = vor.u32 %v9081_v10, %v7745_v57  ;;  %v8004_v6 = vor.u32 %v9145_v58, %v8001_v59  ;;  %v7656_v46 = vor.u32 %v9060_v0, %v7655_v62  ;;  %v9164_v12 = vld [vmem:[#allocation11 + $0x3d4] sm:$0xf0]  ;;  %v7705_v3 = vld [vmem:[#allocation11 + $0xf8] sm:$0xf0] }
 0x288   :  { %v7864_v10 = vor.u32 %v9112_v54, %v7863_v53  ;;  %v9044_v57 = vld [vmem:[#allocation11 + $0x14] sm:$0xf0]  ;;  %v7799_v58 = vld [vmem:[#allocation11 + $0x1a8] sm:$0xf] }
 0x289   :  { %v9096_v60 = vld [vmem:[#allocation11 + $0x1b4] sm:$0xf0]  ;;  %v7847_v59 = vld [vmem:[#allocation11 + $0x208] sm:$0xf] }
 0x28a   :  { %4500 = vmatpush.bf16.msrb.mxu0 %v7796_v17  ;;  %4492 = vmatpush.bf16.msra.mxu3 %v7588_v24  ;;  %v7912_v17 = vor.u32 %v9124_v2, %v7911_v1  ;;  %v7895_v24 = vld [vmem:[#allocation11 + $0x268] sm:$0xf]  ;;  %v9108_v62 = vld [vmem:[#allocation11 + $0x214] sm:$0xf0]  ;;  %v9070_v2 = vld [vmem:[#allocation11 + $0xec] sm:$0xf] }
 0x28b   :  { %4518 = vmatpush.bf16.msrb.mxu1 %v7844_v16  ;;  %4526 = vmatpush.bf16.msrb.mxu2 %v8052_v26  ;;  %v9120_v16 = vld [vmem:[#allocation11 + $0x274] sm:$0xf0]  ;;  %v7988_v26 = vor.u32 %v9141_v15, %v7985_v18  ;;  %v8055_v0 = vld [vmem:[#allocation11 + $0x3a8] sm:$0xf]  ;;  %v7800_v15 = vor.u32 %v9096_v60, %v7799_v58  ;;  %v9122_v58 = vld [vmem:[#allocation11 + $0x28c] sm:$0xf] }
 0x28c   :  { %v9160_v1 = vld [vmem:[#allocation11 + $0x3b4] sm:$0xf0]  ;;  %v7751_v54 = vld [vmem:[#allocation11 + $0x148] sm:$0xf] }
 0x28d   :  { %4493 = vmatmul.bf16.vlgmr.msra.gmra.mxu3 %v9995_v5  ;;  %v8056_v18 = vor.u32 %v9160_v1, %v8055_v0  ;;  %v7735_v0 = vld [vmem:[#allocation11 + $0x128] sm:$0xf]  ;;  %v9080_v1 = vld [vmem:[#allocation11 + $0x134] sm:$0xf0] }
 0x28e   :  { %4537 = vmatpush.bf16.msrb.mxu3 %v7704_v27  ;;  %4519 = vmatmul.bf16.vlgmr.msrb.gmra.mxu1 %v9997_v56  ;;  %v7640_v27 = vor.u32 %v9056_v20, %v7639_v19  ;;  %v3126_v63 = vpop.f32.mrf.mxu3  ;;  %v7708_v19 = vor.u32 %v9070_v2, %v7705_v3  ;;  %v7783_v20 = vld [vmem:[#allocation11 + $0x188] sm:$0xf] }
 0x28f   :  { %4563 = vmatpush.bf16.msra.mxu1 %v7960_v33  ;;  %4501 = vmatpush.bf16.msrb.mxu0 %v7780_v43  ;;  %v7896_v33 = vor.u32 %v9120_v16, %v7895_v24  ;;  %v7716_v43 = vor.u32 %v9073_v25, %v7713_v28  ;;  %v9092_v24 = vld [vmem:[#allocation11 + $0x194] sm:$0xf0]  ;;  %v8039_v16 = vld [vmem:[#allocation11 + $0x388] sm:$0xf]  ;;  %v7689_v28 = vld [vmem:[#allocation11 + $0xd8] sm:$0xf0] }
 0x290   :  { %4527 = vmatpush.bf16.msrb.mxu2 %v8036_v35  ;;  %v9168_v35 = vld [vmem:[#allocation11 + $0x3f4] sm:$0xf0]  ;;  %v7991_v2 = vld [vmem:[#allocation11 + $0x328] sm:$0xf] }
 0x291   :  { %v8088_v52 = vor.u32 %v9168_v35, %v8087_v44  ;;  %v9152_v35 = vld [vmem:[#allocation11 + $0x374] sm:$0xf0] }
 0x292   :  { %4538 = vmatpush.bf16.msrb.mxu3 %v7688_v45  ;;  %v7972_v45 = vor.u32 %v9137_v32, %v7969_v14  ;;  %v9130_v32 = vld [vmem:[#allocation11 + $0x2cc] sm:$0xf]  ;;  %v7945_v14 = vld [vmem:[#allocation11 + $0x2d8] sm:$0xf0] }
 0x293   :  { %4564 = vmatpush.bf16.msra.mxu1 %v7944_v50  ;;  %4502 = vmatpush.bf16.msrb.mxu0 %v7764_v39  ;;  %v9048_v50 = vld [vmem:[#allocation11 + $0x34] sm:$0xf0]  ;;  %v7591_v39 = vld [vmem:[#allocation11 + $0x8] sm:$0xf]  ;;  %v7948_v44 = vor.u32 %v9130_v32, %v7945_v14  ;;  %v7881_v32 = vld [vmem:[#allocation11 + $0x258] sm:$0xf0] }
 0x294   :  { %4528 = vmatpush.bf16.msrb.mxu2 %v8020_v7  ;;  %v7608_v55 = vor.u32 %v9048_v50, %v7607_v22  ;;  %v10021_v7 = vpop.f32.mrf.mxu1 }
 0x296   :  { %4539 = vmatpush.bf16.msrb.mxu3 %v7672_v21  ;;  %v7816_v21 = vor.u32 %v9100_v30, %v7815_v51  ;;  %v3128_v51 = vpop.f32.mrf.mxu3  ;;  %v8024_v30 = vor.u32 %v9152_v35, %v8023_v42  ;;  %v7609_v42 = vld [vmem:[#allocation11 + $0x38] sm:$0xf0] }
 0x297   :  { %4565 = vmatpush.bf16.msra.mxu1 %v7928_v61  ;;  %4503 = vmatpush.bf16.msrb.mxu0 %v7748_v29  ;;  %v8072_v61 = vor.u32 %v9164_v12, %v8071_v13  ;;  %v7592_v29 = vor.u32 %v9044_v57, %v7591_v39  ;;  %v9084_v13 = vld [vmem:[#allocation11 + $0x154] sm:$0xf0]  ;;  %v8007_v12 = vld [vmem:[#allocation11 + $0x348] sm:$0xf]  ;;  %v7657_v57 = vld [vmem:[#allocation11 + $0x98] sm:$0xf0] }
 0x298   :  { %4529 = vmatpush.bf16.msrb.mxu2 %v8004_v6  ;;  %v7961_v6 = vld [vmem:[#allocation11 + $0x2f8] sm:$0xf0]  ;;  %v7752_v60 = vor.u32 %v9084_v13, %v7751_v54 }
 0x299   :  { %v7964_v25 = vor.u32 %v9134_v4, %v7961_v6  ;;  %v9054_v4 = vld [vmem:[#allocation11 + $0x6c] sm:$0xf]  ;;  %v7641_v6 = vld [vmem:[#allocation11 + $0x78] sm:$0xf0] }
 0x29a   :  { %4540 = vmatpush.bf16.msrb.mxu3 %v7656_v46  ;;  %v3165_v46 = vpop.f32.mrf.mxu2  ;;  %v7817_v35 = vld [vmem:[#allocation11 + $0x1d8] sm:$0xf0] }
 0x29b   :  { %4566 = vmatpush.bf16.msra.mxu1 %v7912_v17  ;;  %4504 = vmatpush.bf16.msrb.mxu0 %v7732_v23  ;;  %v7848_v17 = vor.u32 %v9108_v62, %v7847_v59  ;;  %v3127_v23 = vadd.f32 %v3126_v63, %v2728_v11  ;;  %v7897_v11 = vld [vmem:[#allocation11 + $0x278] sm:$0xf0]  ;;  %v7736_v63 = vor.u32 %v9080_v1, %v7735_v0 }
 0x29c   :  { %4530 = vmatpush.bf16.msrb.mxu2 %v7988_v26  ;;  %v9156_v26 = vld [vmem:[#allocation11 + $0x394] sm:$0xf0]  ;;  %v3154_v8 = vpop.f32.mrf.mxu1  ;;  %v7801_v54 = vld [vmem:[#allocation11 + $0x1b8] sm:$0xf0] }
 0x29d   :  { %v8040_v36 = vor.u32 %v9156_v26, %v8039_v16  ;;  %v9102_v26 = vld [vmem:[#allocation11 + $0x1ec] sm:$0xf] }
 0x29e   :  { %4541 = vmatpush.bf16.msrb.mxu3 %v7640_v27  ;;  %v9066_v27 = vld [vmem:[#allocation11 + $0xcc] sm:$0xf] }
 0x29f   :  { %4567 = vmatpush.bf16.msra.mxu1 %v7896_v33  ;;  %4505 = vmatpush.bf16.msrb.mxu0 %v7716_v43  ;;  %v7784_v33 = vor.u32 %v9092_v24, %v7783_v20  ;;  %v7692_v34 = vor.u32 %v9066_v27, %v7689_v28  ;;  %v3140_v43 = vadd.f32 %v3139_v9, %v3127_v23  ;;  %v7975_v20 = vld [vmem:[#allocation11 + $0x308] sm:$0xf]  ;;  %v9140_v24 = vld [vmem:[#allocation11 + $0x314] sm:$0xf0]  ;;  %v9050_v23 = vld [vmem:[#allocation11 + $0x4c] sm:$0xf] }
 0x2a0   :  { %4531 = vmatpush.bf16.msrb.mxu2 %v7972_v45  ;;  %v9062_v45 = vld [vmem:[#allocation11 + $0xac] sm:$0xf]  ;;  %v7833_v27 = vld [vmem:[#allocation11 + $0x1f8] sm:$0xf0]  ;;  %v7976_v9 = vor.u32 %v9140_v24, %v7975_v20 }
 0x2a1   :  { %v3153_v22 = vadd.f32 %v10021_v7, %v3140_v43  ;;  %v7913_v7 = vld [vmem:[#allocation11 + $0x298] sm:$0xf0]  ;;  %v9114_v28 = vld [vmem:[#allocation11 + $0x24c] sm:$0xf] }
 0x2a2   :  { %4542 = vmatpush.bf16.msrb.mxu3 %v7624_v47  ;;  %4506 = vmatmul.bf16.vlgmr.msrb.gmra.mxu0 %v10005_v38  ;;  %v7673_v47 = vld [vmem:[#allocation11 + $0xb8] sm:$0xf0]  ;;  %v3167_v50 = vpop.f32.mrf.mxu2  ;;  %v7916_v3 = vor.u32 %v9122_v58, %v7913_v7  ;;  %v9166_v8 = vld [vmem:[#allocation11 + $0x3ec] sm:$0xf]  ;;  %v9263_v58 = vld [vmem:[#allocation14 + $0xec] sm:$0xf0] }
 0x2a3   :  { %4550 = vmatpush.bf16.msra.mxu0 %v7832_v48  ;;  %4568 = vmatpush.bf16.msra.mxu1 %v7880_v31  ;;  %v9126_v48 = vld [vmem:[#allocation11 + $0x2ac] sm:$0xf]  ;;  %v7929_v31 = vld [vmem:[#allocation11 + $0x2b8] sm:$0xf0]  ;;  %v7676_v53 = vor.u32 %v9062_v45, %v7673_v47 }
 0x2a4   :  { %4576 = vmatpush.bf16.msra.mxu2 %v8088_v52  ;;  %v7768_v52 = vor.u32 %v9088_v41, %v7767_v40  ;;  %v7932_v39 = vor.u32 %v9126_v48, %v7929_v31  ;;  %v7884_v40 = vor.u32 %v9114_v28, %v7881_v32  ;;  %v9046_v41 = vld [vmem:[#allocation11 + $0x2c] sm:$0xf]  ;;  %v7865_v47 = vld [vmem:[#allocation11 + $0x238] sm:$0xf0]  ;;  %v9253_v28 = vld [vmem:[#allocation14 + $0xa4] sm:$0xf] }
 0x2a5   :  { %4532 = vmatmul.bf16.vlgmr.msrb.gmra.mxu2 %v10007_v49  ;;  %v9098_v43 = vld [vmem:[#allocation11 + $0x1cc] sm:$0xf]  ;;  %v8073_v31 = vld [vmem:[#allocation11 + $0x3d8] sm:$0xf0]  ;;  %v8177_v32 = vld [vmem:[#allocation14 + $0xb0] sm:$0xf0] }
 0x2a6   :  { %4543 = vmatpush.bf16.msrb.mxu3 %v7608_v55  ;;  %v10029_v55 = vadd.f32 %v3165_v46, %v3153_v22  ;;  %v9118_v46 = vld [vmem:[#allocation11 + $0x26c] sm:$0xf]  ;;  %v7612_v22 = vor.u32 %v9046_v41, %v7609_v42  ;;  %v7820_v51 = vor.u32 %v9098_v43, %v7817_v35  ;;  %v7769_v24 = vld [vmem:[#allocation11 + $0x178] sm:$0xf0]  ;;  %v8159_v42 = vld [vmem:[#allocation14 + $0x80] sm:$0xf] }
 0x2a7   :  { %4551 = vmatpush.bf16.msra.mxu0 %v7816_v21  ;;  %4569 = vmatpush.bf16.msra.mxu1 %v7864_v10  ;;  %v9148_v21 = vld [vmem:[#allocation11 + $0x354] sm:$0xf0]  ;;  %v9058_v10 = vld [vmem:[#allocation11 + $0x8c] sm:$0xf]  ;;  %v7900_v16 = vor.u32 %v9118_v46, %v7897_v11  ;;  %v8191_v46 = vld [vmem:[#allocation14 + $0xc0] sm:$0xf] }
 0x2a8   :  { %4577 = vmatpush.bf16.msra.mxu2 %v8072_v61  ;;  %v3141_v61 = vpop.f32.mrf.mxu0  ;;  %v8008_v59 = vor.u32 %v9148_v21, %v8007_v12  ;;  %v7660_v62 = vor.u32 %v9058_v10, %v7657_v57  ;;  %v9110_v45 = vld [vmem:[#allocation11 + $0x22c] sm:$0xf]  ;;  %v8057_v10 = vld [vmem:[#allocation11 + $0x3b8] sm:$0xf0]  ;;  %v8207_v57 = vld [vmem:[#allocation14 + $0xe0] sm:$0xf] }
 0x2a9   :  { %v9162_v48 = vld [vmem:[#allocation11 + $0x3cc] sm:$0xf]  ;;  %v8209_v61 = vld [vmem:[#allocation14 + $0xf0] sm:$0xf0]  ;;  %v8208_v1 = vor.u32 %v9263_v58, %v8207_v57  ;;  %v9259_v11 = vld [vmem:[#allocation14 + $0xcc] sm:$0xf0] }
 0x2aa   :  { %4544 = vmatpush.bf16.msrb.mxu3 %v7592_v29  ;;  %v9144_v29 = vld [vmem:[#allocation11 + $0x334] sm:$0xf0]  ;;  %v9042_v50 = vld [vmem:[#allocation11 + $0xc] sm:$0xf]  ;;  %v8076_v13 = vor.u32 %v9162_v48, %v8073_v31  ;;  %v8009_v41 = vld [vmem:[#allocation11 + $0x358] sm:$0xf0] }
 0x2ab   :  { %4552 = vmatpush.bf16.msra.mxu0 %v7800_v15  ;;  %4570 = vmatpush.bf16.msra.mxu1 %v7848_v17  ;;  %v7719_v15 = vld [vmem:[#allocation11 + $0x108] sm:$0xf]  ;;  %v7992_v17 = vor.u32 %v9144_v29, %v7991_v2  ;;  %v9106_v12 = vld [vmem:[#allocation11 + $0x20c] sm:$0xf]  ;;  %v9251_v43 = vld [vmem:[#allocation14 + $0x8c] sm:$0xf0] }
 0x2ac   :  { %4578 = vmatpush.bf16.msra.mxu2 %v8056_v18  ;;  %v7644_v18 = vor.u32 %v9054_v4, %v7641_v6  ;;  %v9158_v21 = vld [vmem:[#allocation11 + $0x3ac] sm:$0xf]  ;;  %v8041_v6 = vld [vmem:[#allocation11 + $0x398] sm:$0xf0] }
 0x2ad   :  { %4545 = vmatmul.bf16.vlgmr.msrb.gmra.mxu3 %v9995_v5  ;;  %v8060_v0 = vor.u32 %v9158_v21, %v8057_v10  ;;  %v9090_v2 = vld [vmem:[#allocation11 + $0x18c] sm:$0xf]  ;;  %v7737_v31 = vld [vmem:[#allocation11 + $0x138] sm:$0xf0] }
 0x2ae   :  { %4589 = vmatpush.bf16.msra.mxu3 %v7708_v19  ;;  %4571 = vmatmul.bf16.vlgmr.msra.gmra.mxu1 %v9997_v56  ;;  %v9076_v19 = vld [vmem:[#allocation11 + $0x114] sm:$0xf0]  ;;  %v9154_v29 = vld [vmem:[#allocation11 + $0x38c] sm:$0xf]  ;;  %v7721_v57 = vld [vmem:[#allocation11 + $0x118] sm:$0xf0] }
 0x2af   :  { %4615 = vmatpush.bf16.msrb.mxu1 %v7964_v25  ;;  %4553 = vmatpush.bf16.msra.mxu0 %v7784_v33  ;;  %v7625_v25 = vld [vmem:[#allocation11 + $0x58] sm:$0xf0]  ;;  %v7720_v14 = vor.u32 %v9076_v19, %v7719_v15  ;;  %v8193_v15 = vld [vmem:[#allocation14 + $0xd0] sm:$0xf0]  ;;  %v8192_v19 = vor.u32 %v9259_v11, %v8191_v46  ;;  %v9086_v20 = vld [vmem:[#allocation11 + $0x16c] sm:$0xf] }
 0x2b0   :  { %4579 = vmatpush.bf16.msra.mxu2 %v8040_v36  ;;  %v8089_v33 = vld [vmem:[#allocation11 + $0x3f8] sm:$0xf0]  ;;  %v7628_v36 = vor.u32 %v9050_v23, %v7625_v25  ;;  %v9078_v48 = vld [vmem:[#allocation11 + $0x12c] sm:$0xf] }
 0x2b1   :  { %v8025_v25 = vld [vmem:[#allocation11 + $0x378] sm:$0xf0]  ;;  %v9138_v58 = vld [vmem:[#allocation11 + $0x30c] sm:$0xf] }
 0x2b2   :  { %4590 = vmatpush.bf16.msra.mxu3 %v7692_v34  ;;  %v7836_v34 = vor.u32 %v9102_v26, %v7833_v27  ;;  %v8175_v26 = vld [vmem:[#allocation14 + $0xa0] sm:$0xf]  ;;  %v9255_v27 = vld [vmem:[#allocation14 + $0xac] sm:$0xf0] }
 0x2b3   :  { %4616 = vmatpush.bf16.msrb.mxu1 %v7948_v44  ;;  %4554 = vmatpush.bf16.msra.mxu0 %v7768_v52  ;;  %v8092_v44 = vor.u32 %v9166_v8, %v8089_v33  ;;  %v7868_v52 = vor.u32 %v9110_v45, %v7865_v47  ;;  %v8176_v33 = vor.u32 %v9255_v27, %v8175_v26  ;;  %v9289_v26 = vld [vmem:[#allocation14 + $0x1c4] sm:$0xf]  ;;  %v8321_v27 = vld [vmem:[#allocation14 + $0x1d0] sm:$0xf0] }
 0x2b4   :  { %4580 = vmatpush.bf16.msra.mxu2 %v8024_v30  ;;  %v7593_v30 = vld [vmem:[#allocation11 + $0x18] sm:$0xf0]  ;;  %v8160_v47 = vor.u32 %v9251_v43, %v8159_v42  ;;  %v8097_v42 = vld [vmem:[#allocation14 + $0x10] sm:$0xf0]  ;;  %v9285_v43 = vld [vmem:[#allocation14 + $0x1a4] sm:$0xf] }
 0x2b5   :  { %v7596_v7 = vor.u32 %v9042_v50, %v7593_v30  ;;  %v9247_v30 = vld [vmem:[#allocation14 + $0x6c] sm:$0xf0] }
 0x2b6   :  { %4591 = vmatpush.bf16.msra.mxu3 %v7676_v53  ;;  %v9094_v53 = vld [vmem:[#allocation11 + $0x1ac] sm:$0xf] }
 0x2b7   :  { %4617 = vmatpush.bf16.msrb.mxu1 %v7932_v39  ;;  %4555 = vmatpush.bf16.msra.mxu0 %v7752_v60  ;;  %v7849_v39 = vld [vmem:[#allocation11 + $0x218] sm:$0xf0]  ;;  %v9261_v60 = vld [vmem:[#allocation14 + $0xe4] sm:$0xf] }
 0x2b8   :  { %4581 = vmatpush.bf16.msra.mxu2 %v8008_v59  ;;  %v7804_v59 = vor.u32 %v9094_v53, %v7801_v54  ;;  %v8212_v4 = vor.u32 %v9261_v60, %v8209_v61  ;;  %v9245_v53 = vld [vmem:[#allocation14 + $0x64] sm:$0xf]  ;;  %v8145_v54 = vld [vmem:[#allocation14 + $0x70] sm:$0xf0] }
 0x2b9   :  { %v8148_v60 = vor.u32 %v9245_v53, %v8145_v54  ;;  %v9283_v53 = vld [vmem:[#allocation14 + $0x18c] sm:$0xf0]  ;;  %v9281_v54 = vld [vmem:[#allocation14 + $0x184] sm:$0xf] }
 0x2ba   :  { %4592 = vmatpush.bf16.msra.mxu3 %v7660_v62  ;;  %v7852_v62 = vor.u32 %v9106_v12, %v7849_v39  ;;  %v7740_v12 = vor.u32 %v9078_v48, %v7737_v31  ;;  %v9074_v39 = vld [vmem:[#allocation11 + $0x10c] sm:$0xf]  ;;  %v8217_v48 = vld [vmem:[#allocation14 + $0xf8] sm:$0xf0]  ;;  %v3169_v31 = vmax.f32 %v10019_v37, 0.0 }
 0x2bb   :  { %4618 = vmatpush.bf16.msrb.mxu1 %v7916_v3  ;;  %4556 = vmatpush.bf16.msra.mxu0 %v7736_v63  ;;  %v7785_v3 = vld [vmem:[#allocation11 + $0x198] sm:$0xf0]  ;;  %v9257_v63 = vld [vmem:[#allocation14 + $0xc4] sm:$0xf]  ;;  %v9260_v37 = vld [vmem:[#allocation14 + $0xd4] sm:$0xf0] }
 0x2bc   :  { %4582 = vmatpush.bf16.msra.mxu2 %v7992_v17  ;;  %v7788_v17 = vor.u32 %v9090_v2, %v7785_v3  ;;  %v8196_v23 = vor.u32 %v9257_v63, %v8193_v15  ;;  %v9241_v2 = vld [vmem:[#allocation14 + $0x44] sm:$0xf]  ;;  %v8129_v3 = vld [vmem:[#allocation14 + $0x50] sm:$0xf0] }
 0x2bd   :  { %v8132_v15 = vor.u32 %v9241_v2, %v8129_v3 }
 0x2be   :  { %4593 = vmatpush.bf16.msra.mxu3 %v7644_v18  ;;  %v8044_v18 = vor.u32 %v9154_v29, %v8041_v6  ;;  %v7724_v29 = vor.u32 %v9074_v39, %v7721_v57  ;;  %v8337_v6 = vld [vmem:[#allocation14 + $0x1f0] sm:$0xf0]  ;;  %v9258_v57 = vld [vmem:[#allocation14 + $0xcc] sm:$0xf] }
 0x2bf   :  { %4619 = vmatpush.bf16.msrb.mxu1 %v7900_v16  ;;  %4557 = vmatpush.bf16.msra.mxu0 %v7720_v14  ;;  %v9150_v16 = vld [vmem:[#allocation11 + $0x36c] sm:$0xf]  ;;  %v7772_v14 = vor.u32 %v9086_v20, %v7769_v24  ;;  %v9291_v24 = vld [vmem:[#allocation14 + $0x1cc] sm:$0xf0] }
 0x2c0   :  { %4583 = vmatpush.bf16.msra.mxu2 %v7976_v9  ;;  %v8028_v8 = vor.u32 %v9150_v16, %v8025_v25  ;;  %v9082_v9 = vld [vmem:[#allocation11 + $0x14c] sm:$0xf]  ;;  %v9237_v16 = vld [vmem:[#allocation14 + $0x24] sm:$0xf] }
 0x2c2   :  { %4594 = vmatpush.bf16.msra.mxu3 %v7628_v36  ;;  %4558 = vmatmul.bf16.vlgmr.msra.gmra.mxu0 %v10005_v38  ;;  %v7753_v36 = vld [vmem:[#allocation11 + $0x158] sm:$0xf0] }
 0x2c3   :  { %4602 = vmatpush.bf16.msrb.mxu0 %v7836_v34  ;;  %4620 = vmatpush.bf16.msrb.mxu1 %v7884_v40  ;;  %v9146_v34 = vld [vmem:[#allocation11 + $0x34c] sm:$0xf]  ;;  %v8180_v40 = vor.u32 %v9253_v28, %v8177_v32  ;;  %v7756_v35 = vor.u32 %v9082_v9, %v7753_v36  ;;  %v8095_v32 = vld [vmem:[#allocation14] sm:$0xf]  ;;  %v9235_v9 = vld [vmem:[#allocation14 + $0xc] sm:$0xf0] }
 0x2c4   :  { %4628 = vmatpush.bf16.msrb.mxu2 %v8092_v44  ;;  %v9249_v44 = vld [vmem:[#allocation14 + $0x84] sm:$0xf]  ;;  %v8012_v45 = vor.u32 %v9146_v34, %v8009_v41  ;;  %v8303_v36 = vld [vmem:[#allocation14 + $0x1a0] sm:$0xf]  ;;  %v9287_v34 = vld [vmem:[#allocation14 + $0x1ac] sm:$0xf0] }
 0x2c5   :  { %4584 = vmatmul.bf16.vlgmr.msra.gmra.mxu2 %v10007_v49  ;;  %v9233_v41 = vld [vmem:[#allocation14 + $0x4] sm:$0xf] }
 0x2c6   :  { %4595 = vmatpush.bf16.msra.mxu3 %v7612_v22  ;;  %v9142_v22 = vld [vmem:[#allocation11 + $0x32c] sm:$0xf] }
 0x2c7   :  { %4603 = vmatpush.bf16.msrb.mxu0 %v7820_v51  ;;  %4621 = vmatpush.bf16.msrb.mxu1 %v7868_v52  ;;  %v7993_v51 = vld [vmem:[#allocation11 + $0x338] sm:$0xf0]  ;;  %v8143_v52 = vld [vmem:[#allocation14 + $0x60] sm:$0xf] }
 0x2c8   :  { %4629 = vmatpush.bf16.msrb.mxu2 %v8076_v13  ;;  %v7996_v21 = vor.u32 %v9142_v22, %v7993_v51  ;;  %v8144_v10 = vor.u32 %v9247_v30, %v8143_v52  ;;  %v8304_v22 = vor.u32 %v9287_v34, %v8303_v36  ;;  %v8287_v30 = vld [vmem:[#allocation14 + $0x180] sm:$0xf] }
 0x2c9   :  { %v8239_v34 = vld [vmem:[#allocation14 + $0x120] sm:$0xf] }
 0x2ca   :  { %4596 = vmatpush.bf16.msra.mxu3 %v7596_v7  ;;  %v7977_v7 = vld [vmem:[#allocation11 + $0x318] sm:$0xf0] }
 0x2cb   :  { %4604 = vmatpush.bf16.msrb.mxu0 %v7804_v59  ;;  %4622 = vmatpush.bf16.msrb.mxu1 %v7852_v62  ;;  %v8127_v59 = vld [vmem:[#allocation14 + $0x40] sm:$0xf]  ;;  %v9243_v62 = vld [vmem:[#allocation14 + $0x4c] sm:$0xf0]  ;;  %v7980_v46 = vor.u32 %v9138_v58, %v7977_v7  ;;  %v8201_v58 = vld [vmem:[#allocation14 + $0xd8] sm:$0xf0]  ;;  %v10049_v7 = vpack.c.bf16 %v3169_v31, %v3169_v31 }
 0x2cc   :  { %4630 = vmatpush.bf16.msrb.mxu2 %v8060_v0  ;;  %v8335_v0 = vld [vmem:[#allocation14 + $0x1e0] sm:$0xf]  ;;  %v8128_v11 = vor.u32 %v9243_v62, %v8127_v59  ;;  %v8204_v2 = vor.u32 %v9258_v57, %v8201_v58  ;;  %v9296_v58 = vld [vmem:[#allocation14 + $0x1f4] sm:$0xf0] }
 0x2cd   :  { %4597 = vmatmul.bf16.vlgmr.msra.gmra.mxu3 %v9995_v5  ;;  %v10035_v5 = vpop.f32.mrf.mxu1  ;;  %v8271_v62 = vld [vmem:[#allocation14 + $0x160] sm:$0xf] }
 0x2ce   :  { %5027 = vmatpush.bf16.msrb.mxu3 %v8208_v1  ;;  %4623 = vmatmul.bf16.vlgmr.msrb.gmra.mxu1 %v9997_v56  ;;  %v8161_v56 = vld [vmem:[#allocation14 + $0x90] sm:$0xf0]  ;;  %v9295_v1 = vld [vmem:[#allocation14 + $0x1ec] sm:$0xf0] }
 0x2cf   :  { %5053 = vmatpush.bf16.msra.mxu1 %v8212_v4  ;;  %4605 = vmatpush.bf16.msrb.mxu0 %v7788_v17  ;;  %v8164_v50 = vor.u32 %v9249_v44, %v8161_v56  ;;  %v9293_v4 = vld [vmem:[#allocation14 + $0x1e4] sm:$0xf]  ;;  %v8336_v63 = vor.u32 %v9295_v1, %v8335_v0  ;;  %v8111_v17 = vld [vmem:[#allocation14 + $0x20] sm:$0xf]  ;;  %v8305_v44 = vld [vmem:[#allocation14 + $0x1b0] sm:$0xf0] }
 0x2d0   :  { %4631 = vmatpush.bf16.msrb.mxu2 %v8044_v18  ;;  %v10037_v13 = vpop.f32.mrf.mxu3  ;;  %v9239_v18 = vld [vmem:[#allocation14 + $0x2c] sm:$0xf0]  ;;  %v8340_v20 = vor.u32 %v9293_v4, %v8337_v6  ;;  %v8215_v56 = vld [vmem:[#allocation14 + $0xe8] sm:$0xf]  ;;  %v8308_v51 = vor.u32 %v9285_v43, %v8305_v44  ;;  %v9277_v1 = vld [vmem:[#allocation14 + $0x164] sm:$0xf] }
 0x2d1   :  { %v8112_v28 = vor.u32 %v9239_v18, %v8111_v17  ;;  %v9279_v0 = vld [vmem:[#allocation14 + $0x16c] sm:$0xf0]  ;;  %v8183_v4 = vld [vmem:[#allocation14 + $0xa8] sm:$0xf]  ;;  %v9256_v6 = vld [vmem:[#allocation14 + $0xb4] sm:$0xf0] }
 0x2d2   :  { %5028 = vmatpush.bf16.msrb.mxu3 %v8192_v19  ;;  %v8319_v19 = vld [vmem:[#allocation14 + $0x1c0] sm:$0xf]  ;;  %v8241_v44 = vld [vmem:[#allocation14 + $0x130] sm:$0xf0] }
 0x2d3   :  { %5054 = vmatpush.bf16.msra.mxu1 %v8196_v23  ;;  %4606 = vmatpush.bf16.msrb.mxu0 %v7772_v14  ;;  %v8113_v23 = vld [vmem:[#allocation14 + $0x30] sm:$0xf0]  ;;  %v8320_v14 = vor.u32 %v9291_v24, %v8319_v19  ;;  %v8184_v19 = vor.u32 %v9256_v6, %v8183_v4  ;;  %v9275_v24 = vld [vmem:[#allocation14 + $0x14c] sm:$0xf0]  ;;  %v9240_v6 = vld [vmem:[#allocation14 + $0x34] sm:$0xf0] }
 0x2d4   :  { %4632 = vmatpush.bf16.msrb.mxu2 %v8028_v8  ;;  %v8116_v8 = vor.u32 %v9237_v16, %v8113_v23  ;;  %v9273_v16 = vld [vmem:[#allocation14 + $0x144] sm:$0xf] }
 0x2d5   :  { %v3726_v61 = vpop.f32.mrf.mxu1 }
 0x2d6   :  { %5029 = vmatpush.bf16.msrb.mxu3 %v8176_v33 }
 0x2d7   :  { %5055 = vmatpush.bf16.msra.mxu1 %v8180_v40  ;;  %4607 = vmatpush.bf16.msrb.mxu0 %v7756_v35  ;;  %v8324_v40 = vor.u32 %v9289_v26, %v8321_v27  ;;  %v9264_v35 = vld [vmem:[#allocation14 + $0xf4] sm:$0xf0]  ;;  %v8257_v26 = vld [vmem:[#allocation14 + $0x150] sm:$0xf0]  ;;  %v8167_v27 = vld [vmem:[#allocation14 + $0x88] sm:$0xf] }
 0x2d8   :  { %4633 = vmatpush.bf16.msrb.mxu2 %v8012_v45  ;;  %v3700_v25 = vpop.f32.mrf.mxu3  ;;  %v8096_v45 = vor.u32 %v9235_v9, %v8095_v32  ;;  %v8169_v32 = vld [vmem:[#allocation14 + $0x98] sm:$0xf0] }
 0x2da   :  { %5030 = vmatpush.bf16.msrb.mxu3 %v8160_v47  ;;  %v9262_v47 = vld [vmem:[#allocation14 + $0xec] sm:$0xf] }
 0x2db   :  { %5056 = vmatpush.bf16.msra.mxu1 %v8164_v50  ;;  %4608 = vmatpush.bf16.msrb.mxu0 %v7740_v12  ;;  %v8100_v50 = vor.u32 %v9233_v41, %v8097_v42  ;;  %v8220_v12 = vor.u32 %v9262_v47, %v8217_v48  ;;  %v9269_v41 = vld [vmem:[#allocation14 + $0x124] sm:$0xf]  ;;  %v8153_v47 = vld [vmem:[#allocation14 + $0x78] sm:$0xf0] }
 0x2dc   :  { %4634 = vmatpush.bf16.msrb.mxu2 %v7996_v21  ;;  %v8289_v21 = vld [vmem:[#allocation14 + $0x190] sm:$0xf0] }
 0x2dd   :  { %v10039_v33 = vpop.f32.mrf.mxu1  ;;  %v8292_v61 = vor.u32 %v9281_v54, %v8289_v21  ;;  %v8135_v21 = vld [vmem:[#allocation14 + $0x48] sm:$0xf] }
 0x2de   :  { %5031 = vmatpush.bf16.msrb.mxu3 %v8144_v10  ;;  %v8199_v10 = vld [vmem:[#allocation14 + $0xc8] sm:$0xf] }
 0x2df   :  { %5057 = vmatpush.bf16.msra.mxu1 %v8148_v60  ;;  %4609 = vmatpush.bf16.msrb.mxu0 %v7724_v29  ;;  %v8288_v60 = vor.u32 %v9283_v53, %v8287_v30  ;;  %v8200_v59 = vor.u32 %v9260_v37, %v8199_v10  ;;  %v8273_v29 = vld [vmem:[#allocation14 + $0x170] sm:$0xf0]  ;;  %v9265_v30 = vld [vmem:[#allocation14 + $0x104] sm:$0xf]  ;;  %v9244_v10 = vld [vmem:[#allocation14 + $0x54] sm:$0xf0] }
 0x2e0   :  { %4635 = vmatpush.bf16.msrb.mxu2 %v7980_v46  ;;  %v10047_v39 = vpop.f32.mrf.mxu3  ;;  %v8276_v18 = vor.u32 %v9277_v1, %v8273_v29  ;;  %v8225_v53 = vld [vmem:[#allocation14 + $0x110] sm:$0xf0]  ;;  %v8343_v37 = vld [vmem:[#allocation14 + $0x1e8] sm:$0xf] }
 0x2e2   :  { %5032 = vmatpush.bf16.msrb.mxu3 %v8128_v11  ;;  %4610 = vmatmul.bf16.vlgmr.msrb.gmra.mxu0 %v10005_v38  ;;  %v3711_v38 = vpop.f32.mrf.mxu0  ;;  %v9254_v11 = vld [vmem:[#allocation14 + $0xac] sm:$0xf] }
 0x2e3   :  { %5040 = vmatpush.bf16.msra.mxu0 %v8336_v63  ;;  %5058 = vmatpush.bf16.msra.mxu1 %v8132_v15  ;;  %v10045_v52 = vadd.f32 %v3711_v38, %v10037_v13  ;;  %v8185_v63 = vld [vmem:[#allocation14 + $0xb8] sm:$0xf0]  ;;  %v8272_v15 = vor.u32 %v9279_v0, %v8271_v62  ;;  %v3170_v62 = vmax.f32 %v10029_v55, 0.0  ;;  %v8228_v0 = vor.u32 %v9265_v30, %v8225_v53  ;;  %v9280_v30 = vld [vmem:[#allocation14 + $0x174] sm:$0xf0] }
 0x2e4   :  { %5066 = vmatpush.bf16.msra.mxu2 %v8340_v20  ;;  %v3737_v3 = vpop.f32.mrf.mxu2  ;;  %v8255_v20 = vld [vmem:[#allocation14 + $0x140] sm:$0xf]  ;;  %v8188_v23 = vor.u32 %v9254_v11, %v8185_v63  ;;  %v8327_v11 = vld [vmem:[#allocation14 + $0x1c8] sm:$0xf] }
 0x2e5   :  { %4636 = vmatmul.bf16.vlgmr.msrb.gmra.mxu2 %v10007_v49  ;;  %v8216_v49 = vor.u32 %v9264_v35, %v8215_v56  ;;  %v3778_v13 = vpop.f32.mrf.mxu1  ;;  %v10054_v46 = vadd.f32 %v3737_v3, %v10035_v5  ;;  %v9250_v5 = vld [vmem:[#allocation14 + $0x8c] sm:$0xf]  ;;  %v8151_v56 = vld [vmem:[#allocation14 + $0x68] sm:$0xf]  ;;  %v9248_v35 = vld [vmem:[#allocation14 + $0x74] sm:$0xf0]  ;;  %v8344_v3 = vor.u32 %v9296_v58, %v8343_v37 }
 0x2e6   :  { %5033 = vmatpush.bf16.msrb.mxu3 %v8112_v28  ;;  %v9252_v28 = vld [vmem:[#allocation14 + $0x94] sm:$0xf0]  ;;  %v8172_v42 = vor.u32 %v9250_v5, %v8169_v32  ;;  %v8137_v13 = vld [vmem:[#allocation14 + $0x58] sm:$0xf0]  ;;  %v8311_v5 = vld [vmem:[#allocation14 + $0x1a8] sm:$0xf] }
 0x2e7   :  { %5041 = vmatpush.bf16.msra.mxu0 %v8320_v14  ;;  %5059 = vmatpush.bf16.msra.mxu1 %v8116_v8  ;;  %v8256_v14 = vor.u32 %v9275_v24, %v8255_v20  ;;  %v8260_v8 = vor.u32 %v9273_v16, %v8257_v26  ;;  %v8168_v36 = vor.u32 %v9252_v28, %v8167_v27  ;;  %v9290_v20 = vld [vmem:[#allocation14 + $0x1cc] sm:$0xf]  ;;  %v8329_v24 = vld [vmem:[#allocation14 + $0x1d8] sm:$0xf0]  ;;  %v8103_v28 = vld [vmem:[#allocation14 + $0x8] sm:$0xf] }
 0x2e8   :  { %5067 = vmatpush.bf16.msra.mxu2 %v8324_v40  ;;  %v3752_v25 = vpop.f32.mrf.mxu3  ;;  %v9271_v40 = vld [vmem:[#allocation14 + $0x12c] sm:$0xf0]  ;;  %v10068_v16 = vpack.c.bf16 %v3170_v62, %v3170_v62  ;;  %v8332_v32 = vor.u32 %v9290_v20, %v8329_v24  ;;  %v9276_v58 = vld [vmem:[#allocation14 + $0x154] sm:$0xf0] }
 0x2e9   :  { %v8240_v48 = vor.u32 %v9271_v40, %v8239_v34  ;;  %v9286_v34 = vld [vmem:[#allocation14 + $0x1ac] sm:$0xf]  ;;  %v8313_v40 = vld [vmem:[#allocation14 + $0x1b8] sm:$0xf0] }
 0x2ea   :  { %5034 = vmatpush.bf16.msrb.mxu3 %v8096_v45  ;;  %v3713_v17 = vpop.f32.mrf.mxu0  ;;  %v9246_v45 = vld [vmem:[#allocation14 + $0x6c] sm:$0xf] }
 0x2eb   :  { %5042 = vmatpush.bf16.msra.mxu0 %v8304_v22  ;;  %5060 = vmatpush.bf16.msra.mxu1 %v8100_v50  ;;  %v8223_v22 = vld [vmem:[#allocation14 + $0x100] sm:$0xf]  ;;  %v8244_v50 = vor.u32 %v9269_v41, %v8241_v44  ;;  %v8156_v54 = vor.u32 %v9246_v45, %v8153_v47  ;;  %v9292_v17 = vld [vmem:[#allocation14 + $0x1d4] sm:$0xf0] }
 0x2ec   :  { %5068 = vmatpush.bf16.msra.mxu2 %v8308_v51  ;;  %v3739_v43 = vpop.f32.mrf.mxu2  ;;  %v8152_v51 = vor.u32 %v9248_v35, %v8151_v56  ;;  %v8328_v25 = vor.u32 %v9292_v17, %v8327_v11  ;;  %v8316_v56 = vor.u32 %v9286_v34, %v8313_v40  ;;  %v8295_v35 = vld [vmem:[#allocation14 + $0x188] sm:$0xf]  ;;  %v9284_v45 = vld [vmem:[#allocation14 + $0x194] sm:$0xf0]  ;;  %v8233_v17 = vld [vmem:[#allocation14 + $0x118] sm:$0xf0] }
 0x2ed   :  { %5035 = vmatmul.bf16.vlgmr.msrb.gmra.mxu3 %v10049_v7  ;;  %v10056_v9 = vpop.f32.mrf.mxu1  ;;  %v9312_v34 = vld [vmem:[#allocation16 + $0x74] sm:$0xf0] }
 0x2ee   :  { %5079 = vmatpush.bf16.msra.mxu3 %v8216_v49  ;;  %5061 = vmatmul.bf16.vlgmr.msra.gmra.mxu1 %v10049_v7  ;;  %v9267_v49 = vld [vmem:[#allocation14 + $0x10c] sm:$0xf0] }
 0x2ef   :  { %5105 = vmatpush.bf16.msrb.mxu1 %v8220_v12  ;;  %5043 = vmatpush.bf16.msra.mxu0 %v8288_v60  ;;  %v9242_v60 = vld [vmem:[#allocation14 + $0x4c] sm:$0xf] }
 0x2f0   :  { %5069 = vmatpush.bf16.msra.mxu2 %v8292_v61  ;;  %v4442_v12 = vpop.f32.mrf.mxu3  ;;  %v8224_v61 = vor.u32 %v9267_v49, %v8223_v22  ;;  %v8140_v29 = vor.u32 %v9242_v60, %v8137_v13  ;;  %v8279_v49 = vld [vmem:[#allocation14 + $0x168] sm:$0xf] }
 0x2f1   :  { %v10062_v57 = vadd.f32 %v4442_v12, %v10045_v52  ;;  %v8119_v52 = vld [vmem:[#allocation14 + $0x28] sm:$0xf]  ;;  %v8281_v12 = vld [vmem:[#allocation14 + $0x178] sm:$0xf0] }
 0x2f2   :  { %5080 = vmatpush.bf16.msra.mxu3 %v8200_v59  ;;  %v3763_v31 = vpop.f32.mrf.mxu0  ;;  %v8345_v59 = vld [vmem:[#allocation14 + $0x1f8] sm:$0xf0] }
 0x2f3   :  { %5106 = vmatpush.bf16.msrb.mxu1 %v8204_v2  ;;  %5044 = vmatpush.bf16.msra.mxu0 %v8272_v15  ;;  %v10059_v38 = vadd.f32 %v3763_v31, %v10047_v39  ;;  %v9294_v39 = vld [vmem:[#allocation14 + $0x1ec] sm:$0xf]  ;;  %v8136_v2 = vor.u32 %v9244_v10, %v8135_v21  ;;  %v8297_v31 = vld [vmem:[#allocation14 + $0x198] sm:$0xf0]  ;;  %v8280_v21 = vor.u32 %v9280_v30, %v8279_v49  ;;  %v8383_v30 = vld [vmem:[#allocation16 + $0x40] sm:$0xf] }
 0x2f4   :  { %5070 = vmatpush.bf16.msra.mxu2 %v8276_v18  ;;  %v3789_v4 = vpop.f32.mrf.mxu2  ;;  %v8348_v63 = vor.u32 %v9294_v39, %v8345_v59  ;;  %v9238_v18 = vld [vmem:[#allocation14 + $0x2c] sm:$0xf]  ;;  %v8265_v39 = vld [vmem:[#allocation14 + $0x158] sm:$0xf0] }
 0x2f5   :  { %v4470_v1 = vpop.f32.mrf.mxu1  ;;  %v10066_v15 = vadd.f32 %v3789_v4, %v10039_v33  ;;  %v9236_v33 = vld [vmem:[#allocation14 + $0x14] sm:$0xf0] }
 0x2f6   :  { %5081 = vmatpush.bf16.msra.mxu3 %v8184_v19  ;;  %v8121_v19 = vld [vmem:[#allocation14 + $0x38] sm:$0xf0]  ;;  %v8104_v41 = vor.u32 %v9236_v33, %v8103_v28  ;;  %v9272_v1 = vld [vmem:[#allocation14 + $0x134] sm:$0xf0] }
 0x2f7   :  { %5107 = vmatpush.bf16.msrb.mxu1 %v8188_v23  ;;  %5045 = vmatpush.bf16.msra.mxu0 %v8256_v14  ;;  %v8120_v23 = vor.u32 %v9240_v6, %v8119_v52  ;;  %v8124_v26 = vor.u32 %v9238_v18, %v8121_v19  ;;  %v9288_v14 = vld [vmem:[#allocation14 + $0x1b4] sm:$0xf0]  ;;  %v8231_v52 = vld [vmem:[#allocation14 + $0x108] sm:$0xf] }
 0x2f8   :  { %5071 = vmatpush.bf16.msra.mxu2 %v8260_v8  ;;  %v4444_v27 = vpop.f32.mrf.mxu3  ;;  %v9234_v8 = vld [vmem:[#allocation14 + $0xc] sm:$0xf]  ;;  %v9268_v6 = vld [vmem:[#allocation14 + $0x114] sm:$0xf0] }
 0x2fa   :  { %5082 = vmatpush.bf16.msra.mxu3 %v8168_v36  ;;  %v3765_v55 = vpop.f32.mrf.mxu0  ;;  %v8105_v36 = vld [vmem:[#allocation14 + $0x18] sm:$0xf0] }
 0x2fb   :  { %5108 = vmatpush.bf16.msrb.mxu1 %v8172_v42  ;;  %5046 = vmatpush.bf16.msra.mxu0 %v8240_v48  ;;  %v8312_v42 = vor.u32 %v9288_v14, %v8311_v5  ;;  %v8108_v43 = vor.u32 %v9234_v8, %v8105_v36  ;;  %v9282_v48 = vld [vmem:[#allocation14 + $0x18c] sm:$0xf]  ;;  %v8232_v55 = vor.u32 %v9268_v6, %v8231_v52  ;;  %v8407_v36 = vld [vmem:[#allocation16 + $0x70] sm:$0xf]  ;;  %v9320_v6 = vld [vmem:[#allocation16 + $0xb4] sm:$0xf0] }
 0x2fc   :  { %5072 = vmatpush.bf16.msra.mxu2 %v8244_v50  ;;  %v3791_v44 = vpop.f32.mrf.mxu2  ;;  %v8296_v50 = vor.u32 %v9284_v45, %v8295_v35  ;;  %v8408_v40 = vor.u32 %v9312_v34, %v8407_v36  ;;  %v8391_v35 = vld [vmem:[#allocation16 + $0x50] sm:$0xf]  ;;  %v9316_v36 = vld [vmem:[#allocation16 + $0x94] sm:$0xf0] }
 0x2fd   :  { %v8471_v44 = vld [vmem:[#allocation16 + $0xf0] sm:$0xf] }
 0x2fe   :  { %5083 = vmatpush.bf16.msra.mxu3 %v8152_v51  ;;  %v8300_v51 = vor.u32 %v9282_v48, %v8297_v31  ;;  %v9308_v48 = vld [vmem:[#allocation16 + $0x54] sm:$0xf0]  ;;  %v8439_v52 = vld [vmem:[#allocation16 + $0xb0] sm:$0xf] }
 0x2ff   :  { %5109 = vmatpush.bf16.msrb.mxu1 %v8156_v54  ;;  %5047 = vmatpush.bf16.msra.mxu0 %v8224_v61  ;;  %v9278_v54 = vld [vmem:[#allocation14 + $0x16c] sm:$0xf] }
 0x300   :  { %5073 = vmatpush.bf16.msra.mxu2 %v8228_v0  ;;  %v8284_v10 = vor.u32 %v9278_v54, %v8281_v12  ;;  %v9274_v61 = vld [vmem:[#allocation14 + $0x14c] sm:$0xf]  ;;  %v8247_v0 = vld [vmem:[#allocation14 + $0x128] sm:$0xf] }
 0x301   :  { %v8268_v62 = vor.u32 %v9274_v61, %v8265_v39  ;;  %v9304_v61 = vld [vmem:[#allocation16 + $0x34] sm:$0xf0] }
 0x302   :  { %5084 = vmatpush.bf16.msra.mxu3 %v8136_v2  ;;  %5048 = vmatmul.bf16.vlgmr.msra.gmra.mxu0 %v10068_v16  ;;  %v4455_v47 = vpop.f32.mrf.mxu0  ;;  %v8249_v2 = vld [vmem:[#allocation14 + $0x138] sm:$0xf0] }
 0x303   :  { %5092 = vmatpush.bf16.msrb.mxu0 %v8344_v3  ;;  %5110 = vmatpush.bf16.msrb.mxu1 %v8140_v29  ;;  %v4456_v22 = vadd.f32 %v4455_v47, %v10062_v57  ;;  %v8263_v57 = vld [vmem:[#allocation14 + $0x148] sm:$0xf]  ;;  %v8248_v3 = vor.u32 %v9272_v1, %v8247_v0  ;;  %v8367_v1 = vld [vmem:[#allocation16 + $0x20] sm:$0xf] }
 0x304   :  { %5118 = vmatpush.bf16.msrb.mxu2 %v8348_v63  ;;  %v8264_v59 = vor.u32 %v9276_v58, %v8263_v57  ;;  %v9266_v63 = vld [vmem:[#allocation14 + $0x10c] sm:$0xf]  ;;  %v9324_v57 = vld [vmem:[#allocation16 + $0xd4] sm:$0xf0]  ;;  %v8375_v58 = vld [vmem:[#allocation16 + $0x30] sm:$0xf] }
 0x305   :  { %5074 = vmatmul.bf16.vlgmr.msra.gmra.mxu2 %v10068_v16  ;;  %v4469_v53 = vadd.f32 %v10056_v9, %v4456_v22  ;;  %v8236_v20 = vor.u32 %v9266_v63, %v8233_v17  ;;  %v8392_v22 = vor.u32 %v9308_v48, %v8391_v35  ;;  %v8440_v63 = vor.u32 %v9320_v6, %v8439_v52  ;;  %v9300_v17 = vld [vmem:[#allocation16 + $0x14] sm:$0xf0]  ;;  %v9323_v6 = vld [vmem:[#allocation16 + $0xd4] sm:$0xf] }
 0x306   :  { %5085 = vmatpush.bf16.msra.mxu3 %v8120_v23  ;;  %v9360_v48 = vld [vmem:[#allocation16 + $0x1f4] sm:$0xf0] }
 0x307   :  { %5093 = vmatpush.bf16.msrb.mxu0 %v8328_v25  ;;  %5111 = vmatpush.bf16.msrb.mxu1 %v8124_v26  ;;  %v4481_v37 = vpop.f32.mrf.mxu2  ;;  %v9356_v52 = vld [vmem:[#allocation16 + $0x1d4] sm:$0xf0] }
 0x308   :  { %5119 = vmatpush.bf16.msrb.mxu2 %v8332_v32  ;;  %v10076_v60 = vadd.f32 %v4481_v37, %v4469_v53  ;;  %v9306_v53 = vld [vmem:[#allocation16 + $0x44] sm:$0xf0]  ;;  %v8455_v37 = vld [vmem:[#allocation16 + $0xd0] sm:$0xf] }
 0x309   :  { %v8384_v12 = vor.u32 %v9306_v53, %v8383_v30  ;;  %v8519_v30 = vld [vmem:[#allocation16 + $0x150] sm:$0xf]  ;;  %v9340_v53 = vld [vmem:[#allocation16 + $0x154] sm:$0xf0] }
 0x30a   :  { %5086 = vmatpush.bf16.msra.mxu3 %v8104_v41  ;;  %v4457_v13 = vpop.f32.mrf.mxu0 }
 0x30b   :  { %5094 = vmatpush.bf16.msrb.mxu0 %v8312_v42  ;;  %5112 = vmatpush.bf16.msrb.mxu1 %v8108_v43  ;;  %v4520_v9 = vpop.f32.mrf.mxu1  ;;  %v8399_v42 = vld [vmem:[#allocation16 + $0x60] sm:$0xf]  ;;  %v8456_v13 = vor.u32 %v9324_v57, %v8455_v37 }
 0x30c   :  { %5120 = vmatpush.bf16.msrb.mxu2 %v8316_v56  ;;  %v9328_v56 = vld [vmem:[#allocation16 + $0xf4] sm:$0xf0] }
 0x30d   :  { %5087 = vmatmul.bf16.vlgmr.msra.gmra.mxu3 %v10049_v7  ;;  %v8472_v47 = vor.u32 %v9328_v56, %v8471_v44  ;;  %v8415_v44 = vld [vmem:[#allocation16 + $0x80] sm:$0xf]  ;;  %v9314_v56 = vld [vmem:[#allocation16 + $0x84] sm:$0xf0] }
 0x30e   :  { %5113 = vmatmul.bf16.vlgmr.msrb.gmra.mxu1 %v10049_v7  ;;  %v9270_v7 = vld [vmem:[#allocation14 + $0x12c] sm:$0xf]  ;;  %5547 = vmatpush.bf16.msrb.mxu3 %v8408_v40  ;;  %v8527_v40 = vld [vmem:[#allocation16 + $0x160] sm:$0xf] }
 0x30f   :  { %5095 = vmatpush.bf16.msrb.mxu0 %v8296_v50  ;;  %v8252_v29 = vor.u32 %v9270_v7, %v8249_v2  ;;  %v4483_v4 = vpop.f32.mrf.mxu2  ;;  %v8463_v50 = vld [vmem:[#allocation16 + $0xe0] sm:$0xf]  ;;  %v9302_v7 = vld [vmem:[#allocation16 + $0x24] sm:$0xf0] }
 0x310   :  { %5121 = vmatpush.bf16.msrb.mxu2 %v8300_v51  ;;  %v4494_v11 = vpop.f32.mrf.mxu3  ;;  %v9326_v51 = vld [vmem:[#allocation16 + $0xe4] sm:$0xf0]  ;;  %v8368_v2 = vor.u32 %v9302_v7, %v8367_v1  ;;  %v9305_v7 = vld [vmem:[#allocation16 + $0x44] sm:$0xf] }
 0x311   :  { %v4495_v18 = vadd.f32 %v4494_v11, %v10054_v46  ;;  %v8464_v49 = vor.u32 %v9326_v51, %v8463_v50  ;;  %v8359_v11 = vld [vmem:[#allocation16 + $0x10] sm:$0xf]  ;;  %v8473_v50 = vld [vmem:[#allocation16 + $0xf8] sm:$0xf0]  ;;  %v9338_v1 = vld [vmem:[#allocation16 + $0x144] sm:$0xf0] }
 0x313   :  { %5096 = vmatpush.bf16.msrb.mxu0 %v8280_v21  ;;  %v4522_v19 = vpop.f32.mrf.mxu1 }
 0x314   :  { %5122 = vmatpush.bf16.msrb.mxu2 %v8284_v10  ;;  %v9318_v19 = vld [vmem:[#allocation16 + $0xa4] sm:$0xf0] }
 0x317   :  { %5097 = vmatpush.bf16.msrb.mxu0 %v8264_v59  ;;  %v8447_v59 = vld [vmem:[#allocation16 + $0xc0] sm:$0xf] }
 0x318   :  { %5123 = vmatpush.bf16.msrb.mxu2 %v8268_v62  ;;  %v4496_v24 = vpop.f32.mrf.mxu3  ;;  %v9322_v62 = vld [vmem:[#allocation16 + $0xc4] sm:$0xf0] }
 0x319   :  { %v8448_v0 = vor.u32 %v9322_v62, %v8447_v59  ;;  %v8465_v59 = vld [vmem:[#allocation16 + $0xe8] sm:$0xf0] }
 0x31b   :  { %5098 = vmatpush.bf16.msrb.mxu0 %v8248_v3 }
 0x31c   :  { %5124 = vmatpush.bf16.msrb.mxu2 %v8252_v29 }
 0x31f   :  { %5099 = vmatpush.bf16.msrb.mxu0 %v8232_v55  ;;  %v4507_v23 = vpop.f32.mrf.mxu0 }
 0x320   :  { %5125 = vmatpush.bf16.msrb.mxu2 %v8236_v20  ;;  %v4508_v25 = vadd.f32 %v4507_v23, %v4495_v18  ;;  %v8431_v18 = vld [vmem:[#allocation16 + $0xa0] sm:$0xf]  ;;  %v8360_v20 = vor.u32 %v9300_v17, %v8359_v11  ;;  %v8457_v17 = vld [vmem:[#allocation16 + $0xd8] sm:$0xf0] }
 0x321   :  { %v8432_v24 = vor.u32 %v9318_v19, %v8431_v18  ;;  %v8351_v23 = vld [vmem:[#allocation16] sm:$0xf]  ;;  %v8460_v18 = vor.u32 %v9323_v6, %v8457_v17  ;;  %v8503_v19 = vld [vmem:[#allocation16 + $0x130] sm:$0xf]  ;;  %v8425_v6 = vld [vmem:[#allocation16 + $0x98] sm:$0xf0] }
 0x322   :  { %5100 = vmatmul.bf16.vlgmr.msrb.gmra.mxu0 %v10068_v16  ;;  %v4521_v26 = vadd.f32 %v4520_v9, %v4508_v25  ;;  %v8376_v9 = vor.u32 %v9304_v61, %v8375_v58  ;;  %v9298_v25 = vld [vmem:[#allocation16 + $0x4] sm:$0xf0]  ;;  %v8591_v58 = vld [vmem:[#allocation16 + $0x1e0] sm:$0xf]  ;;  %v9325_v61 = vld [vmem:[#allocation16 + $0xe4] sm:$0xf] }
 0x323   :  { %5126 = vmatmul.bf16.vlgmr.msrb.gmra.mxu2 %v10068_v16  ;;  %v9310_v16 = vld [vmem:[#allocation16 + $0x64] sm:$0xf0]  ;;  %5560 = vmatpush.bf16.msra.mxu0 %v8472_v47  ;;  %v8599_v47 = vld [vmem:[#allocation16 + $0x1f0] sm:$0xf]  ;;  %v8468_v62 = vor.u32 %v9325_v61, %v8465_v59  ;;  %v9297_v61 = vld [vmem:[#allocation16 + $0x4] sm:$0xf] }
 0x324   :  { %v8400_v43 = vor.u32 %v9310_v16, %v8399_v42  ;;  %v9309_v42 = vld [vmem:[#allocation16 + $0x64] sm:$0xf]  ;;  %v8353_v59 = vld [vmem:[#allocation16 + $0x8] sm:$0xf0] }
 0x325   :  { %v9341_v17 = vld [vmem:[#allocation16 + $0x164] sm:$0xf] }
 0x326   :  { %5548 = vmatpush.bf16.msrb.mxu3 %v8400_v43  ;;  %v8401_v43 = vld [vmem:[#allocation16 + $0x68] sm:$0xf0] }
 0x327   :  { %v4509_v33 = vpop.f32.mrf.mxu0  ;;  %5561 = vmatpush.bf16.msra.mxu0 %v8464_v49  ;;  %v8404_v35 = vor.u32 %v9309_v42, %v8401_v43  ;;  %v8567_v43 = vld [vmem:[#allocation16 + $0x1b0] sm:$0xf] }
 0x328   :  { %v4533_v27 = vpop.f32.mrf.mxu2  ;;  %v9344_v33 = vld [vmem:[#allocation16 + $0x174] sm:$0xf0] }
 0x329   :  { %v10081_v28 = vadd.f32 %v4533_v27, %v4521_v26  ;;  %v8535_v26 = vld [vmem:[#allocation16 + $0x170] sm:$0xf]  ;;  %v8352_v27 = vor.u32 %v9298_v25, %v8351_v23  ;;  %v8377_v25 = vld [vmem:[#allocation16 + $0x38] sm:$0xf0] }
 0x32a   :  { %5549 = vmatpush.bf16.msrb.mxu3 %v8392_v22 }
 0x32b   :  { %v4572_v46 = vpop.f32.mrf.mxu1  ;;  %5562 = vmatpush.bf16.msra.mxu0 %v8456_v13  ;;  %v9358_v13 = vld [vmem:[#allocation16 + $0x1e4] sm:$0xf0] }
 0x32e   :  { %5550 = vmatpush.bf16.msrb.mxu3 %v8384_v12  ;;  %v9307_v12 = vld [vmem:[#allocation16 + $0x54] sm:$0xf] }
 0x32f   :  { %5563 = vmatpush.bf16.msra.mxu0 %v8448_v0  ;;  %v8511_v0 = vld [vmem:[#allocation16 + $0x140] sm:$0xf] }
 0x330   :  { %v4535_v5 = vpop.f32.mrf.mxu2  ;;  %v4546_v32 = vpop.f32.mrf.mxu3 }
 0x331   :  { %v4547_v14 = vadd.f32 %v4546_v32, %v10059_v38  ;;  %v8536_v32 = vor.u32 %v9344_v33, %v8535_v26  ;;  %v9354_v33 = vld [vmem:[#allocation16 + $0x1c4] sm:$0xf0] }
 0x332   :  { %5551 = vmatpush.bf16.msrb.mxu3 %v8376_v9  ;;  %v8592_v9 = vor.u32 %v9358_v13, %v8591_v58  ;;  %v8479_v58 = vld [vmem:[#allocation16 + $0x100] sm:$0xf]  ;;  %v9330_v13 = vld [vmem:[#allocation16 + $0x104] sm:$0xf0] }
 0x333   :  { %v4574_v8 = vpop.f32.mrf.mxu1  ;;  %5564 = vmatpush.bf16.msra.mxu0 %v8440_v63  ;;  %5573 = vmatpush.bf16.msra.mxu1 %v8536_v32 }
 0x334   :  { %v8423_v8 = vld [vmem:[#allocation16 + $0x90] sm:$0xf] }
 0x335   :  { %v8424_v34 = vor.u32 %v9316_v36, %v8423_v8  ;;  %v9334_v8 = vld [vmem:[#allocation16 + $0x124] sm:$0xf0]  ;;  %v9301_v36 = vld [vmem:[#allocation16 + $0x24] sm:$0xf] }
 0x336   :  { %5552 = vmatpush.bf16.msrb.mxu3 %v8368_v2  ;;  %v8512_v2 = vor.u32 %v9338_v1, %v8511_v0  ;;  %v8537_v0 = vld [vmem:[#allocation16 + $0x178] sm:$0xf0] }
 0x337   :  { %5565 = vmatpush.bf16.msra.mxu0 %v8432_v24 }
 0x338   :  { %v4548_v41 = vpop.f32.mrf.mxu3 }
 0x339   :  { %v9342_v41 = vld [vmem:[#allocation16 + $0x164] sm:$0xf0] }
 0x33a   :  { %5553 = vmatpush.bf16.msrb.mxu3 %v8360_v20  ;;  %v8528_v16 = vor.u32 %v9342_v41, %v8527_v40  ;;  %v9303_v20 = vld [vmem:[#allocation16 + $0x34] sm:$0xf]  ;;  %v8369_v40 = vld [vmem:[#allocation16 + $0x28] sm:$0xf0] }
 0x33b   :  { %5566 = vmatpush.bf16.msra.mxu0 %v8424_v34  ;;  %v8380_v26 = vor.u32 %v9303_v20, %v8377_v25  ;;  %v9346_v20 = vld [vmem:[#allocation16 + $0x184] sm:$0xf0] }
 0x33c   :  { %5574 = vmatpush.bf16.msra.mxu1 %v8528_v16  ;;  %v8372_v16 = vor.u32 %v9301_v36, %v8369_v40  ;;  %v9357_v40 = vld [vmem:[#allocation16 + $0x1e4] sm:$0xf] }
 0x33e   :  { %5554 = vmatpush.bf16.msrb.mxu3 %v8352_v27  ;;  %v8575_v27 = vld [vmem:[#allocation16 + $0x1c0] sm:$0xf] }
 0x33f   :  { %v4559_v45 = vpop.f32.mrf.mxu0 }
 0x340   :  { %v4560_v31 = vadd.f32 %v4559_v45, %v4547_v14  ;;  %v8416_v45 = vor.u32 %v9314_v56, %v8415_v44  ;;  %v9352_v44 = vld [vmem:[#allocation16 + $0x1b4] sm:$0xf0]  ;;  %v9319_v56 = vld [vmem:[#allocation16 + $0xb4] sm:$0xf] }
 0x342   :  { %v4573_v38 = vadd.f32 %v4572_v46, %v4560_v31  ;;  %v9311_v46 = vld [vmem:[#allocation16 + $0x74] sm:$0xf]  ;;  %5567 = vmatpush.bf16.msra.mxu0 %v8416_v45  ;;  %v8441_v45 = vld [vmem:[#allocation16 + $0xb8] sm:$0xf0] }
 0x343   :  { %v9327_v31 = vld [vmem:[#allocation16 + $0xf4] sm:$0xf] }
 0x344   :  { %v8476_v49 = vor.u32 %v9327_v31, %v8473_v50  ;;  %v8444_v31 = vor.u32 %v9319_v56, %v8441_v45  ;;  %v8361_v50 = vld [vmem:[#allocation16 + $0x18] sm:$0xf0]  ;;  %v8513_v56 = vld [vmem:[#allocation16 + $0x148] sm:$0xf0] }
 0x346   :  { %5612 = vmatpush.bf16.msrb.mxu0 %v8476_v49 }
 0x347   :  { %v4561_v10 = vpop.f32.mrf.mxu0 }
 0x348   :  { %v4585_v54 = vpop.f32.mrf.mxu2  ;;  %v8393_v10 = vld [vmem:[#allocation16 + $0x58] sm:$0xf0] }
 0x349   :  { %v10084_v21 = vadd.f32 %v4585_v54, %v4573_v38  ;;  %v8600_v38 = vor.u32 %v9360_v48, %v8599_v47  ;;  %v8520_v54 = vor.u32 %v9340_v53, %v8519_v30  ;;  %v8396_v57 = vor.u32 %v9307_v12, %v8393_v10  ;;  %v8487_v47 = vld [vmem:[#allocation16 + $0x110] sm:$0xf]  ;;  %v9332_v48 = vld [vmem:[#allocation16 + $0x114] sm:$0xf0]  ;;  %v9350_v53 = vld [vmem:[#allocation16 + $0x1a4] sm:$0xf0] }
 0x34a   :  { %5613 = vmatpush.bf16.msrb.mxu0 %v8468_v62  ;;  %v8433_v12 = vld [vmem:[#allocation16 + $0xa8] sm:$0xf0]  ;;  %v9343_v62 = vld [vmem:[#allocation16 + $0x174] sm:$0xf] }
 0x34b   :  { %v10086_v39 = vpop.f32.mrf.mxu1  ;;  %5586 = vmatpush.bf16.msra.mxu2 %v8600_v38  ;;  %5575 = vmatpush.bf16.msra.mxu1 %v8520_v54  ;;  %v9299_v38 = vld [vmem:[#allocation16 + $0x14] sm:$0xf]  ;;  %v9317_v54 = vld [vmem:[#allocation16 + $0xa4] sm:$0xf] }
 0x34c   :  { %v8364_v30 = vor.u32 %v9299_v38, %v8361_v50 }
 0x34e   :  { %5614 = vmatpush.bf16.msrb.mxu0 %v8460_v18  ;;  %v8529_v18 = vld [vmem:[#allocation16 + $0x168] sm:$0xf0] }
 0x34f   :  { %5587 = vmatpush.bf16.msra.mxu2 %v8592_v9  ;;  %5576 = vmatpush.bf16.msra.mxu1 %v8512_v2  ;;  %v8480_v9 = vor.u32 %v9330_v13, %v8479_v58  ;;  %v8540_v2 = vor.u32 %v9343_v62, %v8537_v0  ;;  %v9351_v62 = vld [vmem:[#allocation16 + $0x1b4] sm:$0xf]  ;;  %v8569_v0 = vld [vmem:[#allocation16 + $0x1b8] sm:$0xf0] }
 0x350   :  { %v4587_v3 = vpop.f32.mrf.mxu2  ;;  %v4598_v29 = vpop.f32.mrf.mxu3 }
 0x351   :  { %v4599_v4 = vadd.f32 %v4598_v29, %v10066_v15  ;;  %v8409_v15 = vld [vmem:[#allocation16 + $0x78] sm:$0xf0]  ;;  %v8385_v3 = vld [vmem:[#allocation16 + $0x48] sm:$0xf0] }
 0x352   :  { %v8412_v14 = vor.u32 %v9311_v46, %v8409_v15  ;;  %v9321_v46 = vld [vmem:[#allocation16 + $0xc4] sm:$0xf]  ;;  %v8576_v15 = vor.u32 %v9354_v33, %v8575_v27  ;;  %v9359_v27 = vld [vmem:[#allocation16 + $0x1f4] sm:$0xf]  ;;  %v8601_v33 = vld [vmem:[#allocation16 + $0x1f8] sm:$0xf0] }
 0x353   :  { %v4626_v55 = vpop.f32.mrf.mxu1 }
 0x354   :  { %5599 = vmatpush.bf16.msra.mxu3 %v8412_v14  ;;  %v9336_v55 = vld [vmem:[#allocation16 + $0x134] sm:$0xf0]  ;;  %v8495_v14 = vld [vmem:[#allocation16 + $0x120] sm:$0xf] }
 0x355   :  { %v8504_v23 = vor.u32 %v9336_v55, %v8503_v19  ;;  %v8496_v34 = vor.u32 %v9334_v8, %v8495_v14  ;;  %v8532_v19 = vor.u32 %v9341_v17, %v8529_v18  ;;  %v8543_v55 = vld [vmem:[#allocation16 + $0x180] sm:$0xf]  ;;  %v8521_v14 = vld [vmem:[#allocation16 + $0x158] sm:$0xf0]  ;;  %v8481_v17 = vld [vmem:[#allocation16 + $0x108] sm:$0xf0] }
 0x356   :  { %v8544_v25 = vor.u32 %v9346_v20, %v8543_v55  ;;  %v9347_v55 = vld [vmem:[#allocation16 + $0x194] sm:$0xf]  ;;  %v8553_v20 = vld [vmem:[#allocation16 + $0x198] sm:$0xf0] }
 0x357   :  { %5577 = vmatpush.bf16.msra.mxu1 %v8504_v23  ;;  %v9313_v23 = vld [vmem:[#allocation16 + $0x84] sm:$0xf] }
 0x358   :  { %v4600_v5 = vpop.f32.mrf.mxu3  ;;  %5600 = vmatpush.bf16.msra.mxu3 %v8404_v35  ;;  %v8568_v35 = vor.u32 %v9352_v44, %v8567_v43  ;;  %v9337_v44 = vld [vmem:[#allocation16 + $0x144] sm:$0xf] }
 0x359   :  { %v8449_v5 = vld [vmem:[#allocation16 + $0xc8] sm:$0xf0]  ;;  %v8516_v45 = vor.u32 %v9337_v44, %v8513_v56 }
 0x35a   :  { %v8452_v32 = vor.u32 %v9321_v46, %v8449_v5 }
 0x35b   :  { %5578 = vmatpush.bf16.msra.mxu1 %v8496_v34 }
 0x35c   :  { %5601 = vmatpush.bf16.msra.mxu3 %v8396_v57  ;;  %5615 = vmatpush.bf16.msrb.mxu0 %v8452_v32  ;;  %v8436_v57 = vor.u32 %v9317_v54, %v8433_v12  ;;  %v9339_v32 = vld [vmem:[#allocation16 + $0x154] sm:$0xf] }
 0x35d   :  { %v8524_v34 = vor.u32 %v9339_v32, %v8521_v14 }
 0x35f   :  { %v4611_v22 = vpop.f32.mrf.mxu0 }
 0x360   :  { %v4612_v51 = vadd.f32 %v4611_v22, %v4599_v4  ;;  %v8583_v4 = vld [vmem:[#allocation16 + $0x1d0] sm:$0xf]  ;;  %v8488_v22 = vor.u32 %v9332_v48, %v8487_v47  ;;  %5616 = vmatpush.bf16.msrb.mxu0 %v8444_v31  ;;  %v9355_v47 = vld [vmem:[#allocation16 + $0x1d4] sm:$0xf]  ;;  %v8585_v48 = vld [vmem:[#allocation16 + $0x1d8] sm:$0xf0] }
 0x361   :  { %v8584_v63 = vor.u32 %v9356_v52, %v8583_v4  ;;  %v9315_v4 = vld [vmem:[#allocation16 + $0x94] sm:$0xf] }
 0x362   :  { %v10090_v37 = vadd.f32 %v10086_v39, %v4612_v51  ;;  %v8388_v39 = vor.u32 %v9305_v7, %v8385_v3  ;;  %v8559_v51 = vld [vmem:[#allocation16 + $0x1a0] sm:$0xf]  ;;  %5579 = vmatpush.bf16.msra.mxu1 %v8488_v22  ;;  %v8356_v7 = vor.u32 %v9297_v61, %v8353_v59  ;;  %v8551_v3 = vld [vmem:[#allocation16 + $0x190] sm:$0xf]  ;;  %v8588_v22 = vor.u32 %v9355_v47, %v8585_v48  ;;  %v9333_v61 = vld [vmem:[#allocation16 + $0x124] sm:$0xf] }
 0x363   :  { %5588 = vmatpush.bf16.msra.mxu2 %v8584_v63  ;;  %v8560_v10 = vor.u32 %v9350_v53, %v8559_v51  ;;  %v10101_v63 = vld [vmem:[%s10138_s15 + $0x4] sm:$0xf] }
 0x364   :  { %5602 = vmatpush.bf16.msra.mxu3 %v8388_v39  ;;  %5617 = vmatpush.bf16.msrb.mxu0 %v8436_v57  ;;  %v9348_v39 = vld [vmem:[#allocation16 + $0x194] sm:$0xf0]  ;;  %v5137_v36 = vperm.slane %v10101_v63, 0  ;;  %v5138_v50 = vperm.slane %v10101_v63, 1  ;;  %v8577_v57 = vld [vmem:[#allocation16 + $0x1c8] sm:$0xf0] }
 0x365   :  { %v8552_v52 = vor.u32 %v9348_v39, %v8551_v3  ;;  %v8489_v39 = vld [vmem:[#allocation16 + $0x118] sm:$0xf0]  ;;  %v5139_v32 = vperm.slane %v10101_v63, 2 }
 0x366   :  { %5580 = vmatpush.bf16.msra.mxu1 %v8480_v9  ;;  %v8497_v9 = vld [vmem:[#allocation16 + $0x128] sm:$0xf0] }
 0x367   :  { %v4613_v11 = vpop.f32.mrf.mxu0  ;;  %5589 = vmatpush.bf16.msra.mxu2 %v8576_v15  ;;  %v8604_v15 = vor.u32 %v9359_v27, %v8601_v33  ;;  %v9345_v27 = vld [vmem:[#allocation16 + $0x184] sm:$0xf]  ;;  %v8545_v33 = vld [vmem:[#allocation16 + $0x188] sm:$0xf0] }
 0x368   :  { %v10092_v29 = vpop.f32.mrf.mxu2  ;;  %5603 = vmatpush.bf16.msra.mxu3 %v8380_v26  ;;  %v8428_v11 = vor.u32 %v9315_v4, %v8425_v6  ;;  %v8417_v26 = vld [vmem:[#allocation16 + $0x88] sm:$0xf0]  ;;  %v9349_v4 = vld [vmem:[#allocation16 + $0x1a4] sm:$0xf] }
 0x369   :  { %v8420_v46 = vor.u32 %v9313_v23, %v8417_v26  ;;  %v8561_v6 = vld [vmem:[#allocation16 + $0x1a8] sm:$0xf0] }
 0x36a   :  { %5625 = vmatpush.bf16.msrb.mxu1 %v8540_v2  ;;  %5618 = vmatpush.bf16.msrb.mxu0 %v8428_v11  ;;  %v8572_v2 = vor.u32 %v9351_v62, %v8569_v0  ;;  %v9329_v11 = vld [vmem:[#allocation16 + $0x104] sm:$0xf] }
 0x36b   :  { %v10094_v24 = vpop.f32.mrf.mxu1  ;;  %5590 = vmatpush.bf16.msra.mxu2 %v8568_v35  ;;  %v8484_v23 = vor.u32 %v9329_v11, %v8481_v17 }
 0x36c   :  { %5604 = vmatpush.bf16.msra.mxu3 %v8372_v16 }
 0x36e   :  { %5626 = vmatpush.bf16.msrb.mxu1 %v8532_v19  ;;  %5619 = vmatpush.bf16.msrb.mxu0 %v8420_v46  ;;  %v8564_v19 = vor.u32 %v9349_v4, %v8561_v6  ;;  %v8548_v46 = vor.u32 %v9345_v27, %v8545_v33 }
 0x36f   :  { %5591 = vmatpush.bf16.msra.mxu2 %v8560_v10  ;;  %v9353_v10 = vld [vmem:[#allocation16 + $0x1c4] sm:$0xf] }
 0x370   :  { %v4639_v41 = vpop.f32.mrf.mxu2  ;;  %v10096_v42 = vpop.f32.mrf.mxu3  ;;  %5605 = vmatpush.bf16.msra.mxu3 %v8364_v30  ;;  %v8580_v58 = vor.u32 %v9353_v10, %v8577_v57  ;;  %v9372_v10 = vld [vmem:[#allocation17 + $0x58] sm:$0xff]  ;;  %v9371_v57 = vld [vmem:[#allocation17 + $0x50] sm:$0xff] }
 0x371   :  { %v8593_v41 = vld [vmem:[#allocation16 + $0x1e8] sm:$0xf0] }
 0x372   :  { %5627 = vmatpush.bf16.msrb.mxu1 %v8524_v34  ;;  %v8596_v43 = vor.u32 %v9357_v40, %v8593_v41  ;;  %v4638_v40 = vadd.f32 %v10092_v29, %v10090_v37  ;;  %v9365_v37 = vld [vmem:[#allocation17 + $0x20] sm:$0xff]  ;;  %v9364_v29 = vld [vmem:[#allocation17 + $0x18] sm:$0xff] }
 0x373   :  { %v5064_v49 = vpop.f32.mrf.mxu1  ;;  %5592 = vmatpush.bf16.msra.mxu2 %v8552_v52 }
 0x374   :  { %5606 = vmatpush.bf16.msra.mxu3 %v8356_v7  ;;  %v9335_v49 = vld [vmem:[#allocation16 + $0x134] sm:$0xf] }
 0x376   :  { %5628 = vmatpush.bf16.msrb.mxu1 %v8516_v45 }
 0x377   :  { %5593 = vmatpush.bf16.msra.mxu2 %v8544_v25  ;;  %v8556_v25 = vor.u32 %v9347_v55, %v8553_v20 }
 0x378   :  { %v5038_v1 = vpop.f32.mrf.mxu3 }
 0x37b   :  { %5638 = vmatpush.bf16.msrb.mxu2 %v8604_v15 }
 0x37f   :  { %v5049_v5 = vpop.f32.mrf.mxu0  ;;  %5639 = vmatpush.bf16.msrb.mxu2 %v8596_v43 }
 0x380   :  { %v5050_v8 = vadd.f32 %v5049_v5, %v10096_v42 }
 0x382   :  { %v5131_v16 = vadd.f32 %v5050_v8, %v10076_v60  ;;  %v8505_v60 = vld [vmem:[#allocation16 + $0x138] sm:$0xf0] }
 0x383   :  { %5640 = vmatpush.bf16.msrb.mxu2 %v8588_v22  ;;  %v8508_v53 = vor.u32 %v9335_v49, %v8505_v60  ;;  %v9363_v22 = vld [vmem:[#allocation17 + $0x10] sm:$0xff]  ;;  %v9362_v49 = vld [vmem:[#allocation17 + $0x8] sm:$0xff] }
 0x384   :  { %v5145_v35 = vadd.f32 %v5137_v36, %v5131_v16  ;;  %v5140_v16 = vperm.slane %v10101_v63, 3  ;;  %v9376_v63 = vld [vmem:[#allocation17 + $0x78] sm:$0xff]  ;;  %v9374_v60 = vld [vmem:[#allocation17 + $0x68] sm:$0xff] }
 0x385   :  { %5629 = vmatpush.bf16.msrb.mxu1 %v8508_v53  ;;  %v9373_v53 = vld [vmem:[#allocation17 + $0x60] sm:$0xff] }
 0x386   :  { %v5149_v31 = vmax.f32 %v5145_v35, 0.0 }
 0x387   :  { %v5051_v51 = vpop.f32.mrf.mxu0  ;;  %5641 = vmatpush.bf16.msrb.mxu2 %v8580_v58 }
 0x388   :  { %v5075_v42 = vpop.f32.mrf.mxu2  ;;  %v5153_v30 = vpack.c.bf16 %v5149_v31, %v5149_v31  ;;  %v9367_v31 = vld [vmem:[#allocation17 + $0x30] sm:$0xff] }
 0x389   :  { %v5076_v38 = vadd.f32 %v5075_v42, %v10094_v24  ;;  %v8500_v24 = vor.u32 %v9333_v61, %v8497_v9  ;;  %v9366_v42 = vld [vmem:[#allocation17 + $0x28] sm:$0xff] }
 0x38a   :  { %5555 = vmatmul.bf16.vlgmr.msrb.gmra.mxu3 %v5153_v30  ;;  %v9370_v61 = vld [vmem:[#allocation17 + $0x48] sm:$0xff] }
 0x38b   :  { %v5132_v54 = vadd.f32 %v5076_v38, %v10081_v28  ;;  %v5114_v12 = vpop.f32.mrf.mxu1  ;;  %5630 = vmatpush.bf16.msrb.mxu1 %v8500_v24  ;;  %v9331_v28 = vld [vmem:[#allocation16 + $0x114] sm:$0xf]  ;;  %5642 = vmatpush.bf16.msrb.mxu2 %v8572_v2  ;;  %v5221_v9 = vld [vmem:[%s10138_s15 + $0xe] sm:$0x3]  ;;  %v9369_v24 = vld [vmem:[#allocation17 + $0x40] sm:$0xff] }
 0x38c   :  { %v8492_v52 = vor.u32 %v9331_v28, %v8489_v39  ;;  %v9375_v38 = vld [vmem:[#allocation17 + $0x70] sm:$0xff]  ;;  %v5224_v11 = vperm.slane %v5221_v9, 1 }
 0x38d   :  { %v5146_v13 = vadd.f32 %v5138_v50, %v5132_v54 }
 0x38f   :  { %v5150_v59 = vmax.f32 %v5146_v13, 0.0  ;;  %5631 = vmatpush.bf16.msrb.mxu1 %v8492_v52  ;;  %5643 = vmatpush.bf16.msrb.mxu2 %v8564_v19 }
 0x390   :  { %v5077_v1 = vpop.f32.mrf.mxu2  ;;  %v5088_v7 = vpop.f32.mrf.mxu3 }
 0x391   :  { %v5154_v3 = vpack.c.bf16 %v5150_v59, %v5150_v59  ;;  %v5223_v1 = vperm.slane %v5221_v9, 0 }
 0x393   :  { %v5116_v18 = vpop.f32.mrf.mxu1  ;;  %5568 = vmatmul.bf16.vlgmr.msra.gmra.mxu0 %v5154_v3  ;;  %5632 = vmatpush.bf16.msrb.mxu1 %v8484_v23 }
 0x394   :  { %5644 = vmatpush.bf16.msrb.mxu2 %v8556_v25  ;;  %5800 = vmatpush.bf16.msra.mxu0 %v9376_v63 }
 0x398   :  { %v5090_v26 = vpop.f32.mrf.mxu3  ;;  %5645 = vmatpush.bf16.msrb.mxu2 %v8548_v46  ;;  %5801 = vmatpush.bf16.msra.mxu0 %v9375_v38 }
 0x39a   :  { %5607 = vmatmul.bf16.vlgmr.msra.gmra.mxu3 %v5153_v30  ;;  %v9361_v30 = vld [vmem:[#allocation17] sm:$0xff] }
 0x39c   :  { %5802 = vmatpush.bf16.msra.mxu0 %v9374_v60 }
 0x39f   :  { %v5101_v15 = vpop.f32.mrf.mxu0 }
 0x3a0   :  { %v5102_v5 = vadd.f32 %v5101_v15, %v5088_v7  ;;  %5803 = vmatpush.bf16.msra.mxu0 %v9373_v53 }
 0x3a2   :  { %v5133_v14 = vadd.f32 %v5102_v5, %v10084_v21  ;;  %v9368_v21 = vld [vmem:[#allocation17 + $0x38] sm:$0xff]  ;;  %v9395_v5 = vld [vmem:[%s10138_s15 + $0x11] ss:$0 sm:$0xff] }
 0x3a3   :  { %5620 = vmatmul.bf16.vlgmr.msrb.gmra.mxu0 %v5154_v3  ;;  %5787 = vmatpush.bf16.msrb.mxu3 %v9368_v21 }
 0x3a4   :  { %v5147_v8 = vadd.f32 %v5139_v32, %v5133_v14  ;;  %5804 = vmatpush.bf16.msra.mxu0 %v9372_v10 }
 0x3a6   :  { %v5151_v36 = vmax.f32 %v5147_v8, 0.0  ;;  %v5127_v34 = vpop.f32.mrf.mxu2 }
 0x3a7   :  { %v5128_v41 = vadd.f32 %v5127_v34, %v5114_v12  ;;  %v5103_v43 = vpop.f32.mrf.mxu0  ;;  %5788 = vmatpush.bf16.msrb.mxu3 %v9367_v31 }
 0x3a8   :  { %v5155_v44 = vpack.c.bf16 %v5151_v36, %v5151_v36  ;;  %5805 = vmatpush.bf16.msra.mxu0 %v9371_v57 }
 0x3a9   :  { %v5134_v56 = vadd.f32 %v5128_v41, %v4638_v40 }
 0x3aa   :  { %5581 = vmatmul.bf16.vlgmr.msra.gmra.mxu1 %v5155_v44 }
 0x3ab   :  { %v5148_v35 = vadd.f32 %v5140_v16, %v5134_v56  ;;  %5789 = vmatpush.bf16.msrb.mxu3 %v9366_v42 }
 0x3ac   :  { %5806 = vmatpush.bf16.msra.mxu0 %v9370_v61 }
 0x3ad   :  { %v5152_v45 = vmax.f32 %v5148_v35, 0.0 }
 0x3ae   :  { %v5129_v47 = vpop.f32.mrf.mxu2 }
 0x3af   :  { %v5156_v48 = vpack.c.bf16 %v5152_v45, %v5152_v45  ;;  %5790 = vmatpush.bf16.msrb.mxu3 %v9365_v37 }
 0x3b0   :  { %5807 = vmatpush.bf16.msra.mxu0 %v9369_v24 }
 0x3b1   :  { %5594 = vmatmul.bf16.vlgmr.msra.gmra.mxu2 %v5156_v48 }
 0x3b3   :  { %5791 = vmatpush.bf16.msrb.mxu3 %v9364_v29 }
 0x3b7   :  { %5792 = vmatpush.bf16.msrb.mxu3 %v9363_v22 }
 0x3ba   :  { %5633 = vmatmul.bf16.vlgmr.msrb.gmra.mxu1 %v5155_v44 }
 0x3bb   :  { %5793 = vmatpush.bf16.msrb.mxu3 %v9362_v49 }
 0x3bf   :  { %5794 = vmatpush.bf16.msrb.mxu3 %v9361_v30 }
 0x3c1   :  { %5646 = vmatmul.bf16.vlgmr.msrb.gmra.mxu2 %v5156_v48 }
 0x40d   :  { %v5556_v50 = vpop.f32.mrf.mxu3 }
 0x40e   :  { %v5557_v7 = vadd.f32 %v5556_v50, %v5223_v1 }
 0x410   :  { %v5569_v51 = vpop.f32.mrf.mxu0 }
 0x411   :  { %v5570_v3 = vadd.f32 %v5569_v51, %v5557_v7 }
 0x415   :  { %v5558_v54 = vpop.f32.mrf.mxu3 }
 0x418   :  { %v5571_v12 = vpop.f32.mrf.mxu0 }
 0x41d   :  { %v5608_v58 = vpop.f32.mrf.mxu3 }
 0x41e   :  { %v5609_v19 = vadd.f32 %v5608_v58, %v5224_v11 }
 0x420   :  { %v5621_v13 = vpop.f32.mrf.mxu0 }
 0x421   :  { %v5622_v20 = vadd.f32 %v5621_v13, %v5609_v19 }
 0x425   :  { %v5610_v62 = vpop.f32.mrf.mxu3 }
 0x427   :  { %v5582_v59 = vpop.f32.mrf.mxu1 }
 0x428   :  { %v5623_v0 = vpop.f32.mrf.mxu0  ;;  %v5583_v28 = vadd.f32 %v5582_v59, %v5570_v3 }
 0x42f   :  { %v5584_v2 = vpop.f32.mrf.mxu1 }
 0x434   :  { %v5595_v39 = vpop.f32.mrf.mxu2 }
 0x435   :  { %v5596_v4 = vadd.f32 %v5595_v39, %v5583_v28 }
 0x437   :  { %v5651_v52 = vmax.f32 %v5596_v4, 0.0  ;;  %v5634_v6 = vpop.f32.mrf.mxu1 }
 0x438   :  { %v5635_v23 = vadd.f32 %v5634_v6, %v5622_v20 }
 0x439   :  { %v5653_v17 = vpack.c.bf16 %v5651_v52, %v5651_v52 }
 0x43b   :  { %5795 = vmatmul.bf16.vlgmr.msrb.gmra.mxu3 %v5653_v17 }
 0x43c   :  { %v5597_v18 = vpop.f32.mrf.mxu2 }
 0x43f   :  { %v5636_v55 = vpop.f32.mrf.mxu1 }
 0x444   :  { %v5647_v25 = vpop.f32.mrf.mxu2 }
 0x445   :  { %v5648_v26 = vadd.f32 %v5647_v25, %v5635_v23 }
 0x447   :  { %v5652_v27 = vmax.f32 %v5648_v26, 0.0 }
 0x449   :  { %v5654_v33 = vpack.c.bf16 %v5652_v27, %v5652_v27 }
 0x44b   :  { %5808 = vmatmul.bf16.vlgmr.msra.gmra.mxu0 %v5654_v33 }
 0x44c   :  { %v5649_v46 = vpop.f32.mrf.mxu2 }
 0x4be   :  { %v5796_v15 = vpop.f32.mrf.mxu3 }
 0x4bf   :  { %v5797_v14 = vadd.f32 %v9395_v5, %v5796_v15 }
 0x4c6   :  { %v5798_v32 = vpop.f32.mrf.mxu3 }
 0x4c8   :  { %v5809_v8 = vpop.f32.mrf.mxu0 }
 0x4c9   :  { %v5810_v36 = vadd.f32 %v5809_v8, %v5797_v14 }
 0x4cb   :  { %5813 = vst [vmem:[#allocation19] sm:$0xff] %v5810_v36 }
 0x4cc   :  { %5824 = dma.vmem_to_hbm [thread:$0]  %s5820_s1, 128, %s5822_s17, [#allocation4]  }
 0x4d0   :  { %v5811_v34 = vpop.f32.mrf.mxu0 }
 0x4d1   :  { %9672 = dma.done.wait [#allocation4], 128  }
 0x4d2   :  { %9673 = vsyncadd [#allocation4], 4294967168 }
 0x4d3   :  { %5829 = vsyncpa [#allocation3], 1 }
 0x4d4   :  { %5830 = vsyncpa [#allocation6], 1 }
 0x4d5   :  { %5831 = vsyncpa [#allocation9], 1 }
 0x4d6   :  { %5832 = vsyncpa [#allocation12], 1 }
 0x4d7   :  { %5833 = vsyncpa [#allocation15], 1 }
 0x4d8   :  { %5834 = vsyncpa [#allocation18], 1 }
 0x4d9   :  { %5835 = vsyncpa [#allocation4], 1 }

</bundles_post_ra>
